<compile_context>
chip_gen: v5e
topology: v5e:2x2
jax: 0.10.0
libtpu: 0.0.40
codegen_flags: <defaults>
</compile_context>

<pallas_src>
import functools

import jax
import jax.numpy as jnp
from jax.experimental import pallas as pl
from jax.experimental.pallas import tpu as pltpu


LANE = 128          # lane width for padding the output dimension
MAX_BLOCK_B = 1024  # cap on the batch tile (keeps activations ~2 MiB f32)


# --------------------------------------------------------------------------
# Kernel
# --------------------------------------------------------------------------
def dqn_kernel(x_ref, w1_ref, b1_ref, w2_ref, b2_ref,
               w3_ref, b3_ref, w4_ref, b4_ref, out_ref):
    """Fused 4-layer MLP forward for one batch tile.

    bf16 MXU inputs, f32 accumulation, f32 bias + ReLU on the VPU.
    Resident weights + per-tile activations are well under 4 MiB of VMEM.
    """
    x = x_ref[...].astype(jnp.bfloat16)  # cast in-kernel (free under MXU slack)

    h = jnp.dot(x, w1_ref[...], preferred_element_type=jnp.float32)
    h = jnp.maximum(h + b1_ref[...], 0.0)

    h = jnp.dot(h.astype(jnp.bfloat16), w2_ref[...],
                preferred_element_type=jnp.float32)
    h = jnp.maximum(h + b2_ref[...], 0.0)

    h = jnp.dot(h.astype(jnp.bfloat16), w3_ref[...],
                preferred_element_type=jnp.float32)
    h = jnp.maximum(h + b3_ref[...], 0.0)

    out = jnp.dot(h.astype(jnp.bfloat16), w4_ref[...],
                  preferred_element_type=jnp.float32)
    out_ref[...] = (out + b4_ref[...]).astype(out_ref.dtype)


# --------------------------------------------------------------------------
# One-time parameter packing (outside the jitted forward path)
# --------------------------------------------------------------------------
def pack_params(params):
    """bf16 weights, (1, N) f32 biases, last layer padded to 128 lanes.

    Call once at init; reuse the packed tuple for every forward call so the
    jit graph contains exactly one pallas_call and a slice.
    """
    (w1, b1), (w2, b2), (w3, b3), (w4, b4) = params
    n_actions = w4.shape[1]
    n_out_pad = pl.cdiv(n_actions, LANE) * LANE
    w4p = jnp.pad(w4, ((0, 0), (0, n_out_pad - n_actions)))
    b4p = jnp.pad(b4, ((0, n_out_pad - n_actions),))

    packed = (
        w1.astype(jnp.bfloat16), b1.reshape(1, -1).astype(jnp.float32),
        w2.astype(jnp.bfloat16), b2.reshape(1, -1).astype(jnp.float32),
        w3.astype(jnp.bfloat16), b3.reshape(1, -1).astype(jnp.float32),
        w4p.astype(jnp.bfloat16), b4p.reshape(1, -1).astype(jnp.float32),
    )
    return tuple(jax.device_put(a) for a in packed)


def _num_tensorcores():
    """v7x chips have 2 TensorCores; v5e/v6e have 1."""
    try:
        kind = jax.devices()[0].device_kind.lower()
        if "v7" in kind:
            return 2
    except Exception:
        pass
    return 1


def choose_block_b(batch, num_tc=None):
    """One batch tile per TensorCore, multiple of 8 sublanes, capped for VMEM."""
    if num_tc is None:
        num_tc = _num_tensorcores()
    per_core = -(-batch // num_tc)        # ceil(batch / num_tc)
    per_core = -(-per_core // 8) * 8      # round up to sublane multiple
    return int(max(8, min(MAX_BLOCK_B, per_core)))


# --------------------------------------------------------------------------
# Jitted forward: a single pallas_call
# --------------------------------------------------------------------------
@functools.partial(jax.jit, static_argnames=("n_actions", "block_b"))
def dqn_forward(x, packed, n_actions, block_b):
    w1, b1, w2, b2, w3, b3, w4, b4 = packed
    B, obs_size = x.shape
    n_out_pad = w4.shape[1]
    h1, h2, h3 = w1.shape[1], w2.shape[1], w3.shape[1]

    # Grid-invariant index maps keep weights/biases resident in VMEM.
    full = lambda a: pl.BlockSpec(a.shape, lambda i: (0, 0))

    flops = 2 * B * (obs_size * h1 + h1 * h2 + h2 * h3 + h3 * n_out_pad)
    bytes_accessed = (x.size * x.dtype.itemsize
                      + sum(a.size * a.dtype.itemsize for a in packed)
                      + B * n_out_pad * 4)

    out = pl.pallas_call(
        dqn_kernel,
        out_shape=jax.ShapeDtypeStruct((B, n_out_pad), jnp.float32),
        grid=(pl.cdiv(B, block_b),),           # ragged last tile handled by Pallas
        in_specs=[
            pl.BlockSpec((block_b, obs_size), lambda i: (i, 0)),   # x tile
            full(w1), full(b1),
            full(w2), full(b2),
            full(w3), full(b3),
            full(w4), full(b4),
        ],
        out_specs=pl.BlockSpec((block_b, n_out_pad), lambda i: (i, 0)),
        compiler_params=pltpu.CompilerParams(
            dimension_semantics=("parallel",)),
        cost_estimate=pl.CostEstimate(flops=flops, transcendentals=0,
                                      bytes_accessed=bytes_accessed),
    )(x, w1, b1, w2, b2, w3, b3, w4, b4)

    return out[:, :n_actions]


# --------------------------------------------------------------------------
# Init + references
# --------------------------------------------------------------------------
def init_linear(key, fan_in, fan_out):
    """torch.nn.Linear default init, weight stored as (in, out) for x @ W."""
    kw, kb = jax.random.split(key)
    bound = 1.0 / jnp.sqrt(float(fan_in))
    w = jax.random.uniform(kw, (fan_in, fan_out), jnp.float32, -bound, bound)
    b = jax.random.uniform(kb, (fan_out,), jnp.float32, -bound, bound)
    return w, b


def dqn_reference_bf16(x, params):
    """Plain-JAX reference using the same bf16-input / f32-accumulate recipe."""
    (w1, b1), (w2, b2), (w3, b3), (w4, b4) = params
    h = x.astype(jnp.bfloat16)
    for w, b in ((w1, b1), (w2, b2), (w3, b3)):
        h = jnp.dot(h, w.astype(jnp.bfloat16),
                    preferred_element_type=jnp.float32) + b
        h = jnp.maximum(h, 0.0).astype(jnp.bfloat16)
    return jnp.dot(h, w4.astype(jnp.bfloat16),
                   preferred_element_type=jnp.float32) + b4


def dqn_reference_f32(x, params):
    """Full-precision reference of the PyTorch forward (sanity check only)."""
    (w1, b1), (w2, b2), (w3, b3), (w4, b4) = params
    h = jax.nn.relu(x @ w1 + b1)
    h = jax.nn.relu(h @ w2 + b2)
    h = jax.nn.relu(h @ w3 + b3)
    return h @ w4 + b4


if __name__ == "__main__":
    obs_size = 16
    n_actions = 4
    batch = 256

    key = jax.random.PRNGKey(0)
    k_x, k1, k2, k3, k4 = jax.random.split(key, 5)

    params = (
        init_linear(k1, obs_size, 512),
        init_linear(k2, 512, 256),
        init_linear(k3, 256, 128),
        init_linear(k4, 128, n_actions),
    )
    packed = pack_params(params)   # one-time: bf16 cast + lane padding

    x = jax.random.normal(k_x, (batch, obs_size), jnp.float32)

    block_b = choose_block_b(batch)        # 256 on v5e/v6e, 128 on v7x
    q = dqn_forward(x, packed, n_actions, block_b)
    q = jax.block_until_ready(q)
    assert q.shape == (batch, n_actions)

    q_ref_bf16 = dqn_reference_bf16(x, params)
    q_ref_f32 = dqn_reference_f32(x, params)
    assert jnp.allclose(q, q_ref_bf16, atol=2e-2, rtol=2e-2), \
        "mismatch vs bf16 reference"
    assert jnp.allclose(q, q_ref_f32, atol=1e-1, rtol=1e-1), \
        "mismatch vs f32 reference"

    # Ragged-batch path (no jnp.pad of x; last tile masked by Pallas).
    x_small = jax.random.normal(jax.random.PRNGKey(1), (50, obs_size),
                                jnp.float32)
    q_small = dqn_forward(x_small, packed, n_actions,
                          choose_block_b(x_small.shape[0]))
    q_small = jax.block_until_ready(q_small)
    assert q_small.shape == (50, n_actions)
    assert jnp.allclose(q_small, dqn_reference_bf16(x_small, params),
                        atol=2e-2, rtol=2e-2), "ragged-batch mismatch"

    # TODO(synk): backpropagate() (Adam + Huber loss training step) is host-side
    # training logic, not part of the forward kernel.

    print("KERNEL_OK")
</pallas_src>

<mosaic_0001>
module attributes {stable_mosaic.version = 11 : i64} {
  func.func @dqn_kernel(%arg0: i32, %arg1: memref<256x16xf32, #tpu.memory_space<vmem>>, %arg2: memref<16x512xbf16, #tpu.memory_space<vmem>>, %arg3: memref<1x512xf32, #tpu.memory_space<vmem>>, %arg4: memref<512x256xbf16, #tpu.memory_space<vmem>>, %arg5: memref<1x256xf32, #tpu.memory_space<vmem>>, %arg6: memref<256x128xbf16, #tpu.memory_space<vmem>>, %arg7: memref<1x128xf32, #tpu.memory_space<vmem>>, %arg8: memref<128x128xbf16, #tpu.memory_space<vmem>>, %arg9: memref<1x128xf32, #tpu.memory_space<vmem>>, %arg10: memref<256x128xf32, #tpu.memory_space<vmem>>) attributes {dimension_semantics = [#tpu.dimension_semantics<parallel>], iteration_bounds = array<i64: 1>, scalar_prefetch = 0 : i64, scratch_operands = 0 : i64, tpu.core_type = #tpu.core_type<tc>, window_params = [{transform_indices = @transform_0, window_bounds = array<i64: 256, 16>}, {pipeline_mode = #tpu.pipeline_mode<synchronous>, transform_indices = @transform_1, window_bounds = array<i64: 16, 512>}, {pipeline_mode = #tpu.pipeline_mode<synchronous>, transform_indices = @transform_2, window_bounds = array<i64: 1, 512>}, {pipeline_mode = #tpu.pipeline_mode<synchronous>, transform_indices = @transform_3, window_bounds = array<i64: 512, 256>}, {pipeline_mode = #tpu.pipeline_mode<synchronous>, transform_indices = @transform_4, window_bounds = array<i64: 1, 256>}, {pipeline_mode = #tpu.pipeline_mode<synchronous>, transform_indices = @transform_5, window_bounds = array<i64: 256, 128>}, {pipeline_mode = #tpu.pipeline_mode<synchronous>, transform_indices = @transform_6, window_bounds = array<i64: 1, 128>}, {pipeline_mode = #tpu.pipeline_mode<synchronous>, transform_indices = @transform_7, window_bounds = array<i64: 128, 128>}, {pipeline_mode = #tpu.pipeline_mode<synchronous>, transform_indices = @transform_8, window_bounds = array<i64: 1, 128>}, {transform_indices = @transform_9, window_bounds = array<i64: 256, 128>}]} {
    %c0 = arith.constant 0 : index
    %c0_0 = arith.constant 0 : index
    %0 = vector.load %arg1[%c0, %c0_0] : memref<256x16xf32, #tpu.memory_space<vmem>>, vector<256x16xf32>
    %1 = arith.truncf %0 : vector<256x16xf32> to vector<256x16xbf16>
    %c0_1 = arith.constant 0 : index
    %c0_2 = arith.constant 0 : index
    %2 = vector.load %arg2[%c0_1, %c0_2] : memref<16x512xbf16, #tpu.memory_space<vmem>>, vector<16x512xbf16>
    %cst = arith.constant dense<0.000000e+00> : vector<256x512xf32>
    %3 = tpu.matmul %1, %2, %cst {dimension_numbers = #tpu.dot_dimension_numbers<[1], [0], [0], [1], [0, 0, 1, 1], [], []>} : vector<256x16xbf16>, vector<16x512xbf16>, vector<256x512xf32> -> vector<256x512xf32>
    %c0_3 = arith.constant 0 : index
    %c0_4 = arith.constant 0 : index
    %4 = vector.load %arg3[%c0_3, %c0_4] : memref<1x512xf32, #tpu.memory_space<vmem>>, vector<1x512xf32>
    %5 = vector.broadcast %4 : vector<1x512xf32> to vector<256x512xf32>
    %6 = arith.addf %3, %5 : vector<256x512xf32>
    %cst_5 = arith.constant 0.000000e+00 : f32
    %7 = vector.broadcast %cst_5 : f32 to vector<256x512xf32>
    %8 = arith.maximumf %6, %7 : vector<256x512xf32>
    %9 = arith.truncf %8 : vector<256x512xf32> to vector<256x512xbf16>
    %c0_6 = arith.constant 0 : index
    %c0_7 = arith.constant 0 : index
    %10 = vector.load %arg4[%c0_6, %c0_7] : memref<512x256xbf16, #tpu.memory_space<vmem>>, vector<512x256xbf16>
    %cst_8 = arith.constant dense<0.000000e+00> : vector<256x256xf32>
    %11 = tpu.matmul %9, %10, %cst_8 {dimension_numbers = #tpu.dot_dimension_numbers<[1], [0], [0], [1], [0, 0, 1, 1], [], []>} : vector<256x512xbf16>, vector<512x256xbf16>, vector<256x256xf32> -> vector<256x256xf32>
    %c0_9 = arith.constant 0 : index
    %c0_10 = arith.constant 0 : index
    %12 = vector.load %arg5[%c0_9, %c0_10] : memref<1x256xf32, #tpu.memory_space<vmem>>, vector<1x256xf32>
    %13 = vector.broadcast %12 : vector<1x256xf32> to vector<256x256xf32>
    %14 = arith.addf %11, %13 : vector<256x256xf32>
    %cst_11 = arith.constant 0.000000e+00 : f32
    %15 = vector.broadcast %cst_11 : f32 to vector<256x256xf32>
    %16 = arith.maximumf %14, %15 : vector<256x256xf32>
    %17 = arith.truncf %16 : vector<256x256xf32> to vector<256x256xbf16>
    %c0_12 = arith.constant 0 : index
    %c0_13 = arith.constant 0 : index
    %18 = vector.load %arg6[%c0_12, %c0_13] : memref<256x128xbf16, #tpu.memory_space<vmem>>, vector<256x128xbf16>
    %cst_14 = arith.constant dense<0.000000e+00> : vector<256x128xf32>
    %19 = tpu.matmul %17, %18, %cst_14 {dimension_numbers = #tpu.dot_dimension_numbers<[1], [0], [0], [1], [0, 0, 1, 1], [], []>} : vector<256x256xbf16>, vector<256x128xbf16>, vector<256x128xf32> -> vector<256x128xf32>
    %c0_15 = arith.constant 0 : index
    %c0_16 = arith.constant 0 : index
    %20 = vector.load %arg7[%c0_15, %c0_16] : memref<1x128xf32, #tpu.memory_space<vmem>>, vector<1x128xf32>
    %21 = vector.broadcast %20 : vector<1x128xf32> to vector<256x128xf32>
    %22 = arith.addf %19, %21 : vector<256x128xf32>
    %cst_17 = arith.constant 0.000000e+00 : f32
    %23 = vector.broadcast %cst_17 : f32 to vector<256x128xf32>
    %24 = arith.maximumf %22, %23 : vector<256x128xf32>
    %25 = arith.truncf %24 : vector<256x128xf32> to vector<256x128xbf16>
    %c0_18 = arith.constant 0 : index
    %c0_19 = arith.constant 0 : index
    %26 = vector.load %arg8[%c0_18, %c0_19] : memref<128x128xbf16, #tpu.memory_space<vmem>>, vector<128x128xbf16>
    %cst_20 = arith.constant dense<0.000000e+00> : vector<256x128xf32>
    %27 = tpu.matmul %25, %26, %cst_20 {dimension_numbers = #tpu.dot_dimension_numbers<[1], [0], [0], [1], [0, 0, 1, 1], [], []>} : vector<256x128xbf16>, vector<128x128xbf16>, vector<256x128xf32> -> vector<256x128xf32>
    %c0_21 = arith.constant 0 : index
    %c0_22 = arith.constant 0 : index
    %28 = vector.load %arg9[%c0_21, %c0_22] : memref<1x128xf32, #tpu.memory_space<vmem>>, vector<1x128xf32>
    %29 = vector.broadcast %28 : vector<1x128xf32> to vector<256x128xf32>
    %30 = arith.addf %27, %29 : vector<256x128xf32>
    %c0_23 = arith.constant 0 : index
    %c0_24 = arith.constant 0 : index
    %31 = vector.load %arg10[%c0_23, %c0_24] : memref<256x128xf32, #tpu.memory_space<vmem>>, vector<256x128xf32>
    tpu.vector_store %arg10[%c0_23, %c0_24], %30 {strides = array<i32>} : memref<256x128xf32, #tpu.memory_space<vmem>>, vector<256x128xf32>,
    return
  }
  func.func @transform_0(%arg0: i32) -> (i32, i32) {
    %c0_i32 = arith.constant 0 : i32
    %c0_i32_0 = arith.constant 0 : i32
    return %arg0, %c0_i32 : i32, i32
  }
  func.func @transform_1(%arg0: i32) -> (i32, i32) {
    %c0_i32 = arith.constant 0 : i32
    %c0_i32_0 = arith.constant 0 : i32
    %c0_i32_1 = arith.constant 0 : i32
    return %c0_i32, %c0_i32_0 : i32, i32
  }
  func.func @transform_2(%arg0: i32) -> (i32, i32) {
    %c0_i32 = arith.constant 0 : i32
    %c0_i32_0 = arith.constant 0 : i32
    %c0_i32_1 = arith.constant 0 : i32
    return %c0_i32, %c0_i32_0 : i32, i32
  }
  func.func @transform_3(%arg0: i32) -> (i32, i32) {
    %c0_i32 = arith.constant 0 : i32
    %c0_i32_0 = arith.constant 0 : i32
    %c0_i32_1 = arith.constant 0 : i32
    return %c0_i32, %c0_i32_0 : i32, i32
  }
  func.func @transform_4(%arg0: i32) -> (i32, i32) {
    %c0_i32 = arith.constant 0 : i32
    %c0_i32_0 = arith.constant 0 : i32
    %c0_i32_1 = arith.constant 0 : i32
    return %c0_i32, %c0_i32_0 : i32, i32
  }
  func.func @transform_5(%arg0: i32) -> (i32, i32) {
    %c0_i32 = arith.constant 0 : i32
    %c0_i32_0 = arith.constant 0 : i32
    %c0_i32_1 = arith.constant 0 : i32
    return %c0_i32, %c0_i32_0 : i32, i32
  }
  func.func @transform_6(%arg0: i32) -> (i32, i32) {
    %c0_i32 = arith.constant 0 : i32
    %c0_i32_0 = arith.constant 0 : i32
    %c0_i32_1 = arith.constant 0 : i32
    return %c0_i32, %c0_i32_0 : i32, i32
  }
  func.func @transform_7(%arg0: i32) -> (i32, i32) {
    %c0_i32 = arith.constant 0 : i32
    %c0_i32_0 = arith.constant 0 : i32
    %c0_i32_1 = arith.constant 0 : i32
    return %c0_i32, %c0_i32_0 : i32, i32
  }
  func.func @transform_8(%arg0: i32) -> (i32, i32) {
    %c0_i32 = arith.constant 0 : i32
    %c0_i32_0 = arith.constant 0 : i32
    %c0_i32_1 = arith.constant 0 : i32
    return %c0_i32, %c0_i32_0 : i32, i32
  }
  func.func @transform_9(%arg0: i32) -> (i32, i32) {
    %c0_i32 = arith.constant 0 : i32
    %c0_i32_0 = arith.constant 0 : i32
    return %arg0, %c0_i32 : i32, i32
  }
}

</mosaic_0001>

<bundles_post_ra>
// kernel: dqn_forward.1
= control target key start
LH: loop header
LB: loop body
LE: loop exit
PB: predicated region body
PF: predicated region fallthrough
CT: control target
= control target key end

     0   :  { %14 = vsyncpa [#allocation3], 0  ;;  %s3037_s12 = smov [#allocation2]   ;;  %s3038_s14 = smov 128   ;;  %s4624_s0 = inlined_call_operand.vmem [shape: f32[256,16], index: 0, kind: input, shape index: {}]   ;;  %s4625_s1 = inlined_call_operand.vmem [shape: bf16[16,512], index: 1, kind: input, shape index: {}]   ;;  %s4626_s2 = inlined_call_operand.vmem [shape: f32[1,512], index: 2, kind: input, shape index: {}]   ;;  %s4627_s3 = inlined_call_operand.hbm [shape: bf16[512,256], index: 3, kind: input, shape index: {}]   ;;  %s4628_s4 = inlined_call_operand.vmem [shape: f32[1,256], index: 4, kind: input, shape index: {}]   ;;  %s4629_s5 = inlined_call_operand.vmem [shape: bf16[256,128], index: 5, kind: input, shape index: {}]   ;;  %s4630_s6 = inlined_call_operand.vmem [shape: f32[1,128], index: 6, kind: input, shape index: {}]   ;;  %s4631_s7 = inlined_call_operand.vmem [shape: bf16[128,128], index: 7, kind: input, shape index: {}]   ;;  %s4632_s8 = inlined_call_operand.vmem [shape: f32[1,128], index: 8, kind: input, shape index: {}]   ;;  %s4633_s9 = inlined_call_operand.vmem [shape: f32[256,128], index: 9, kind: output, shape index: {}]  }
   0x1   :  { %s25_s11 = sshll.u32 %s4627_s3, 4  ;;  %s27_s13 = sshll.u32 %s3037_s12, 4  ;;  %s26_s11 = int_to_ptr.hbm [resolvable:$true] %s25_s11  ;;  %s28_s13 = int_to_ptr.vmem [resolvable:$true] %s27_s13 }
   0x2   :  { %s3039_s15 = smov 8  }
   0x3   :  { %33 = dma.hbm_to_vmem [thread:$0]  %s26_s11, 8192, %s28_s13, [#allocation3], %s3038_s14, %s3038_s14, %s3039_s15  }
   0x4   :  { %3035 = dma.done.wait [#allocation3], 8192  }
   0x5   :  { %3036 = vsyncadd [#allocation3], 4294959104  ;;  %v2480_v0 = vld [vmem:[%s4625_s1] sm:$0xf]  ;;  %v2912_v1 = vld [vmem:[%s4625_s1 + $0xc] sm:$0xf0] }
   0x6   :  { %v2910_v2 = vld [vmem:[%s4625_s1 + $0x4] sm:$0xf]  ;;  %v2481_v3 = vor.u32 %v2912_v1, %v2480_v0  ;;  %v2482_v4 = vld [vmem:[%s4625_s1 + $0x10] sm:$0xf0]  ;;  %v2488_v5 = vld [vmem:[%s4625_s1 + $0x8] sm:$0xf] }
   0x7   :  { %v2913_v6 = vld [vmem:[%s4625_s1 + $0x14] sm:$0xf0]  ;;  %v2485_v7 = vor.u32 %v2910_v2, %v2482_v4  ;;  %v49_v9 = vld [vmem:[%s4624_s0] sm:$0xff]  ;;  %v50_v10 = vld [vmem:[%s4624_s0 + $0x8] sm:$0xff]  ;;  %vm131_vm0 = vcmask 130048  }
   0x8   :  { %v2489_v8 = vor.u32 %v2913_v6, %v2488_v5  ;;  %v73_v11 = vld [vmem:[%s4624_s0 + $0xc0] sm:$0xff]  ;;  %187 = vmatpush.bf16.msra.mxu0 %v2481_v3  ;;  %3002 = vmatpush.bf16.msra.mxu3 %v2481_v3  ;;  %v3120_v12 = vpack.c.bf16 %v50_v10, %v49_v9  ;;  %v74_v13 = vld [vmem:[%s4624_s0 + $0xc8] sm:$0xff]  ;;  %v51_v15 = vld [vmem:[%s4624_s0 + $0x10] sm:$0xff] }
   0x9   :  { %276 = vmatpush.bf16.msra.mxu1 %v2485_v7  ;;  %v3125_v14 = vpack.c.bf16 %v74_v13, %v73_v11  ;;  %v52_v16 = vld [vmem:[%s4624_s0 + $0x18] sm:$0xff]  ;;  %v75_v17 = vld [vmem:[%s4624_s0 + $0xd0] sm:$0xff]  ;;  %v53_v21 = vld [vmem:[%s4624_s0 + $0x20] sm:$0xff] }
   0xa   :  { %365 = vmatpush.bf16.msra.mxu2 %v2489_v8  ;;  %v76_v18 = vld [vmem:[%s4624_s0 + $0xd8] sm:$0xff]  ;;  %v3147_v19 = vpack.c.bf16 %v52_v16, %v51_v15  ;;  %v54_v22 = vld [vmem:[%s4624_s0 + $0x28] sm:$0xff]  ;;  %v77_v23 = vld [vmem:[%s4624_s0 + $0xe0] sm:$0xff] }
   0xb   :  { %2494 = vmatmul.msk.bf16.vlgmr.msra.gmra.mxu0 %vm131_vm0, %v3120_v12  ;;  %2506 = vmatmul.msk.bf16.vlgmr.msra.gmra.mxu3 %vm131_vm0, %v3125_v14  ;;  %v3149_v20 = vpack.c.bf16 %v76_v18, %v75_v17  ;;  %v78_v24 = vld [vmem:[%s4624_s0 + $0xe8] sm:$0xff]  ;;  %v3171_v25 = vpack.c.bf16 %v54_v22, %v53_v21  ;;  %v55_v27 = vld [vmem:[%s4624_s0 + $0x30] sm:$0xff]  ;;  %v56_v28 = vld [vmem:[%s4624_s0 + $0x38] sm:$0xff] }
   0xc   :  { %3003 = vmatpush.bf16.msrb.mxu3 %v2485_v7  ;;  %2510 = vmatmul.msk.bf16.vlgmr.msra.gmra.mxu1 %vm131_vm0, %v3120_v12  ;;  %v3173_v26 = vpack.c.bf16 %v78_v24, %v77_v23  ;;  %v79_v29 = vld [vmem:[%s4624_s0 + $0xf0] sm:$0xff]  ;;  %v80_v30 = vld [vmem:[%s4624_s0 + $0xf8] sm:$0xff]  ;;  %v3195_v31 = vpack.c.bf16 %v56_v28, %v55_v27  ;;  %v57_v33 = vld [vmem:[%s4624_s0 + $0x40] sm:$0xff] }
   0xd   :  { %2526 = vmatmul.msk.bf16.vlgmr.msra.gmra.mxu2 %vm131_vm0, %v3120_v12  ;;  %v3197_v32 = vpack.c.bf16 %v80_v30, %v79_v29  ;;  %v58_v34 = vld [vmem:[%s4624_s0 + $0x48] sm:$0xff]  ;;  %v59_v36 = vld [vmem:[%s4624_s0 + $0x50] sm:$0xff]  ;;  %v60_v37 = vld [vmem:[%s4624_s0 + $0x58] sm:$0xff] }
   0xe   :  { %v3213_v35 = vpack.c.bf16 %v58_v34, %v57_v33  ;;  %v3229_v38 = vpack.c.bf16 %v60_v37, %v59_v36  ;;  %v61_v39 = vld [vmem:[%s4624_s0 + $0x60] sm:$0xff]  ;;  %v62_v40 = vld [vmem:[%s4624_s0 + $0x68] sm:$0xff]  ;;  %v2490_v43 = vld [vmem:[%s4625_s1 + $0x18] sm:$0xf0] }
   0xf   :  { %v3245_v41 = vpack.c.bf16 %v62_v40, %v61_v39  ;;  %v2911_v42 = vld [vmem:[%s4625_s1 + $0xc] sm:$0xf]  ;;  %v63_v45 = vld [vmem:[%s4624_s0 + $0x70] sm:$0xff]  ;;  %v64_v46 = vld [vmem:[%s4624_s0 + $0x78] sm:$0xff] }
  0x10   :  { %3004 = vmatpush.bf16.msra.mxu3 %v2489_v8  ;;  %v2493_v44 = vor.u32 %v2911_v42, %v2490_v43  ;;  %v3267_v47 = vpack.c.bf16 %v64_v46, %v63_v45  ;;  %v2616_v48 = vld [vmem:[#allocation2 + $0x70] sm:$0xf]  ;;  %v2929_v49 = vld [vmem:[#allocation2 + $0x74] sm:$0xf0]  ;;  %v65_v54 = vld [vmem:[%s4624_s0 + $0x80] sm:$0xff] }
  0x11   :  { %v2680_v50 = vld [vmem:[#allocation2 + $0xf0] sm:$0xf]  ;;  %v2617_v51 = vor.u32 %v2929_v49, %v2616_v48  ;;  %v2945_v52 = vld [vmem:[#allocation2 + $0xf4] sm:$0xf0]  ;;  %v66_v55 = vld [vmem:[%s4624_s0 + $0x88] sm:$0xff] }
  0x12   :  { %v2681_v53 = vor.u32 %v2945_v52, %v2680_v50  ;;  %v3283_v56 = vpack.c.bf16 %v66_v55, %v65_v54  ;;  %v2744_v59 = vld [vmem:[#allocation2 + $0x170] sm:$0xf]  ;;  %v2961_v60 = vld [vmem:[#allocation2 + $0x174] sm:$0xf0]  ;;  %v3300_v62 = vld [vmem:[%s4626_s2] sm:$0xf] }
  0x13   :  { %1118 = vmatpush.bf16.msrb.mxu0 %v2617_v51  ;;  %v2745_v61 = vor.u32 %v2961_v60, %v2744_v59  ;;  %v2608_v0 = vld [vmem:[#allocation2 + $0x60] sm:$0xf]  ;;  %v2927_v1 = vld [vmem:[#allocation2 + $0x64] sm:$0xf0]  ;;  %v3307_v11 = vperm.slane %v3300_v62, 0  ;;  %v67_v17 = vld [vmem:[%s4624_s0 + $0x90] sm:$0xff] }
  0x14   :  { %1207 = vmatpush.bf16.msrb.mxu1 %v2681_v53  ;;  %v2672_v2 = vld [vmem:[#allocation2 + $0xe0] sm:$0xf]  ;;  %v2609_v4 = vor.u32 %v2927_v1, %v2608_v0  ;;  %v2943_v5 = vld [vmem:[#allocation2 + $0xe4] sm:$0xf0]  ;;  %v2600_v15 = vld [vmem:[#allocation2 + $0x50] sm:$0xf] }
  0x15   :  { %1296 = vmatpush.bf16.msrb.mxu2 %v2745_v61  ;;  %v2736_v6 = vld [vmem:[#allocation2 + $0x160] sm:$0xf]  ;;  %v2959_v7 = vld [vmem:[#allocation2 + $0x164] sm:$0xf0]  ;;  %v2673_v9 = vor.u32 %v2943_v5, %v2672_v2  ;;  %v2925_v16 = vld [vmem:[#allocation2 + $0x54] sm:$0xf0] }
  0x16   :  { %v2737_v10 = vor.u32 %v2959_v7, %v2736_v6  ;;  %v2601_v18 = vor.u32 %v2925_v16, %v2600_v15  ;;  %v2664_v21 = vld [vmem:[#allocation2 + $0xd0] sm:$0xf]  ;;  %v2941_v22 = vld [vmem:[#allocation2 + $0xd4] sm:$0xf0]  ;;  %v2592_v34 = vld [vmem:[#allocation2 + $0x40] sm:$0xf] }
  0x17   :  { %1119 = vmatpush.bf16.msrb.mxu0 %v2609_v4  ;;  %v68_v23 = vld [vmem:[%s4624_s0 + $0x98] sm:$0xff]  ;;  %v2665_v24 = vor.u32 %v2941_v22, %v2664_v21  ;;  %v2728_v27 = vld [vmem:[#allocation2 + $0x150] sm:$0xf]  ;;  %v2923_v36 = vld [vmem:[#allocation2 + $0x44] sm:$0xf0] }
  0x18   :  { %1208 = vmatpush.bf16.msrb.mxu1 %v2673_v9  ;;  %v2957_v28 = vld [vmem:[#allocation2 + $0x154] sm:$0xf0]  ;;  %v2656_v37 = vld [vmem:[#allocation2 + $0xc0] sm:$0xf]  ;;  %v3321_v42 = vpack.c.bf16 %v68_v23, %v67_v17  ;;  %v2593_v43 = vor.u32 %v2923_v36, %v2592_v34  ;;  %v2955_v46 = vld [vmem:[#allocation2 + $0x144] sm:$0xf0] }
  0x19   :  { %1297 = vmatpush.bf16.msrb.mxu2 %v2737_v10  ;;  %v2729_v30 = vor.u32 %v2957_v28, %v2728_v27  ;;  %v2720_v45 = vld [vmem:[#allocation2 + $0x140] sm:$0xf]  ;;  %v2584_v54 = vld [vmem:[#allocation2 + $0x30] sm:$0xf]  ;;  %v2921_v55 = vld [vmem:[#allocation2 + $0x34] sm:$0xf0] }
  0x1a   :  { %v2721_v53 = vor.u32 %v2955_v46, %v2720_v45  ;;  %v2585_v59 = vor.u32 %v2921_v55, %v2584_v54  ;;  %v2648_v60 = vld [vmem:[#allocation2 + $0xb0] sm:$0xf]  ;;  %v2937_v61 = vld [vmem:[#allocation2 + $0xb4] sm:$0xf0]  ;;  %v2576_v6 = vld [vmem:[#allocation2 + $0x20] sm:$0xf] }
  0x1b   :  { %2495 = vmatmul.msk.bf16.gmra.mxu0 %vm131_vm0, %v3147_v19  ;;  %2507 = vmatmul.msk.bf16.gmra.mxu3 %vm131_vm0, %v3149_v20  ;;  %v2649_v0 = vor.u32 %v2937_v61, %v2648_v60  ;;  %v2712_v1 = vld [vmem:[#allocation2 + $0x130] sm:$0xf]  ;;  %v2953_v2 = vld [vmem:[#allocation2 + $0x134] sm:$0xf0]  ;;  %v2919_v7 = vld [vmem:[#allocation2 + $0x24] sm:$0xf0] }
  0x1c   :  { %2511 = vmatmul.msk.bf16.gmra.mxu1 %vm131_vm0, %v3147_v19  ;;  %1120 = vmatpush.bf16.msrb.mxu0 %v2601_v18  ;;  %v2713_v4 = vor.u32 %v2953_v2, %v2712_v1  ;;  %v2640_v9 = vld [vmem:[#allocation2 + $0xa0] sm:$0xf]  ;;  %v2577_v15 = vor.u32 %v2919_v7, %v2576_v6  ;;  %v2935_v16 = vld [vmem:[#allocation2 + $0xa4] sm:$0xf0]  ;;  %v2568_v27 = vld [vmem:[#allocation2 + $0x10] sm:$0xf] }
  0x1d   :  { %2527 = vmatmul.msk.bf16.gmra.mxu2 %vm131_vm0, %v3147_v19  ;;  %1209 = vmatpush.bf16.msrb.mxu1 %v2665_v24  ;;  %v2704_v17 = vld [vmem:[#allocation2 + $0x120] sm:$0xf]  ;;  %v2951_v18 = vld [vmem:[#allocation2 + $0x124] sm:$0xf0]  ;;  %v2641_v22 = vor.u32 %v2935_v16, %v2640_v9  ;;  %v2917_v28 = vld [vmem:[#allocation2 + $0x14] sm:$0xf0] }
  0x1e   :  { %1298 = vmatpush.bf16.msrb.mxu2 %v2729_v30  ;;  %v2705_v24 = vor.u32 %v2951_v18, %v2704_v17  ;;  %v2569_v30 = vor.u32 %v2917_v28, %v2568_v27  ;;  %v2933_v34 = vld [vmem:[#allocation2 + $0x94] sm:$0xf0]  ;;  %v70_v36 = vld [vmem:[%s4624_s0 + $0xa8] sm:$0xff]  ;;  %v2688_v61 = vld [vmem:[#allocation2 + $0x100] sm:$0xf] }
  0x1f   :  { %v2931_v60 = vld [vmem:[#allocation2 + $0x84] sm:$0xf0]  ;;  %v2977_v16 = vld [vmem:[#allocation2 + $0x1f4] sm:$0xf0]  ;;  %v71_v28 = vld [vmem:[%s4624_s0 + $0xb0] sm:$0xff] }
  0x20   :  { %1121 = vmatpush.bf16.msrb.mxu0 %v2593_v43  ;;  %v2949_v43 = vld [vmem:[#allocation2 + $0x114] sm:$0xf0] }
  0x22   :  { %1299 = vmatpush.bf16.msrb.mxu2 %v2721_v53 }
  0x24   :  { %1122 = vmatpush.bf16.msrb.mxu0 %v2585_v59 }
  0x26   :  { %1300 = vmatpush.bf16.msrb.mxu2 %v2713_v4 }
  0x28   :  { %1123 = vmatpush.bf16.msrb.mxu0 %v2577_v15  ;;  %v2808_v15 = vld [vmem:[#allocation2 + $0x1f0] sm:$0xf] }
  0x29   :  { %v2809_v17 = vor.u32 %v2977_v16, %v2808_v15 }
  0x2a   :  { %1301 = vmatpush.bf16.msrb.mxu2 %v2705_v24 }
  0x2b   :  { %2496 = vmatmul.msk.bf16.gmra.mxu0 %vm131_vm0, %v3171_v25  ;;  %2508 = vmatmul.msk.bf16.gmra.mxu3 %vm131_vm0, %v3173_v26 }
  0x2c   :  { %2512 = vmatmul.msk.bf16.gmra.mxu1 %vm131_vm0, %v3171_v25  ;;  %1124 = vmatpush.bf16.msrb.mxu0 %v2569_v30 }
  0x2d   :  { %2528 = vmatmul.msk.bf16.gmra.mxu2 %vm131_vm0, %v3171_v25 }
  0x3b   :  { %2497 = vmatmul.msk.bf16.gmra.mxu0 %vm131_vm0, %v3195_v31  ;;  %2509 = vmatmul.msk.bf16.gmra.mxu3 %vm131_vm0, %v3197_v32 }
  0x3c   :  { %2513 = vmatmul.msk.bf16.gmra.mxu1 %vm131_vm0, %v3195_v31 }
  0x3d   :  { %2529 = vmatmul.msk.bf16.gmra.mxu2 %vm131_vm0, %v3195_v31 }
  0x4b   :  { %2498 = vmatmul.msk.bf16.gmra.mxu0 %vm131_vm0, %v3213_v35  ;;  %2522 = vmatmul.msk.bf16.vlgmr.msrb.gmra.mxu3 %vm131_vm0, %v3125_v14 }
  0x4c   :  { %2514 = vmatmul.msk.bf16.gmra.mxu1 %vm131_vm0, %v3213_v35  ;;  %454 = vmatpush.bf16.msrb.mxu3 %v2493_v44  ;;  %v2939_v44 = vld [vmem:[#allocation2 + $0xc4] sm:$0xf0] }
  0x4d   :  { %2530 = vmatmul.msk.bf16.gmra.mxu2 %vm131_vm0, %v3213_v35  ;;  %v2657_v49 = vor.u32 %v2939_v44, %v2656_v37 }
  0x4f   :  { %1210 = vmatpush.bf16.msrb.mxu1 %v2657_v49  ;;  %v2560_v49 = vld [vmem:[#allocation2] sm:$0xf] }
  0x53   :  { %1211 = vmatpush.bf16.msrb.mxu1 %v2649_v0  ;;  %v2947_v0 = vld [vmem:[#allocation2 + $0x104] sm:$0xf0] }
  0x54   :  { %v2689_v7 = vor.u32 %v2947_v0, %v2688_v61 }
  0x57   :  { %1212 = vmatpush.bf16.msrb.mxu1 %v2641_v22 }
  0x5b   :  { %2499 = vmatmul.msk.bf16.gmra.mxu0 %vm131_vm0, %v3229_v38  ;;  %2523 = vmatmul.msk.bf16.gmra.mxu3 %vm131_vm0, %v3149_v20 }
  0x5c   :  { %2515 = vmatmul.msk.bf16.gmra.mxu1 %vm131_vm0, %v3229_v38 }
  0x5d   :  { %2531 = vmatmul.msk.bf16.gmra.mxu2 %vm131_vm0, %v3229_v38 }
  0x6b   :  { %2500 = vmatmul.msk.bf16.gmra.mxu0 %vm131_vm0, %v3245_v41  ;;  %2524 = vmatmul.msk.bf16.gmra.mxu3 %vm131_vm0, %v3173_v26 }
  0x6c   :  { %2516 = vmatmul.msk.bf16.gmra.mxu1 %vm131_vm0, %v3245_v41 }
  0x6d   :  { %2532 = vmatmul.msk.bf16.gmra.mxu2 %vm131_vm0, %v3245_v41 }
  0x7b   :  { %2501 = vmatmul.msk.bf16.gmra.mxu0 %vm131_vm0, %v3267_v47  ;;  %2525 = vmatmul.msk.bf16.gmra.mxu3 %vm131_vm0, %v3197_v32 }
  0x7c   :  { %2517 = vmatmul.msk.bf16.gmra.mxu1 %vm131_vm0, %v3267_v47 }
  0x7d   :  { %2533 = vmatmul.msk.bf16.gmra.mxu2 %vm131_vm0, %v3267_v47 }
  0x88   :  { %v3285_v57 = vpop.f32.mrf.mxu0 }
  0x89   :  { %v3287_v58 = vpop.f32.mrf.mxu1 }
  0x8b   :  { %2502 = vmatmul.msk.bf16.gmra.mxu0 %vm131_vm0, %v3283_v56  ;;  %2538 = vmatmul.msk.bf16.vlgmr.msra.gmra.mxu3 %vm131_vm0, %v3125_v14 }
  0x8c   :  { %2518 = vmatmul.msk.bf16.gmra.mxu1 %vm131_vm0, %v3283_v56  ;;  %1385 = vmatpush.bf16.msra.mxu3 %v2809_v17 }
  0x8d   :  { %2534 = vmatmul.msk.bf16.gmra.mxu2 %vm131_vm0, %v3283_v56 }
  0x8e   :  { %v249_v63 = vpop.f32.mrf.mxu3 }
  0x8f   :  { %v250_v29 = vadd.f32 %v249_v63, %v3307_v11 }
  0x90   :  { %v3302_v3 = vpop.f32.mrf.mxu2  ;;  %v3304_v8 = vpop.f32.mrf.mxu0 }
  0x91   :  { %v3309_v13 = vpop.f32.mrf.mxu1  ;;  %v632_v50 = vmax.f32 %v250_v29, 0.0  ;;  %v69_v29 = vld [vmem:[%s4624_s0 + $0xa0] sm:$0xff] }
  0x92   :  { %v3353_v55 = vpack.c.bf16 %v70_v36, %v69_v29  ;;  %v72_v29 = vld [vmem:[%s4624_s0 + $0xb8] sm:$0xff] }
  0x96   :  { %v251_v33 = vpop.f32.mrf.mxu3 }
  0x97   :  { %v252_v39 = vadd.f32 %v251_v33, %v3307_v11  ;;  %v2632_v33 = vld [vmem:[#allocation2 + $0x90] sm:$0xf] }
  0x98   :  { %v3319_v40 = vpop.f32.mrf.mxu2  ;;  %v3323_v48 = vpop.f32.mrf.mxu0  ;;  %v2633_v37 = vor.u32 %v2933_v34, %v2632_v33 }
  0x99   :  { %v636_v51 = vmax.f32 %v252_v39, 0.0  ;;  %v3325_v52 = vpop.f32.mrf.mxu1  ;;  %v2696_v39 = vld [vmem:[#allocation2 + $0x110] sm:$0xf] }
  0x9a   :  { %v2697_v45 = vor.u32 %v2949_v43, %v2696_v39  ;;  %1213 = vmatpush.bf16.msrb.mxu1 %v2633_v37  ;;  %v3385_v37 = vpack.c.bf16 %v72_v29, %v71_v28 }
  0x9b   :  { %2503 = vmatmul.msk.bf16.gmra.mxu0 %vm131_vm0, %v3321_v42  ;;  %2539 = vmatmul.msk.bf16.gmra.mxu3 %vm131_vm0, %v3149_v20  ;;  %v3331_v63 = vpack.c.bf16 %v636_v51, %v632_v50  ;;  %v2915_v50 = vld [vmem:[#allocation2 + $0x4] sm:$0xf0]  ;;  %v2624_v51 = vld [vmem:[#allocation2 + $0x80] sm:$0xf] }
  0x9c   :  { %2519 = vmatmul.msk.bf16.gmra.mxu1 %vm131_vm0, %v3321_v42  ;;  %v2561_v59 = vor.u32 %v2915_v50, %v2560_v49  ;;  %v2625_v2 = vor.u32 %v2931_v60, %v2624_v51  ;;  %1302 = vmatpush.bf16.msrb.mxu2 %v2697_v45  ;;  %v3398_v49 = vperm.slane %v3300_v62, 1  ;;  %v3401_v50 = vperm.slane %v3300_v62, 2 }
  0x9d   :  { %2535 = vmatmul.msk.bf16.gmra.mxu2 %vm131_vm0, %v3321_v42 }
  0x9e   :  { %v254_v5 = vpop.f32.mrf.mxu3  ;;  %1125 = vmatpush.bf16.msrb.mxu0 %v2561_v59  ;;  %1214 = vmatpush.bf16.msrb.mxu1 %v2625_v2  ;;  %v192_v59 = vadd.f32 %v3304_v8, %v3307_v11  ;;  %v279_v61 = vadd.f32 %v3287_v58, %v3398_v49  ;;  %v368_v0 = vadd.f32 %v3302_v3, %v3401_v50 }
  0x9f   :  { %v255_v44 = vadd.f32 %v254_v5, %v3307_v11  ;;  %v281_v2 = vadd.f32 %v3309_v13, %v3398_v49 }
  0xa0   :  { %v3337_v10 = vpop.f32.mrf.mxu2  ;;  %v3339_v21 = vpop.f32.mrf.mxu0  ;;  %1303 = vmatpush.bf16.msrb.mxu2 %v2689_v7  ;;  %v540_v8 = vmax.f32 %v192_v59, 0.0  ;;  %v537_v15 = vmax.f32 %v279_v61, 0.0  ;;  %v538_v16 = vmax.f32 %v368_v0, 0.0  ;;  %v2975_v59 = vld [vmem:[#allocation2 + $0x1e4] sm:$0xf0] }
  0xa1   :  { %v3341_v23 = vpop.f32.mrf.mxu1  ;;  %v640_v4 = vmax.f32 %v255_v44, 0.0  ;;  %v541_v17 = vmax.f32 %v281_v2, 0.0  ;;  %v195_v2 = vadd.f32 %v3323_v48, %v3307_v11 }
  0xa6   :  { %v256_v46 = vpop.f32.mrf.mxu3 }
  0xa7   :  { %v257_v53 = vadd.f32 %v256_v46, %v3307_v11 }
  0xa8   :  { %v3351_v54 = vpop.f32.mrf.mxu2  ;;  %v3355_v1 = vpop.f32.mrf.mxu0 }
  0xa9   :  { %v644_v5 = vmax.f32 %v257_v53, 0.0  ;;  %v3357_v6 = vpop.f32.mrf.mxu1  ;;  %v190_v53 = vadd.f32 %v3285_v57, %v3307_v11 }
  0xab   :  { %2504 = vmatmul.msk.bf16.gmra.mxu0 %vm131_vm0, %v3353_v55  ;;  %2540 = vmatmul.msk.bf16.gmra.mxu3 %vm131_vm0, %v3173_v26  ;;  %v3363_v9 = vpack.c.bf16 %v644_v5, %v640_v4  ;;  %v370_v4 = vadd.f32 %v3319_v40, %v3401_v50  ;;  %v536_v7 = vmax.f32 %v190_v53, 0.0  ;;  %v3431_v40 = vpack.c.bf16 %v541_v17, %v537_v15  ;;  %v2800_v53 = vld [vmem:[#allocation2 + $0x1e0] sm:$0xf] }
  0xac   :  { %2520 = vmatmul.msk.bf16.gmra.mxu1 %vm131_vm0, %v3353_v55  ;;  %v2801_v61 = vor.u32 %v2975_v59, %v2800_v53  ;;  %v286_v15 = vadd.f32 %v3341_v23, %v3398_v49 }
  0xad   :  { %2536 = vmatmul.msk.bf16.gmra.mxu2 %vm131_vm0, %v3353_v55  ;;  %v3426_v3 = vpack.c.bf16 %v540_v8, %v536_v7  ;;  %v373_v8 = vadd.f32 %v3337_v10, %v3401_v50 }
  0xae   :  { %v259_v18 = vpop.f32.mrf.mxu3  ;;  %1386 = vmatpush.bf16.msra.mxu3 %v2801_v61 }
  0xaf   :  { %v260_v30 = vadd.f32 %v259_v18, %v3307_v11  ;;  %v542_v18 = vmax.f32 %v370_v4, 0.0  ;;  %v197_v4 = vadd.f32 %v3339_v21, %v3307_v11  ;;  %v544_v21 = vmax.f32 %v195_v2, 0.0 }
  0xb0   :  { %v3369_v22 = vpop.f32.mrf.mxu2  ;;  %v3371_v24 = vpop.f32.mrf.mxu0 }
  0xb1   :  { %v3373_v27 = vpop.f32.mrf.mxu1  ;;  %v648_v43 = vmax.f32 %v260_v30, 0.0  ;;  %v3433_v30 = vpack.c.bf16 %v542_v18, %v538_v16  ;;  %v375_v16 = vadd.f32 %v3351_v54, %v3401_v50  ;;  %v548_v18 = vmax.f32 %v197_v4, 0.0 }
  0xb3   :  { %4667 = vst [vmem:[#allocation5_spill] sm:$0xff] %v3433_v30  ;;  %v3468_v23 = vpack.c.bf16 %v548_v18, %v544_v21  ;;  %v378_v18 = vadd.f32 %v3369_v22, %v3401_v50 }
  0xb5   :  { %4668 = vst [vmem:[#allocation6_spill] sm:$0xff] %v3468_v23 }
  0xb6   :  { %v261_v33 = vpop.f32.mrf.mxu3 }
  0xb7   :  { %v262_v34 = vadd.f32 %v261_v33, %v3307_v11 }
  0xb8   :  { %v3383_v36 = vpop.f32.mrf.mxu2  ;;  %v3387_v39 = vpop.f32.mrf.mxu0 }
  0xb9   :  { %v652_v44 = vmax.f32 %v262_v34, 0.0  ;;  %v3389_v45 = vpop.f32.mrf.mxu1 }
  0xbb   :  { %2505 = vmatmul.msk.bf16.gmra.mxu0 %vm131_vm0, %v3385_v37  ;;  %2541 = vmatmul.msk.bf16.gmra.mxu3 %vm131_vm0, %v3197_v32  ;;  %v3395_v46 = vpack.c.bf16 %v652_v44, %v648_v43 }
  0xbc   :  { %2521 = vmatmul.msk.bf16.gmra.mxu1 %vm131_vm0, %v3385_v37 }
  0xbd   :  { %2537 = vmatmul.msk.bf16.gmra.mxu2 %vm131_vm0, %v3385_v37 }
  0xbe   :  { %v264_v51 = vpop.f32.mrf.mxu3 }
  0xbf   :  { %v265_v58 = vadd.f32 %v264_v51, %v3307_v11 }
  0xc0   :  { %v3411_v60 = vpop.f32.mrf.mxu2  ;;  %v3421_v5 = vpop.f32.mrf.mxu0 }
  0xc1   :  { %v3423_v57 = vpop.f32.mrf.mxu1  ;;  %v656_v34 = vmax.f32 %v265_v58, 0.0 }
  0xc6   :  { %v266_v28 = vpop.f32.mrf.mxu3 }
  0xc7   :  { %v267_v13 = vadd.f32 %v266_v28, %v3307_v11  ;;  %v546_v28 = vmax.f32 %v373_v8, 0.0 }
  0xc8   :  { %v3429_v29 = vpop.f32.mrf.mxu2  ;;  %v3435_v33 = vpop.f32.mrf.mxu0 }
  0xc9   :  { %v660_v43 = vmax.f32 %v267_v13, 0.0  ;;  %v3437_v44 = vpop.f32.mrf.mxu1  ;;  %v549_v13 = vmax.f32 %v286_v15, 0.0  ;;  %v200_v15 = vadd.f32 %v3355_v1, %v3307_v11 }
  0xcb   :  { %2542 = vmatmul.msk.bf16.vlgmr.msrb.gmra.mxu3 %vm131_vm0, %v3120_v12  ;;  %1126 = vmatmul.bf16.vlgmr.msrb.gmra.mxu0 %v3426_v3  ;;  %v3442_v51 = vpack.c.bf16 %v660_v43, %v656_v34  ;;  %v284_v12 = vadd.f32 %v3325_v52, %v3398_v49  ;;  %v550_v34 = vmax.f32 %v375_v16, 0.0  ;;  %v202_v16 = vadd.f32 %v3371_v24, %v3307_v11 }
  0xcc   :  { %1215 = vmatmul.bf16.vlgmr.msrb.gmra.mxu1 %v3431_v40 }
  0xcd   :  { %1304 = vmatmul.bf16.vlgmr.msrb.gmra.mxu2 %v3433_v30  ;;  %v545_v58 = vmax.f32 %v284_v12, 0.0  ;;  %v3474_v61 = vpack.c.bf16 %v550_v34, %v546_v28  ;;  %v380_v28 = vadd.f32 %v3383_v36, %v3401_v50  ;;  %v552_v34 = vmax.f32 %v200_v15, 0.0 }
  0xce   :  { %v338_v0 = vpop.f32.mrf.mxu3  ;;  %v556_v24 = vmax.f32 %v202_v16, 0.0 }
  0xcf   :  { %v339_v52 = vadd.f32 %v338_v0, %v3398_v49  ;;  %v3472_v59 = vpack.c.bf16 %v549_v13, %v545_v58  ;;  %4670 = vst [vmem:[#allocation8_spill] sm:$0xff] %v3474_v61  ;;  %v291_v58 = vadd.f32 %v3373_v27, %v3398_v49 }
  0xd0   :  { %v3450_v7 = vpop.f32.mrf.mxu2  ;;  %v3460_v17 = vpop.f32.mrf.mxu0  ;;  %v3507_v27 = vpack.c.bf16 %v556_v24, %v552_v34  ;;  %v205_v24 = vadd.f32 %v3387_v39, %v3307_v11 }
  0xd1   :  { %v3462_v48 = vpop.f32.mrf.mxu1  ;;  %4669 = vst [vmem:[#allocation7_spill] sm:$0xff] %v3472_v59  ;;  %v633_v2 = vmax.f32 %v339_v52, 0.0 }
  0xd2   :  { %4671 = vst [vmem:[#allocation9_spill] sm:$0xff] %v3507_v27 }
  0xd6   :  { %v340_v43 = vpop.f32.mrf.mxu3 }
  0xd7   :  { %v341_v10 = vadd.f32 %v340_v43, %v3398_v49  ;;  %v554_v43 = vmax.f32 %v378_v18, 0.0  ;;  %v2792_v18 = vld [vmem:[#allocation2 + $0x1d0] sm:$0xf] }
  0xd8   :  { %v3466_v53 = vpop.f32.mrf.mxu2  ;;  %v3470_v54 = vpop.f32.mrf.mxu0 }
  0xd9   :  { %v637_v4 = vmax.f32 %v341_v10, 0.0  ;;  %v3476_v12 = vpop.f32.mrf.mxu1  ;;  %v557_v10 = vmax.f32 %v291_v58, 0.0  ;;  %v2973_v58 = vld [vmem:[#allocation2 + $0x1d4] sm:$0xf0] }
  0xdb   :  { %2543 = vmatmul.msk.bf16.gmra.mxu3 %vm131_vm0, %v3147_v19  ;;  %1131 = vmatmul.bf16.gmra.mxu0 %v3468_v23  ;;  %v3481_v0 = vpack.c.bf16 %v637_v4, %v633_v2  ;;  %v289_v19 = vadd.f32 %v3357_v6, %v3398_v49  ;;  %v558_v2 = vmax.f32 %v380_v28, 0.0  ;;  %v2793_v28 = vor.u32 %v2973_v58, %v2792_v18 }
  0xdc   :  { %1220 = vmatmul.bf16.gmra.mxu1 %v3472_v59 }
  0xdd   :  { %1309 = vmatmul.bf16.gmra.mxu2 %v3474_v61  ;;  %v553_v52 = vmax.f32 %v289_v19, 0.0  ;;  %v3513_v23 = vpack.c.bf16 %v558_v2, %v554_v43  ;;  %1387 = vmatpush.bf16.msra.mxu3 %v2793_v28  ;;  %v296_v2 = vadd.f32 %v3423_v57, %v3398_v49 }
  0xde   :  { %v343_v8 = vpop.f32.mrf.mxu3 }
  0xdf   :  { %v344_v6 = vadd.f32 %v343_v8, %v3398_v49  ;;  %v3511_v59 = vpack.c.bf16 %v557_v10, %v553_v52  ;;  %4673 = vst [vmem:[#allocation11_spill] sm:$0xff] %v3513_v23  ;;  %v207_v52 = vadd.f32 %v3421_v5, %v3307_v11  ;;  %v383_v10 = vadd.f32 %v3411_v60, %v3401_v50 }
  0xe0   :  { %v3489_v21 = vpop.f32.mrf.mxu2  ;;  %v3499_v13 = vpop.f32.mrf.mxu0  ;;  %v560_v5 = vmax.f32 %v205_v24, 0.0  ;;  %v565_v18 = vmax.f32 %v296_v2, 0.0  ;;  %v210_v2 = vadd.f32 %v3435_v33, %v3307_v11 }
  0xe1   :  { %v3501_v1 = vpop.f32.mrf.mxu1  ;;  %4672 = vst [vmem:[#allocation10_spill] sm:$0xff] %v3511_v59  ;;  %v641_v15 = vmax.f32 %v344_v6, 0.0  ;;  %v385_v6 = vadd.f32 %v3429_v29, %v3401_v50 }
  0xe3   :  { %v566_v58 = vmax.f32 %v385_v6, 0.0  ;;  %v212_v6 = vadd.f32 %v3460_v17, %v3307_v11 }
  0xe5   :  { %v572_v17 = vmax.f32 %v212_v6, 0.0 }
  0xe6   :  { %v345_v4 = vpop.f32.mrf.mxu3 }
  0xe7   :  { %v346_v22 = vadd.f32 %v345_v4, %v3398_v49 }
  0xe8   :  { %v3505_v61 = vpop.f32.mrf.mxu2  ;;  %v3509_v36 = vpop.f32.mrf.mxu0 }
  0xe9   :  { %v645_v16 = vmax.f32 %v346_v22, 0.0  ;;  %v3515_v19 = vpop.f32.mrf.mxu1  ;;  %v564_v22 = vmax.f32 %v207_v52, 0.0 }
  0xeb   :  { %2544 = vmatmul.msk.bf16.gmra.mxu3 %vm131_vm0, %v3171_v25  ;;  %1136 = vmatmul.bf16.gmra.mxu0 %v3507_v27  ;;  %v3520_v8 = vpack.c.bf16 %v645_v16, %v641_v15  ;;  %v294_v25 = vadd.f32 %v3389_v45, %v3398_v49  ;;  %v562_v16 = vmax.f32 %v383_v10, 0.0  ;;  %v3546_v57 = vpack.c.bf16 %v564_v22, %v560_v5 }
  0xec   :  { %1225 = vmatmul.bf16.gmra.mxu1 %v3511_v59  ;;  %v388_v22 = vadd.f32 %v3450_v7, %v3401_v50 }
  0xed   :  { %4674 = vst [vmem:[#allocation12_spill] sm:$0xff] %v3520_v8  ;;  %1314 = vmatmul.bf16.gmra.mxu2 %v3513_v23  ;;  %v561_v15 = vmax.f32 %v294_v25, 0.0  ;;  %v3552_v27 = vpack.c.bf16 %v566_v58, %v562_v16  ;;  %v390_v16 = vadd.f32 %v3466_v53, %v3401_v50  ;;  %v568_v58 = vmax.f32 %v210_v2, 0.0 }
  0xee   :  { %v348_v34 = vpop.f32.mrf.mxu3  ;;  %4675 = vst [vmem:[#allocation13_spill] sm:$0xff] %v3546_v57 }
  0xef   :  { %v349_v45 = vadd.f32 %v348_v34, %v3398_v49  ;;  %v3550_v59 = vpack.c.bf16 %v565_v18, %v561_v15  ;;  %4677 = vst [vmem:[#allocation15_spill] sm:$0xff] %v3552_v27  ;;  %v301_v15 = vadd.f32 %v3462_v48, %v3398_v49  ;;  %v3585_v48 = vpack.c.bf16 %v572_v17, %v568_v58 }
  0xf0   :  { %v3528_v43 = vpop.f32.mrf.mxu2  ;;  %v3538_v4 = vpop.f32.mrf.mxu0  ;;  %v215_v17 = vadd.f32 %v3470_v54, %v3307_v11 }
  0xf1   :  { %v3540_v39 = vpop.f32.mrf.mxu1  ;;  %4676 = vst [vmem:[#allocation14_spill] sm:$0xff] %v3550_v59  ;;  %v649_v24 = vmax.f32 %v349_v45, 0.0 }
  0xf2   :  { %4678 = vst [vmem:[#allocation16_spill] sm:$0xff] %v3585_v48 }
  0xf6   :  { %v350_v28 = vpop.f32.mrf.mxu3 }
  0xf7   :  { %v351_v60 = vadd.f32 %v350_v28, %v3398_v49  ;;  %v570_v28 = vmax.f32 %v388_v22, 0.0  ;;  %v2784_v22 = vld [vmem:[#allocation2 + $0x1c0] sm:$0xf] }
  0xf8   :  { %v3544_v23 = vpop.f32.mrf.mxu2  ;;  %v3548_v29 = vpop.f32.mrf.mxu0 }
  0xf9   :  { %v653_v52 = vmax.f32 %v351_v60, 0.0  ;;  %v3554_v25 = vpop.f32.mrf.mxu1  ;;  %v573_v60 = vmax.f32 %v301_v15, 0.0  ;;  %v2971_v15 = vld [vmem:[#allocation2 + $0x1c4] sm:$0xf0] }
  0xfb   :  { %2545 = vmatmul.msk.bf16.gmra.mxu3 %vm131_vm0, %v3195_v31  ;;  %1141 = vmatmul.bf16.gmra.mxu0 %v3546_v57  ;;  %v3559_v34 = vpack.c.bf16 %v653_v52, %v649_v24  ;;  %v299_v31 = vadd.f32 %v3437_v44, %v3398_v49  ;;  %v574_v24 = vmax.f32 %v390_v16, 0.0  ;;  %v2785_v16 = vor.u32 %v2971_v15, %v2784_v22 }
  0xfc   :  { %1230 = vmatmul.bf16.gmra.mxu1 %v3550_v59 }
  0xfd   :  { %1319 = vmatmul.bf16.gmra.mxu2 %v3552_v27  ;;  %v569_v45 = vmax.f32 %v299_v31, 0.0  ;;  %v3591_v57 = vpack.c.bf16 %v574_v24, %v570_v28  ;;  %1388 = vmatpush.bf16.msra.mxu3 %v2785_v16  ;;  %v306_v24 = vadd.f32 %v3501_v1, %v3398_v49 }
  0xfe   :  { %v353_v10 = vpop.f32.mrf.mxu3 }
  0xff   :  { %v354_v44 = vadd.f32 %v353_v10, %v3398_v49  ;;  %v3589_v59 = vpack.c.bf16 %v573_v60, %v569_v45  ;;  %4680 = vst [vmem:[#allocation18_spill] sm:$0xff] %v3591_v57  ;;  %v217_v45 = vadd.f32 %v3499_v13, %v3307_v11  ;;  %v393_v60 = vadd.f32 %v3489_v21, %v3401_v50 }
 0x100   :  { %v3567_v5 = vpop.f32.mrf.mxu2  ;;  %v3577_v18 = vpop.f32.mrf.mxu0  ;;  %v576_v13 = vmax.f32 %v215_v17, 0.0  ;;  %v581_v22 = vmax.f32 %v306_v24, 0.0  ;;  %v220_v24 = vadd.f32 %v3509_v36, %v3307_v11 }
 0x101   :  { %v3579_v33 = vpop.f32.mrf.mxu1  ;;  %4679 = vst [vmem:[#allocation17_spill] sm:$0xff] %v3589_v59  ;;  %v657_v2 = vmax.f32 %v354_v44, 0.0  ;;  %v395_v44 = vadd.f32 %v3505_v61, %v3401_v50 }
 0x103   :  { %v582_v15 = vmax.f32 %v395_v44, 0.0  ;;  %v222_v44 = vadd.f32 %v3538_v4, %v3307_v11 }
 0x105   :  { %v588_v4 = vmax.f32 %v222_v44, 0.0 }
 0x106   :  { %v355_v52 = vpop.f32.mrf.mxu3 }
 0x107   :  { %v356_v7 = vadd.f32 %v355_v52, %v3398_v49 }
 0x108   :  { %v3583_v27 = vpop.f32.mrf.mxu2  ;;  %v3587_v53 = vpop.f32.mrf.mxu0 }
 0x109   :  { %v661_v6 = vmax.f32 %v356_v7, 0.0  ;;  %v3593_v31 = vpop.f32.mrf.mxu1  ;;  %v580_v7 = vmax.f32 %v217_v45, 0.0 }
 0x10b   :  { %2546 = vmatmul.msk.bf16.gmra.mxu3 %vm131_vm0, %v3213_v35  ;;  %1146 = vmatmul.bf16.gmra.mxu0 %v3585_v48  ;;  %v3598_v10 = vpack.c.bf16 %v661_v6, %v657_v2  ;;  %v304_v35 = vadd.f32 %v3476_v12, %v3398_v49  ;;  %v578_v6 = vmax.f32 %v393_v60, 0.0 }
 0x10c   :  { %1235 = vmatmul.bf16.gmra.mxu1 %v3589_v59 }
 0x10d   :  { %1324 = vmatmul.bf16.gmra.mxu2 %v3591_v57  ;;  %v577_v2 = vmax.f32 %v304_v35, 0.0  ;;  %v3624_v57 = vpack.c.bf16 %v580_v7, %v576_v13  ;;  %v3630_v48 = vpack.c.bf16 %v582_v15, %v578_v6  ;;  %v398_v7 = vadd.f32 %v3528_v43, %v3401_v50 }
 0x10e   :  { %v427_v58 = vpop.f32.mrf.mxu3  ;;  %v400_v6 = vadd.f32 %v3544_v23, %v3401_v50  ;;  %v584_v15 = vmax.f32 %v220_v24, 0.0 }
 0x10f   :  { %v428_v12 = vadd.f32 %v427_v58, %v3401_v50  ;;  %4681 = vst [vmem:[#allocation19_spill] sm:$0xff] %v3624_v57  ;;  %v3628_v59 = vpack.c.bf16 %v581_v22, %v577_v2  ;;  %v311_v2 = vadd.f32 %v3540_v39, %v3398_v49 }
 0x110   :  { %v3606_v28 = vpop.f32.mrf.mxu2  ;;  %v3616_v52 = vpop.f32.mrf.mxu0  ;;  %4683 = vst [vmem:[#allocation21_spill] sm:$0xff] %v3630_v48 }
 0x111   :  { %v3618_v54 = vpop.f32.mrf.mxu1  ;;  %4682 = vst [vmem:[#allocation20_spill] sm:$0xff] %v3628_v59  ;;  %v634_v17 = vmax.f32 %v428_v12, 0.0 }
 0x116   :  { %v429_v16 = vpop.f32.mrf.mxu3 }
 0x117   :  { %v430_v1 = vadd.f32 %v429_v16, %v3401_v50  ;;  %v586_v16 = vmax.f32 %v398_v7, 0.0  ;;  %v2776_v7 = vld [vmem:[#allocation2 + $0x1b0] sm:$0xf] }
 0x118   :  { %v3621_v21 = vpop.f32.mrf.mxu2  ;;  %v3626_v61 = vpop.f32.mrf.mxu0 }
 0x119   :  { %v638_v45 = vmax.f32 %v430_v1, 0.0  ;;  %v3632_v35 = vpop.f32.mrf.mxu1  ;;  %v589_v1 = vmax.f32 %v311_v2, 0.0  ;;  %v2969_v2 = vld [vmem:[#allocation2 + $0x1b4] sm:$0xf0] }
 0x11b   :  { %2547 = vmatmul.msk.bf16.gmra.mxu3 %vm131_vm0, %v3229_v38  ;;  %1151 = vmatmul.bf16.gmra.mxu0 %v3624_v57  ;;  %v3637_v58 = vpack.c.bf16 %v638_v45, %v634_v17  ;;  %v309_v38 = vadd.f32 %v3515_v19, %v3398_v49  ;;  %v590_v17 = vmax.f32 %v400_v6, 0.0  ;;  %v2777_v6 = vor.u32 %v2969_v2, %v2776_v7 }
 0x11c   :  { %1240 = vmatmul.bf16.gmra.mxu1 %v3628_v59 }
 0x11d   :  { %1329 = vmatmul.bf16.gmra.mxu2 %v3630_v48  ;;  %v585_v12 = vmax.f32 %v309_v38, 0.0  ;;  %v3663_v48 = vpack.c.bf16 %v588_v4, %v584_v15  ;;  %v3669_v57 = vpack.c.bf16 %v590_v17, %v586_v16  ;;  %v225_v4 = vadd.f32 %v3548_v29, %v3307_v11  ;;  %1389 = vmatpush.bf16.msra.mxu3 %v2777_v6 }
 0x11e   :  { %v432_v60 = vpop.f32.mrf.mxu3  ;;  %v316_v17 = vadd.f32 %v3579_v33, %v3398_v49 }
 0x11f   :  { %v433_v19 = vadd.f32 %v432_v60, %v3401_v50  ;;  %4684 = vst [vmem:[#allocation22_spill] sm:$0xff] %v3663_v48  ;;  %v3667_v59 = vpack.c.bf16 %v589_v1, %v585_v12  ;;  %v227_v12 = vadd.f32 %v3577_v18, %v3307_v11  ;;  %v403_v1 = vadd.f32 %v3567_v5, %v3401_v50 }
 0x120   :  { %v3645_v13 = vpop.f32.mrf.mxu2  ;;  %v3655_v22 = vpop.f32.mrf.mxu0  ;;  %4686 = vst [vmem:[#allocation24_spill] sm:$0xff] %v3669_v57  ;;  %v592_v18 = vmax.f32 %v225_v4, 0.0  ;;  %v597_v7 = vmax.f32 %v316_v17, 0.0  ;;  %v2618_v17 = vld [vmem:[#allocation2 + $0x78] sm:$0xf0] }
 0x121   :  { %v3657_v36 = vpop.f32.mrf.mxu1  ;;  %4685 = vst [vmem:[#allocation23_spill] sm:$0xff] %v3667_v59  ;;  %v642_v24 = vmax.f32 %v433_v19, 0.0  ;;  %v405_v19 = vadd.f32 %v3583_v27, %v3401_v50 }
 0x123   :  { %v598_v2 = vmax.f32 %v405_v19, 0.0 }
 0x126   :  { %v434_v45 = vpop.f32.mrf.mxu3 }
 0x127   :  { %v435_v39 = vadd.f32 %v434_v45, %v3401_v50 }
 0x128   :  { %v3660_v43 = vpop.f32.mrf.mxu2  ;;  %v3665_v23 = vpop.f32.mrf.mxu0 }
 0x129   :  { %v646_v44 = vmax.f32 %v435_v39, 0.0  ;;  %v3671_v38 = vpop.f32.mrf.mxu1  ;;  %v596_v39 = vmax.f32 %v227_v12, 0.0 }
 0x12b   :  { %2548 = vmatmul.msk.bf16.gmra.mxu3 %vm131_vm0, %v3245_v41  ;;  %1156 = vmatmul.bf16.gmra.mxu0 %v3663_v48  ;;  %v3676_v60 = vpack.c.bf16 %v646_v44, %v642_v24  ;;  %v314_v41 = vadd.f32 %v3554_v25, %v3398_v49  ;;  %v594_v44 = vmax.f32 %v403_v1, 0.0  ;;  %v2928_v1 = vld [vmem:[#allocation2 + $0x74] sm:$0xf] }
 0x12c   :  { %1245 = vmatmul.bf16.gmra.mxu1 %v3667_v59  ;;  %v2621_v19 = vor.u32 %v2928_v1, %v2618_v17 }
 0x12d   :  { %4687 = vst [vmem:[#allocation25_spill] sm:$0xff] %v3676_v60  ;;  %1334 = vmatmul.bf16.gmra.mxu2 %v3669_v57  ;;  %v593_v24 = vmax.f32 %v314_v41, 0.0  ;;  %v3702_v57 = vpack.c.bf16 %v596_v39, %v592_v18  ;;  %v3708_v48 = vpack.c.bf16 %v598_v2, %v594_v44  ;;  %v2944_v18 = vld [vmem:[#allocation2 + $0xf4] sm:$0xf]  ;;  %v2682_v39 = vld [vmem:[#allocation2 + $0xf8] sm:$0xf0] }
 0x12e   :  { %v437_v15 = vpop.f32.mrf.mxu3  ;;  %v2685_v44 = vor.u32 %v2944_v18, %v2682_v39  ;;  %1474 = vmatpush.bf16.msra.mxu0 %v2621_v19 }
 0x12f   :  { %v438_v25 = vadd.f32 %v437_v15, %v3401_v50  ;;  %4688 = vst [vmem:[#allocation26_spill] sm:$0xff] %v3702_v57  ;;  %v3706_v59 = vpack.c.bf16 %v597_v7, %v593_v24  ;;  %v230_v7 = vadd.f32 %v3587_v53, %v3307_v11 }
 0x130   :  { %v3684_v16 = vpop.f32.mrf.mxu2  ;;  %v3694_v45 = vpop.f32.mrf.mxu0  ;;  %4690 = vst [vmem:[#allocation28_spill] sm:$0xff] %v3708_v48  ;;  %1563 = vmatpush.bf16.msra.mxu1 %v2685_v44 }
 0x131   :  { %v3696_v29 = vpop.f32.mrf.mxu1  ;;  %4689 = vst [vmem:[#allocation27_spill] sm:$0xff] %v3706_v59  ;;  %v650_v4 = vmax.f32 %v438_v25, 0.0  ;;  %v319_v25 = vadd.f32 %v3593_v31, %v3398_v49  ;;  %v600_v1 = vmax.f32 %v230_v7, 0.0 }
 0x133   :  { %v601_v17 = vmax.f32 %v319_v25, 0.0 }
 0x136   :  { %v439_v6 = vpop.f32.mrf.mxu3 }
 0x137   :  { %v440_v33 = vadd.f32 %v439_v6, %v3401_v50  ;;  %v408_v6 = vadd.f32 %v3606_v28, %v3401_v50 }
 0x138   :  { %v3699_v5 = vpop.f32.mrf.mxu2  ;;  %v3704_v27 = vpop.f32.mrf.mxu0 }
 0x139   :  { %v654_v12 = vmax.f32 %v440_v33, 0.0  ;;  %v3710_v41 = vpop.f32.mrf.mxu1  ;;  %v321_v33 = vadd.f32 %v3618_v54, %v3398_v49  ;;  %v602_v19 = vmax.f32 %v408_v6, 0.0 }
 0x13b   :  { %2549 = vmatmul.msk.bf16.gmra.mxu3 %vm131_vm0, %v3267_v47  ;;  %1161 = vmatmul.bf16.gmra.mxu0 %v3702_v57  ;;  %v3715_v15 = vpack.c.bf16 %v654_v12, %v650_v4  ;;  %v232_v47 = vadd.f32 %v3616_v52, %v3307_v11  ;;  %v410_v4 = vadd.f32 %v3621_v21, %v3401_v50  ;;  %v792_v52 = vld [vmem:[%s4628_s4] sm:$0x3]  ;;  %v605_v28 = vmax.f32 %v321_v33, 0.0 }
 0x13c   :  { %1250 = vmatmul.bf16.gmra.mxu1 %v3706_v59  ;;  %v3741_v39 = vperm.slane %v792_v52, 0  ;;  %v2768_v52 = vld [vmem:[#allocation2 + $0x1a0] sm:$0xf] }
 0x13d   :  { %1339 = vmatmul.bf16.gmra.mxu2 %v3708_v48  ;;  %v604_v31 = vmax.f32 %v232_v47, 0.0  ;;  %v606_v18 = vmax.f32 %v410_v4, 0.0  ;;  %v3748_v30 = vpack.c.bf16 %v605_v28, %v601_v17 }
 0x13e   :  { %v442_v24 = vpop.f32.mrf.mxu3 }
 0x13f   :  { %v443_v54 = vadd.f32 %v442_v24, %v3401_v50  ;;  %v3746_v59 = vpack.c.bf16 %v604_v31, %v600_v1  ;;  %v3750_v7 = vpack.c.bf16 %v606_v18, %v602_v19  ;;  %v2967_v1 = vld [vmem:[#allocation2 + $0x1a4] sm:$0xf0]  ;;  %v324_v19 = vadd.f32 %v3632_v35, %v3398_v49 }
 0x140   :  { %v3723_v2 = vpop.f32.mrf.mxu2  ;;  %v3733_v12 = vpop.f32.mrf.mxu0  ;;  %v2769_v31 = vor.u32 %v2967_v1, %v2768_v52  ;;  %v413_v18 = vadd.f32 %v3645_v13, %v3401_v50 }
 0x141   :  { %v3735_v53 = vpop.f32.mrf.mxu1  ;;  %4691 = vst [vmem:[#allocation29_spill] sm:$0xff] %v3750_v7  ;;  %v658_v47 = vmax.f32 %v443_v54, 0.0  ;;  %v326_v54 = vadd.f32 %v3657_v36, %v3398_v49  ;;  %v609_v52 = vmax.f32 %v324_v19, 0.0 }
 0x142   :  { %1390 = vmatpush.bf16.msra.mxu3 %v2769_v31  ;;  %v610_v13 = vmax.f32 %v413_v18, 0.0 }
 0x143   :  { %v613_v1 = vmax.f32 %v326_v54, 0.0 }
 0x146   :  { %v444_v21 = vpop.f32.mrf.mxu3 }
 0x147   :  { %v445_v44 = vadd.f32 %v444_v21, %v3401_v50  ;;  %v415_v21 = vadd.f32 %v3660_v43, %v3401_v50 }
 0x148   :  { %v3743_v48 = vpop.f32.mrf.mxu2  ;;  %v1127_v57 = vpop.f32.mrf.mxu0 }
 0x149   :  { %v662_v25 = vmax.f32 %v445_v44, 0.0  ;;  %v1128_v6 = vadd.f32 %v1127_v57, %v3741_v39  ;;  %v1216_v33 = vpop.f32.mrf.mxu1  ;;  %v235_v57 = vadd.f32 %v3626_v61, %v3307_v11  ;;  %v614_v31 = vmax.f32 %v415_v21, 0.0 }
 0x14b   :  { %v1217_v24 = vadd.f32 %v1216_v33, %v1128_v6  ;;  %2550 = vmatmul.msk.bf16.gmra.mxu3 %vm131_vm0, %v3283_v56  ;;  %1166 = vmatmul.bf16.gmra.mxu0 %v3746_v59  ;;  %v3756_v4 = vpack.c.bf16 %v662_v25, %v658_v47  ;;  %v237_v56 = vadd.f32 %v3655_v22, %v3307_v11  ;;  %v3775_v47 = vperm.slane %v3300_v62, 3 }
 0x14c   :  { %1255 = vmatmul.bf16.gmra.mxu1 %v3748_v30  ;;  %v608_v25 = vmax.f32 %v235_v57, 0.0  ;;  %v3786_v57 = vpack.c.bf16 %v614_v31, %v610_v13  ;;  %v329_v13 = vadd.f32 %v3671_v38, %v3398_v49  ;;  %v418_v31 = vadd.f32 %v3684_v16, %v3401_v50 }
 0x14d   :  { %1344 = vmatmul.bf16.gmra.mxu2 %v3750_v7  ;;  %v612_v6 = vmax.f32 %v237_v56, 0.0 }
 0x14e   :  { %v456_v17 = vpop.f32.mrf.mxu3 }
 0x14f   :  { %v457_v36 = vadd.f32 %v456_v17, %v3775_v47 }
 0x150   :  { %v1305_v28 = vpop.f32.mrf.mxu2  ;;  %v1129_v61 = vpop.f32.mrf.mxu0 }
 0x151   :  { %v3772_v44 = vadd.f32 %v1305_v28, %v1217_v24  ;;  %v1130_v35 = vadd.f32 %v1129_v61, %v3741_v39  ;;  %v1218_v22 = vpop.f32.mrf.mxu1  ;;  %v3780_v28 = vpack.c.bf16 %v612_v6, %v608_v25  ;;  %v3784_v61 = vpack.c.bf16 %v613_v1, %v609_v52  ;;  %v2674_v6 = vld [vmem:[#allocation2 + $0xe8] sm:$0xf0] }
 0x152   :  { %v539_v56 = vmax.f32 %v457_v36, 0.0  ;;  %v240_v52 = vadd.f32 %v3665_v23, %v3307_v11  ;;  %v331_v36 = vadd.f32 %v3696_v29, %v3398_v49 }
 0x153   :  { %4692 = vst [vmem:[#allocation30_spill] sm:$0xff] %v3772_v44  ;;  %v1219_v33 = vadd.f32 %v1218_v22, %v1130_v35  ;;  %v2610_v35 = vld [vmem:[#allocation2 + $0x68] sm:$0xf0]  ;;  %v2942_v22 = vld [vmem:[#allocation2 + $0xe4] sm:$0xf] }
 0x156   :  { %v458_v7 = vpop.f32.mrf.mxu3 }
 0x157   :  { %v459_v43 = vadd.f32 %v458_v7, %v3775_v47  ;;  %v2926_v7 = vld [vmem:[#allocation2 + $0x64] sm:$0xf] }
 0x158   :  { %v1307_v24 = vpop.f32.mrf.mxu2  ;;  %v1132_v44 = vpop.f32.mrf.mxu0  ;;  %v2613_v25 = vor.u32 %v2926_v7, %v2610_v35  ;;  %v618_v7 = vmax.f32 %v418_v31, 0.0  ;;  %v621_v35 = vmax.f32 %v331_v36, 0.0 }
 0x159   :  { %v3782_v62 = vadd.f32 %v1307_v24, %v1219_v33  ;;  %v543_v19 = vmax.f32 %v459_v43, 0.0  ;;  %v1133_v18 = vadd.f32 %v1132_v44, %v3741_v39  ;;  %v1221_v54 = vpop.f32.mrf.mxu1  ;;  %v2677_v44 = vor.u32 %v2942_v22, %v2674_v6 }
 0x15a   :  { %1475 = vmatpush.bf16.msra.mxu0 %v2613_v25  ;;  %v420_v43 = vadd.f32 %v3699_v5, %v3401_v50 }
 0x15b   :  { %v3789_v21 = vpack.c.bf16 %v543_v19, %v539_v56  ;;  %v1222_v17 = vadd.f32 %v1221_v54, %v1133_v18  ;;  %2551 = vmatmul.msk.bf16.gmra.mxu3 %vm131_vm0, %v3321_v42  ;;  %1171 = vmatmul.bf16.gmra.mxu0 %v3780_v28  ;;  %v242_v42 = vadd.f32 %v3694_v45, %v3307_v11  ;;  %v616_v19 = vmax.f32 %v240_v52, 0.0 }
 0x15c   :  { %1260 = vmatmul.bf16.gmra.mxu1 %v3784_v61  ;;  %v617_v54 = vmax.f32 %v329_v13, 0.0  ;;  %v622_v16 = vmax.f32 %v420_v43, 0.0 }
 0x15d   :  { %1349 = vmatmul.bf16.gmra.mxu2 %v3786_v57  ;;  %1564 = vmatpush.bf16.msra.mxu1 %v2677_v44  ;;  %v620_v45 = vmax.f32 %v242_v42, 0.0 }
 0x15e   :  { %v461_v33 = vpop.f32.mrf.mxu3  ;;  %v3819_v52 = vpack.c.bf16 %v622_v16, %v618_v7  ;;  %v423_v7 = vadd.f32 %v3723_v2, %v3401_v50  ;;  %v425_v16 = vadd.f32 %v3743_v48, %v3401_v50 }
 0x15f   :  { %v462_v22 = vadd.f32 %v461_v33, %v3775_v47 }
 0x160   :  { %v1310_v1 = vpop.f32.mrf.mxu2  ;;  %v1134_v23 = vpop.f32.mrf.mxu0 }
 0x161   :  { %v3808_v24 = vadd.f32 %v1310_v1, %v1222_v17  ;;  %v1135_v38 = vadd.f32 %v1134_v23, %v3741_v39  ;;  %v1223_v56 = vpop.f32.mrf.mxu1  ;;  %v3813_v17 = vpack.c.bf16 %v620_v45, %v616_v19  ;;  %v3817_v1 = vpack.c.bf16 %v621_v35, %v617_v54  ;;  %v2760_v23 = vld [vmem:[#allocation2 + $0x190] sm:$0xf] }
 0x162   :  { %v547_v42 = vmax.f32 %v462_v22, 0.0  ;;  %v245_v45 = vadd.f32 %v3704_v27, %v3307_v11  ;;  %v336_v35 = vadd.f32 %v3735_v53, %v3398_v49 }
 0x163   :  { %v1224_v18 = vadd.f32 %v1223_v56, %v1135_v38  ;;  %v2965_v38 = vld [vmem:[#allocation2 + $0x194] sm:$0xf0] }
 0x164   :  { %v2761_v56 = vor.u32 %v2965_v38, %v2760_v23 }
 0x166   :  { %v463_v29 = vpop.f32.mrf.mxu3  ;;  %1391 = vmatpush.bf16.msra.mxu3 %v2761_v56 }
 0x167   :  { %v464_v25 = vadd.f32 %v463_v29, %v3775_v47 }
 0x168   :  { %v1312_v5 = vpop.f32.mrf.mxu2  ;;  %v1137_v44 = vpop.f32.mrf.mxu0 }
 0x169   :  { %v3815_v6 = vadd.f32 %v1312_v5, %v1224_v18  ;;  %v551_v13 = vmax.f32 %v464_v25, 0.0  ;;  %v1138_v31 = vadd.f32 %v1137_v44, %v3741_v39  ;;  %v1226_v36 = vpop.f32.mrf.mxu1  ;;  %v334_v18 = vadd.f32 %v3710_v41, %v3398_v49 }
 0x16a   :  { %v624_v25 = vmax.f32 %v245_v45, 0.0  ;;  %v626_v44 = vmax.f32 %v423_v7, 0.0  ;;  %v2602_v7 = vld [vmem:[#allocation2 + $0x58] sm:$0xf0] }
 0x16b   :  { %v1227_v43 = vadd.f32 %v1226_v36, %v1138_v31  ;;  %2552 = vmatmul.msk.bf16.gmra.mxu3 %vm131_vm0, %v3353_v55  ;;  %1176 = vmatmul.bf16.gmra.mxu0 %v3813_v17  ;;  %v3825_v33 = vpack.c.bf16 %v551_v13, %v547_v42  ;;  %v247_v55 = vadd.f32 %v3733_v12, %v3307_v11  ;;  %v625_v12 = vmax.f32 %v334_v18, 0.0 }
 0x16c   :  { %1265 = vmatmul.bf16.gmra.mxu1 %v3817_v1  ;;  %v629_v42 = vmax.f32 %v336_v35, 0.0  ;;  %v630_v13 = vmax.f32 %v425_v16, 0.0  ;;  %v2940_v35 = vld [vmem:[#allocation2 + $0xd4] sm:$0xf] }
 0x16d   :  { %4693 = vst [vmem:[#allocation31_spill] sm:$0xff] %v3825_v33  ;;  %1354 = vmatmul.bf16.gmra.mxu2 %v3819_v52  ;;  %v628_v5 = vmax.f32 %v247_v55, 0.0 }
 0x16e   :  { %v466_v19 = vpop.f32.mrf.mxu3  ;;  %v3852_v23 = vpack.c.bf16 %v630_v13, %v626_v44 }
 0x16f   :  { %v467_v2 = vadd.f32 %v466_v19, %v3775_v47  ;;  %v3846_v50 = vpack.c.bf16 %v628_v5, %v624_v25 }
 0x170   :  { %v1315_v54 = vpop.f32.mrf.mxu2  ;;  %v1139_v27 = vpop.f32.mrf.mxu0 }
 0x171   :  { %v3841_v22 = vadd.f32 %v1315_v54, %v1227_v43  ;;  %v1140_v29 = vadd.f32 %v1139_v27, %v3741_v39  ;;  %v1228_v41 = vpop.f32.mrf.mxu1  ;;  %v3850_v43 = vpack.c.bf16 %v629_v42, %v625_v12  ;;  %v555_v38 = vmax.f32 %v467_v2, 0.0  ;;  %v2924_v54 = vld [vmem:[#allocation2 + $0x54] sm:$0xf]  ;;  %v2666_v27 = vld [vmem:[#allocation2 + $0xd8] sm:$0xf0] }
 0x172   :  { %v2605_v16 = vor.u32 %v2924_v54, %v2602_v7 }
 0x173   :  { %v1229_v11 = vadd.f32 %v1228_v41, %v1140_v29  ;;  %v2669_v41 = vor.u32 %v2940_v35, %v2666_v27  ;;  %v2963_v27 = vld [vmem:[#allocation2 + $0x184] sm:$0xf0] }
 0x174   :  { %1476 = vmatpush.bf16.msra.mxu0 %v2605_v16  ;;  %v2752_v16 = vld [vmem:[#allocation2 + $0x180] sm:$0xf] }
 0x175   :  { %1565 = vmatpush.bf16.msra.mxu1 %v2669_v41 }
 0x176   :  { %v468_v31 = vpop.f32.mrf.mxu3 }
 0x177   :  { %v469_v49 = vadd.f32 %v468_v31, %v3775_v47 }
 0x178   :  { %v1317_v53 = vpop.f32.mrf.mxu2  ;;  %v1142_v36 = vpop.f32.mrf.mxu0 }
 0x179   :  { %v3848_v48 = vadd.f32 %v1317_v53, %v1229_v11  ;;  %v559_v56 = vmax.f32 %v469_v49, 0.0  ;;  %v1143_v45 = vadd.f32 %v1142_v36, %v3741_v39  ;;  %v1231_v18 = vpop.f32.mrf.mxu1 }
 0x17b   :  { %v1232_v55 = vadd.f32 %v1231_v18, %v1143_v45  ;;  %2553 = vmatmul.msk.bf16.gmra.mxu3 %vm131_vm0, %v3385_v37  ;;  %1181 = vmatmul.bf16.gmra.mxu0 %v3846_v50  ;;  %v3858_v19 = vpack.c.bf16 %v559_v56, %v555_v38  ;;  %v2960_v18 = vld [vmem:[#allocation2 + $0x174] sm:$0xf] }
 0x17c   :  { %1270 = vmatmul.bf16.gmra.mxu1 %v3850_v43 }
 0x17d   :  { %4694 = vst [vmem:[#allocation32_spill] sm:$0xff] %v3858_v19  ;;  %1359 = vmatmul.bf16.gmra.mxu2 %v3852_v23 }
 0x17e   :  { %v471_v29 = vpop.f32.mrf.mxu3 }
 0x17f   :  { %v472_v42 = vadd.f32 %v471_v29, %v3775_v47  ;;  %v2753_v29 = vor.u32 %v2963_v27, %v2752_v16  ;;  %v2658_v27 = vld [vmem:[#allocation2 + $0xc8] sm:$0xf0] }
 0x180   :  { %v1320_v25 = vpop.f32.mrf.mxu2  ;;  %v1144_v37 = vpop.f32.mrf.mxu0 }
 0x181   :  { %v3862_v5 = vadd.f32 %v1320_v25, %v1232_v55  ;;  %v1145_v11 = vadd.f32 %v1144_v37, %v3741_v39  ;;  %v1233_v12 = vpop.f32.mrf.mxu1  ;;  %v563_v36 = vmax.f32 %v472_v42, 0.0  ;;  %v2746_v55 = vld [vmem:[#allocation2 + $0x178] sm:$0xf0]  ;;  %v2958_v25 = vld [vmem:[#allocation2 + $0x164] sm:$0xf]  ;;  %1392 = vmatpush.bf16.msra.mxu3 %v2753_v29 }
 0x182   :  { %v2749_v7 = vor.u32 %v2960_v18, %v2746_v55  ;;  %v2738_v37 = vld [vmem:[#allocation2 + $0x168] sm:$0xf0]  ;;  %v2938_v55 = vld [vmem:[#allocation2 + $0xc4] sm:$0xf] }
 0x183   :  { %v1234_v44 = vadd.f32 %v1233_v12, %v1145_v11  ;;  %v2741_v12 = vor.u32 %v2958_v25, %v2738_v37  ;;  %v2594_v18 = vld [vmem:[#allocation2 + $0x48] sm:$0xf0]  ;;  %v2954_v29 = vld [vmem:[#allocation2 + $0x144] sm:$0xf] }
 0x184   :  { %1652 = vmatpush.bf16.msra.mxu2 %v2749_v7  ;;  %v2722_v25 = vld [vmem:[#allocation2 + $0x148] sm:$0xf0] }
 0x186   :  { %v473_v13 = vpop.f32.mrf.mxu3 }
 0x187   :  { %v474_v2 = vadd.f32 %v473_v13, %v3775_v47 }
 0x188   :  { %v1322_v31 = vpop.f32.mrf.mxu2  ;;  %v1147_v53 = vpop.f32.mrf.mxu0  ;;  %1653 = vmatpush.bf16.msra.mxu2 %v2741_v12  ;;  %v2661_v12 = vor.u32 %v2938_v55, %v2658_v27  ;;  %v2952_v55 = vld [vmem:[#allocation2 + $0x134] sm:$0xf] }
 0x189   :  { %v3867_v49 = vadd.f32 %v1322_v31, %v1234_v44  ;;  %v567_v38 = vmax.f32 %v474_v2, 0.0  ;;  %v1148_v56 = vadd.f32 %v1147_v53, %v3741_v39  ;;  %v1236_v45 = vpop.f32.mrf.mxu1  ;;  %v2956_v2 = vld [vmem:[#allocation2 + $0x154] sm:$0xf]  ;;  %v2730_v31 = vld [vmem:[#allocation2 + $0x158] sm:$0xf0] }
 0x18a   :  { %1566 = vmatpush.bf16.msra.mxu1 %v2661_v12 }
 0x18b   :  { %v1237_v54 = vadd.f32 %v1236_v45, %v1148_v56  ;;  %2554 = vmatmul.msk.bf16.gmra.mxu3 %vm131_vm0, %v3125_v14  ;;  %1186 = vmatmul.bf16.gmra.mxu0 %v3331_v63  ;;  %v3873_v35 = vpack.c.bf16 %v567_v38, %v563_v36  ;;  %v2733_v36 = vor.u32 %v2956_v2, %v2730_v31  ;;  %v2922_v45 = vld [vmem:[#allocation2 + $0x44] sm:$0xf]  ;;  %v2920_v31 = vld [vmem:[#allocation2 + $0x34] sm:$0xf] }
 0x18c   :  { %1275 = vmatmul.bf16.gmra.mxu1 %v3481_v0  ;;  %v2597_v16 = vor.u32 %v2922_v45, %v2594_v18  ;;  %v2650_v18 = vld [vmem:[#allocation2 + $0xb8] sm:$0xf0] }
 0x18d   :  { %4695 = vst [vmem:[#allocation33_spill] sm:$0xff] %v3873_v35  ;;  %1364 = vmatmul.bf16.gmra.mxu2 %v3637_v58 }
 0x18e   :  { %v476_v41 = vpop.f32.mrf.mxu3  ;;  %1654 = vmatpush.bf16.msra.mxu2 %v2733_v36  ;;  %1477 = vmatpush.bf16.msra.mxu0 %v2597_v16  ;;  %v2586_v36 = vld [vmem:[#allocation2 + $0x38] sm:$0xf0] }
 0x18f   :  { %v477_v38 = vadd.f32 %v476_v41, %v3775_v47 }
 0x190   :  { %v1325_v11 = vpop.f32.mrf.mxu2  ;;  %v1149_v44 = vpop.f32.mrf.mxu0 }
 0x191   :  { %v3877_v14 = vadd.f32 %v1325_v11, %v1237_v54  ;;  %v1150_v42 = vadd.f32 %v1149_v44, %v3741_v39  ;;  %v1238_v13 = vpop.f32.mrf.mxu1  ;;  %v2725_v44 = vor.u32 %v2954_v29, %v2722_v25  ;;  %v2918_v29 = vld [vmem:[#allocation2 + $0x24] sm:$0xf] }
 0x192   :  { %v2934_v25 = vld [vmem:[#allocation2 + $0xa4] sm:$0xf] }
 0x193   :  { %v1239_v53 = vadd.f32 %v1238_v13, %v1150_v42  ;;  %v571_v42 = vmax.f32 %v477_v38, 0.0  ;;  %1655 = vmatpush.bf16.msra.mxu2 %v2725_v44  ;;  %v2714_v38 = vld [vmem:[#allocation2 + $0x138] sm:$0xf0]  ;;  %v2642_v44 = vld [vmem:[#allocation2 + $0xa8] sm:$0xf0] }
 0x194   :  { %v2717_v16 = vor.u32 %v2952_v55, %v2714_v38  ;;  %v2570_v55 = vld [vmem:[#allocation2 + $0x18] sm:$0xf0]  ;;  %v2932_v38 = vld [vmem:[#allocation2 + $0x94] sm:$0xf] }
 0x196   :  { %v478_v56 = vpop.f32.mrf.mxu3 }
 0x197   :  { %v479_v7 = vadd.f32 %v478_v56, %v3775_v47  ;;  %v2936_v56 = vld [vmem:[#allocation2 + $0xb4] sm:$0xf]  ;;  %1656 = vmatpush.bf16.msra.mxu2 %v2717_v16 }
 0x198   :  { %v1327_v54 = vpop.f32.mrf.mxu2  ;;  %v1152_v11 = vpop.f32.mrf.mxu0 }
 0x199   :  { %v3882_v37 = vadd.f32 %v1327_v54, %v1239_v53  ;;  %v575_v13 = vmax.f32 %v479_v7, 0.0  ;;  %v1153_v41 = vadd.f32 %v1152_v11, %v3741_v39  ;;  %v1241_v2 = vpop.f32.mrf.mxu1  ;;  %v2589_v53 = vor.u32 %v2920_v31, %v2586_v36 }
 0x19a   :  { %v2653_v54 = vor.u32 %v2936_v56, %v2650_v18  ;;  %v2645_v31 = vor.u32 %v2934_v25, %v2642_v44  ;;  %v2914_v44 = vld [vmem:[#allocation2 + $0x4] sm:$0xf] }
 0x19b   :  { %v1242_v45 = vadd.f32 %v1241_v2, %v1153_v41  ;;  %2555 = vmatmul.msk.bf16.gmra.mxu3 %vm131_vm0, %v3149_v20  ;;  %1191 = vmatmul.bf16.gmra.mxu0 %v3363_v9  ;;  %v3888_v7 = vpack.c.bf16 %v575_v13, %v571_v42  ;;  %v2578_v20 = vld [vmem:[#allocation2 + $0x28] sm:$0xf0]  ;;  %v2950_v41 = vld [vmem:[#allocation2 + $0x124] sm:$0xf] }
 0x19c   :  { %1280 = vmatmul.bf16.gmra.mxu1 %v3520_v8  ;;  %1478 = vmatpush.bf16.msra.mxu0 %v2589_v53  ;;  %v2581_v12 = vor.u32 %v2918_v29, %v2578_v20  ;;  %v2706_v2 = vld [vmem:[#allocation2 + $0x128] sm:$0xf0]  ;;  %v2916_v53 = vld [vmem:[#allocation2 + $0x14] sm:$0xf]  ;;  %v2634_v29 = vld [vmem:[#allocation2 + $0x98] sm:$0xf0] }
 0x19d   :  { %4696 = vst [vmem:[#allocation34_spill] sm:$0xff] %v3888_v7  ;;  %1369 = vmatmul.bf16.gmra.mxu2 %v3676_v60  ;;  %1567 = vmatpush.bf16.msra.mxu1 %v2653_v54  ;;  %v2709_v36 = vor.u32 %v2950_v41, %v2706_v2  ;;  %v2573_v16 = vor.u32 %v2916_v53, %v2570_v55  ;;  %v2948_v20 = vld [vmem:[#allocation2 + $0x114] sm:$0xf]  ;;  %v2698_v60 = vld [vmem:[#allocation2 + $0x118] sm:$0xf0] }
 0x19e   :  { %v481_v27 = vpop.f32.mrf.mxu3  ;;  %v2637_v8 = vor.u32 %v2932_v38, %v2634_v29  ;;  %v2930_v41 = vld [vmem:[#allocation2 + $0x84] sm:$0xf] }
 0x19f   :  { %1657 = vmatpush.bf16.msra.mxu2 %v2709_v36  ;;  %v2626_v36 = vld [vmem:[#allocation2 + $0x88] sm:$0xf0] }
 0x1a0   :  { %v1330_v11 = vpop.f32.mrf.mxu2  ;;  %v1154_v13 = vpop.f32.mrf.mxu0  ;;  %1479 = vmatpush.bf16.msra.mxu0 %v2581_v12  ;;  %v2562_v12 = vld [vmem:[#allocation2 + $0x8] sm:$0xf0] }
 0x1a1   :  { %v3892_v42 = vadd.f32 %v1330_v11, %v1242_v45  ;;  %v1155_v56 = vadd.f32 %v1154_v13, %v3741_v39  ;;  %v1243_v18 = vpop.f32.mrf.mxu1  ;;  %1568 = vmatpush.bf16.msra.mxu1 %v2645_v31  ;;  %v2701_v45 = vor.u32 %v2948_v20, %v2698_v60  ;;  %v482_v11 = vadd.f32 %v481_v27, %v3775_v47 }
 0x1a2   :  { %v2565_v31 = vor.u32 %v2914_v44, %v2562_v12  ;;  %v2629_v60 = vor.u32 %v2930_v41, %v2626_v36 }
 0x1a3   :  { %v1244_v54 = vadd.f32 %v1243_v18, %v1155_v56  ;;  %1658 = vmatpush.bf16.msra.mxu2 %v2701_v45  ;;  %v2946_v56 = vld [vmem:[#allocation2 + $0x104] sm:$0xf]  ;;  %v2690_v18 = vld [vmem:[#allocation2 + $0x108] sm:$0xf0]  ;;  %v579_v27 = vmax.f32 %v482_v11, 0.0 }
 0x1a4   :  { %1480 = vmatpush.bf16.msra.mxu0 %v2573_v16  ;;  %v2693_v38 = vor.u32 %v2946_v56, %v2690_v18  ;;  %v2810_v11 = vld [vmem:[#allocation2 + $0x1f8] sm:$0xf0] }
 0x1a5   :  { %1569 = vmatpush.bf16.msra.mxu1 %v2637_v8 }
 0x1a6   :  { %v483_v25 = vpop.f32.mrf.mxu3 }
 0x1a7   :  { %v484_v2 = vadd.f32 %v483_v25, %v3775_v47  ;;  %1659 = vmatpush.bf16.msra.mxu2 %v2693_v38 }
 0x1a8   :  { %v1332_v13 = vpop.f32.mrf.mxu2  ;;  %v1157_v55 = vpop.f32.mrf.mxu0  ;;  %1481 = vmatpush.bf16.msra.mxu0 %v2565_v31 }
 0x1a9   :  { %v3897_v53 = vadd.f32 %v1332_v13, %v1244_v54  ;;  %v583_v16 = vmax.f32 %v484_v2, 0.0  ;;  %v1158_v8 = vadd.f32 %v1157_v55, %v3741_v39  ;;  %v1246_v29 = vpop.f32.mrf.mxu1  ;;  %1570 = vmatpush.bf16.msra.mxu1 %v2629_v60  ;;  %v2976_v54 = vld [vmem:[#allocation2 + $0x1f4] sm:$0xf] }
 0x1aa   :  { %v2813_v25 = vor.u32 %v2976_v54, %v2810_v11 }
 0x1ab   :  { %v1247_v20 = vadd.f32 %v1246_v29, %v1158_v8  ;;  %2556 = vmatmul.msk.bf16.gmra.mxu3 %vm131_vm0, %v3173_v26  ;;  %1196 = vmatmul.bf16.gmra.mxu0 %v3395_v46  ;;  %v3903_v45 = vpack.c.bf16 %v583_v16, %v579_v27 }
 0x1ac   :  { %1285 = vmatmul.bf16.gmra.mxu1 %v3559_v34  ;;  %1741 = vmatpush.bf16.msrb.mxu3 %v2813_v25 }
 0x1ad   :  { %4697 = vst [vmem:[#allocation35_spill] sm:$0xff] %v3903_v45  ;;  %1374 = vmatmul.bf16.gmra.mxu2 %v3715_v15 }
 0x1ae   :  { %v486_v44 = vpop.f32.mrf.mxu3 }
 0x1af   :  { %v487_v36 = vadd.f32 %v486_v44, %v3775_v47 }
 0x1b0   :  { %v1335_v12 = vpop.f32.mrf.mxu2  ;;  %v1159_v2 = vpop.f32.mrf.mxu0 }
 0x1b1   :  { %v3907_v41 = vadd.f32 %v1335_v12, %v1247_v20  ;;  %v1160_v13 = vadd.f32 %v1159_v2, %v3741_v39  ;;  %v1248_v26 = vpop.f32.mrf.mxu1  ;;  %v587_v27 = vmax.f32 %v487_v36, 0.0 }
 0x1b3   :  { %v1249_v31 = vadd.f32 %v1248_v26, %v1160_v13 }
 0x1b6   :  { %v488_v56 = vpop.f32.mrf.mxu3 }
 0x1b7   :  { %v489_v18 = vadd.f32 %v488_v56, %v3775_v47 }
 0x1b8   :  { %v1337_v55 = vpop.f32.mrf.mxu2  ;;  %v1162_v38 = vpop.f32.mrf.mxu0 }
 0x1b9   :  { %v3912_v60 = vadd.f32 %v1337_v55, %v1249_v31  ;;  %v591_v16 = vmax.f32 %v489_v18, 0.0  ;;  %v1163_v8 = vadd.f32 %v1162_v38, %v3741_v39  ;;  %v1251_v29 = vpop.f32.mrf.mxu1 }
 0x1bb   :  { %v1252_v20 = vadd.f32 %v1251_v29, %v1163_v8  ;;  %2557 = vmatmul.msk.bf16.gmra.mxu3 %vm131_vm0, %v3197_v32  ;;  %1201 = vmatmul.bf16.gmra.mxu0 %v3442_v51  ;;  %v3918_v54 = vpack.c.bf16 %v591_v16, %v587_v27 }
 0x1bc   :  { %1290 = vmatmul.bf16.gmra.mxu1 %v3598_v10 }
 0x1bd   :  { %4698 = vst [vmem:[#allocation36_spill] sm:$0xff] %v3918_v54  ;;  %1379 = vmatmul.bf16.gmra.mxu2 %v3756_v4 }
 0x1be   :  { %v491_v11 = vpop.f32.mrf.mxu3 }
 0x1bf   :  { %v492_v31 = vadd.f32 %v491_v11, %v3775_v47  ;;  %v4700_v11 = vld [vmem:[#allocation5_spill] sm:$0xff] }
 0x1c0   :  { %v1340_v25 = vpop.f32.mrf.mxu2  ;;  %v1164_v12 = vpop.f32.mrf.mxu0 }
 0x1c1   :  { %v3922_v44 = vadd.f32 %v1340_v25, %v1252_v20  ;;  %v1165_v2 = vadd.f32 %v1164_v12, %v3741_v39  ;;  %v1253_v13 = vpop.f32.mrf.mxu1  ;;  %v595_v38 = vmax.f32 %v492_v31, 0.0  ;;  %v2974_v25 = vld [vmem:[#allocation2 + $0x1e4] sm:$0xf]  ;;  %v2802_v12 = vld [vmem:[#allocation2 + $0x1e8] sm:$0xf0] }
 0x1c3   :  { %v1254_v26 = vadd.f32 %v1253_v13, %v1165_v2  ;;  %v2805_v2 = vor.u32 %v2974_v25, %v2802_v12 }
 0x1c5   :  { %1742 = vmatpush.bf16.msrb.mxu3 %v2805_v2 }
 0x1c6   :  { %v493_v32 = vpop.f32.mrf.mxu3 }
 0x1c7   :  { %v494_v36 = vadd.f32 %v493_v32, %v3775_v47 }
 0x1c8   :  { %v1342_v56 = vpop.f32.mrf.mxu2  ;;  %v1167_v55 = vpop.f32.mrf.mxu0 }
 0x1c9   :  { %v3927_v18 = vadd.f32 %v1342_v56, %v1254_v26  ;;  %v599_v27 = vmax.f32 %v494_v36, 0.0  ;;  %v1168_v16 = vadd.f32 %v1167_v55, %v3741_v39  ;;  %v1256_v8 = vpop.f32.mrf.mxu1 }
 0x1cb   :  { %v1257_v29 = vadd.f32 %v1256_v8, %v1168_v16  ;;  %1393 = vmatmul.bf16.vlgmr.msra.gmra.mxu3 %v3789_v21  ;;  %1482 = vmatmul.bf16.vlgmr.msra.gmra.mxu0 %v3426_v3  ;;  %v3932_v20 = vpack.c.bf16 %v599_v27, %v595_v38 }
 0x1cc   :  { %1571 = vmatmul.bf16.vlgmr.msra.gmra.mxu1 %v3431_v40 }
 0x1cd   :  { %4699 = vst [vmem:[#allocation37_spill] sm:$0xff] %v3932_v20  ;;  %1660 = vmatmul.bf16.vlgmr.msra.gmra.mxu2 %v4700_v11 }
 0x1ce   :  { %v496_v13 = vpop.f32.mrf.mxu3 }
 0x1cf   :  { %v497_v3 = vadd.f32 %v496_v13, %v3775_v47  ;;  %v4704_v13 = vld [vmem:[#allocation7_spill] sm:$0xff] }
 0x1d0   :  { %v1345_v26 = vpop.f32.mrf.mxu2  ;;  %v1169_v32 = vpop.f32.mrf.mxu0 }
 0x1d1   :  { %v3936_v31 = vadd.f32 %v1345_v26, %v1257_v29  ;;  %v1170_v36 = vadd.f32 %v1169_v32, %v3741_v39  ;;  %v1258_v56 = vpop.f32.mrf.mxu1  ;;  %v603_v11 = vmax.f32 %v497_v3, 0.0  ;;  %v4702_v26 = vld [vmem:[#allocation6_spill] sm:$0xff] }
 0x1d3   :  { %v1259_v55 = vadd.f32 %v1258_v56, %v1170_v36  ;;  %v4705_v36 = vld [vmem:[#allocation8_spill] sm:$0xff] }
 0x1d6   :  { %v498_v38 = vpop.f32.mrf.mxu3 }
 0x1d7   :  { %v499_v40 = vadd.f32 %v498_v38, %v3775_v47 }
 0x1d8   :  { %v1347_v27 = vpop.f32.mrf.mxu2  ;;  %v1172_v8 = vpop.f32.mrf.mxu0 }
 0x1d9   :  { %v3941_v16 = vadd.f32 %v1347_v27, %v1259_v55  ;;  %v607_v25 = vmax.f32 %v499_v40, 0.0  ;;  %v1173_v12 = vadd.f32 %v1172_v8, %v3741_v39  ;;  %v1261_v29 = vpop.f32.mrf.mxu1 }
 0x1db   :  { %4701 = vst [vmem:[#allocation5_spill] sm:$0xff] %v3941_v16  ;;  %v1262_v2 = vadd.f32 %v1261_v29, %v1173_v12  ;;  %1398 = vmatmul.bf16.gmra.mxu3 %v3825_v33  ;;  %1487 = vmatmul.bf16.gmra.mxu0 %v4702_v26  ;;  %v3946_v32 = vpack.c.bf16 %v607_v25, %v603_v11 }
 0x1dc   :  { %1576 = vmatmul.bf16.gmra.mxu1 %v4704_v13 }
 0x1dd   :  { %4703 = vst [vmem:[#allocation6_spill] sm:$0xff] %v3946_v32  ;;  %1665 = vmatmul.bf16.gmra.mxu2 %v4705_v36 }
 0x1de   :  { %v501_v56 = vpop.f32.mrf.mxu3 }
 0x1df   :  { %v502_v12 = vadd.f32 %v501_v56, %v3775_v47  ;;  %v4709_v56 = vld [vmem:[#allocation10_spill] sm:$0xff] }
 0x1e0   :  { %v1350_v55 = vpop.f32.mrf.mxu2  ;;  %v1174_v3 = vpop.f32.mrf.mxu0 }
 0x1e1   :  { %v3950_v38 = vadd.f32 %v1350_v55, %v1262_v2  ;;  %v1175_v40 = vadd.f32 %v1174_v3, %v3741_v39  ;;  %v1263_v27 = vpop.f32.mrf.mxu1  ;;  %v611_v33 = vmax.f32 %v502_v12, 0.0  ;;  %v4708_v3 = vld [vmem:[#allocation9_spill] sm:$0xff] }
 0x1e3   :  { %4706 = vst [vmem:[#allocation7_spill] sm:$0xff] %v3950_v38  ;;  %v1264_v8 = vadd.f32 %v1263_v27, %v1175_v40  ;;  %v4710_v27 = vld [vmem:[#allocation11_spill] sm:$0xff] }
 0x1e6   :  { %v503_v29 = vpop.f32.mrf.mxu3 }
 0x1e7   :  { %v504_v26 = vadd.f32 %v503_v29, %v3775_v47  ;;  %v2972_v29 = vld [vmem:[#allocation2 + $0x1d4] sm:$0xf] }
 0x1e8   :  { %v1352_v11 = vpop.f32.mrf.mxu2  ;;  %v1177_v13 = vpop.f32.mrf.mxu0 }
 0x1e9   :  { %v3955_v25 = vadd.f32 %v1352_v11, %v1264_v8  ;;  %v615_v36 = vmax.f32 %v504_v26, 0.0  ;;  %v1178_v16 = vadd.f32 %v1177_v13, %v3741_v39  ;;  %v1266_v2 = vpop.f32.mrf.mxu1  ;;  %v2794_v8 = vld [vmem:[#allocation2 + $0x1d8] sm:$0xf0] }
 0x1ea   :  { %v2797_v11 = vor.u32 %v2972_v29, %v2794_v8 }
 0x1eb   :  { %4707 = vst [vmem:[#allocation8_spill] sm:$0xff] %v3955_v25  ;;  %v1267_v55 = vadd.f32 %v1266_v2, %v1178_v16  ;;  %1403 = vmatmul.bf16.gmra.mxu3 %v3858_v19  ;;  %1492 = vmatmul.bf16.gmra.mxu0 %v4708_v3  ;;  %v3960_v40 = vpack.c.bf16 %v615_v36, %v611_v33 }
 0x1ec   :  { %1581 = vmatmul.bf16.gmra.mxu1 %v4709_v56  ;;  %1743 = vmatpush.bf16.msrb.mxu3 %v2797_v11 }
 0x1ed   :  { %1670 = vmatmul.bf16.gmra.mxu2 %v4710_v27 }
 0x1ee   :  { %v506_v25 = vpop.f32.mrf.mxu3 }
 0x1ef   :  { %v507_v33 = vadd.f32 %v506_v25, %v3775_v47  ;;  %v4714_v25 = vld [vmem:[#allocation14_spill] sm:$0xff] }
 0x1f0   :  { %v1355_v12 = vpop.f32.mrf.mxu2  ;;  %v1179_v13 = vpop.f32.mrf.mxu0 }
 0x1f1   :  { %v3964_v26 = vadd.f32 %v1355_v12, %v1267_v55  ;;  %v1180_v16 = vadd.f32 %v1179_v13, %v3741_v39  ;;  %v1268_v2 = vpop.f32.mrf.mxu1  ;;  %v619_v29 = vmax.f32 %v507_v33, 0.0  ;;  %v4713_v13 = vld [vmem:[#allocation13_spill] sm:$0xff] }
 0x1f3   :  { %4711 = vst [vmem:[#allocation9_spill] sm:$0xff] %v3964_v26  ;;  %v1269_v19 = vadd.f32 %v1268_v2, %v1180_v16  ;;  %v4715_v2 = vld [vmem:[#allocation15_spill] sm:$0xff] }
 0x1f6   :  { %v508_v36 = vpop.f32.mrf.mxu3 }
 0x1f7   :  { %v509_v3 = vadd.f32 %v508_v36, %v3775_v47 }
 0x1f8   :  { %v1357_v56 = vpop.f32.mrf.mxu2  ;;  %v1182_v38 = vpop.f32.mrf.mxu0 }
 0x1f9   :  { %v3969_v27 = vadd.f32 %v1357_v56, %v1269_v19  ;;  %v623_v8 = vmax.f32 %v509_v3, 0.0  ;;  %v1183_v11 = vadd.f32 %v1182_v38, %v3741_v39  ;;  %v1271_v55 = vpop.f32.mrf.mxu1 }
 0x1fb   :  { %4712 = vst [vmem:[#allocation10_spill] sm:$0xff] %v3969_v27  ;;  %v1272_v12 = vadd.f32 %v1271_v55, %v1183_v11  ;;  %1408 = vmatmul.bf16.gmra.mxu3 %v3873_v35  ;;  %1497 = vmatmul.bf16.gmra.mxu0 %v4713_v13  ;;  %v3974_v16 = vpack.c.bf16 %v623_v8, %v619_v29 }
 0x1fc   :  { %1586 = vmatmul.bf16.gmra.mxu1 %v4714_v25 }
 0x1fd   :  { %1675 = vmatmul.bf16.gmra.mxu2 %v4715_v2 }
 0x1fe   :  { %v511_v36 = vpop.f32.mrf.mxu3 }
 0x1ff   :  { %v512_v11 = vadd.f32 %v511_v36, %v3775_v47  ;;  %v4719_v36 = vld [vmem:[#allocation17_spill] sm:$0xff] }
 0x200   :  { %v1360_v19 = vpop.f32.mrf.mxu2  ;;  %v1184_v33 = vpop.f32.mrf.mxu0 }
 0x201   :  { %v3978_v56 = vadd.f32 %v1360_v19, %v1272_v12  ;;  %v1185_v3 = vadd.f32 %v1184_v33, %v3741_v39  ;;  %v1273_v38 = vpop.f32.mrf.mxu1  ;;  %v627_v35 = vmax.f32 %v512_v11, 0.0  ;;  %v4718_v33 = vld [vmem:[#allocation16_spill] sm:$0xff] }
 0x203   :  { %4716 = vst [vmem:[#allocation11_spill] sm:$0xff] %v3978_v56  ;;  %v1274_v27 = vadd.f32 %v1273_v38, %v1185_v3  ;;  %v4720_v38 = vld [vmem:[#allocation18_spill] sm:$0xff] }
 0x206   :  { %v513_v55 = vpop.f32.mrf.mxu3 }
 0x207   :  { %v514_v13 = vadd.f32 %v513_v55, %v3775_v47  ;;  %v2970_v55 = vld [vmem:[#allocation2 + $0x1c4] sm:$0xf] }
 0x208   :  { %v1362_v29 = vpop.f32.mrf.mxu2  ;;  %v1187_v25 = vpop.f32.mrf.mxu0 }
 0x209   :  { %v3983_v8 = vadd.f32 %v1362_v29, %v1274_v27  ;;  %v631_v2 = vmax.f32 %v514_v13, 0.0  ;;  %v1188_v26 = vadd.f32 %v1187_v25, %v3741_v39  ;;  %v1276_v12 = vpop.f32.mrf.mxu1  ;;  %v2786_v27 = vld [vmem:[#allocation2 + $0x1c8] sm:$0xf0] }
 0x20a   :  { %v2789_v29 = vor.u32 %v2970_v55, %v2786_v27 }
 0x20b   :  { %4717 = vst [vmem:[#allocation13_spill] sm:$0xff] %v3983_v8  ;;  %v1277_v19 = vadd.f32 %v1276_v12, %v1188_v26  ;;  %1413 = vmatmul.bf16.gmra.mxu3 %v3888_v7  ;;  %1502 = vmatmul.bf16.gmra.mxu0 %v4718_v33  ;;  %v3988_v3 = vpack.c.bf16 %v631_v2, %v627_v35 }
 0x20c   :  { %1591 = vmatmul.bf16.gmra.mxu1 %v4719_v36  ;;  %1744 = vmatpush.bf16.msrb.mxu3 %v2789_v29 }
 0x20d   :  { %1680 = vmatmul.bf16.gmra.mxu2 %v4720_v38 }
 0x20e   :  { %v516_v8 = vpop.f32.mrf.mxu3 }
 0x20f   :  { %v517_v35 = vadd.f32 %v516_v8, %v3775_v47  ;;  %v4724_v8 = vld [vmem:[#allocation20_spill] sm:$0xff] }
 0x210   :  { %v1365_v11 = vpop.f32.mrf.mxu2  ;;  %v1189_v25 = vpop.f32.mrf.mxu0 }
 0x211   :  { %v3992_v13 = vadd.f32 %v1365_v11, %v1277_v19  ;;  %v1190_v26 = vadd.f32 %v1189_v25, %v3741_v39  ;;  %v1278_v12 = vpop.f32.mrf.mxu1  ;;  %v635_v55 = vmax.f32 %v517_v35, 0.0  ;;  %v4723_v25 = vld [vmem:[#allocation19_spill] sm:$0xff] }
 0x213   :  { %4721 = vst [vmem:[#allocation14_spill] sm:$0xff] %v3992_v13  ;;  %v1279_v7 = vadd.f32 %v1278_v12, %v1190_v26  ;;  %v4725_v12 = vld [vmem:[#allocation21_spill] sm:$0xff] }
 0x216   :  { %v518_v2 = vpop.f32.mrf.mxu3 }
 0x217   :  { %v519_v33 = vadd.f32 %v518_v2, %v3775_v47 }
 0x218   :  { %v1367_v36 = vpop.f32.mrf.mxu2  ;;  %v1192_v56 = vpop.f32.mrf.mxu0 }
 0x219   :  { %v3997_v38 = vadd.f32 %v1367_v36, %v1279_v7  ;;  %v639_v27 = vmax.f32 %v519_v33, 0.0  ;;  %v1193_v29 = vadd.f32 %v1192_v56, %v3741_v39  ;;  %v1281_v19 = vpop.f32.mrf.mxu1 }
 0x21b   :  { %4722 = vst [vmem:[#allocation15_spill] sm:$0xff] %v3997_v38  ;;  %v1282_v11 = vadd.f32 %v1281_v19, %v1193_v29  ;;  %1418 = vmatmul.bf16.gmra.mxu3 %v3903_v45  ;;  %1507 = vmatmul.bf16.gmra.mxu0 %v4723_v25  ;;  %v4002_v26 = vpack.c.bf16 %v639_v27, %v635_v55 }
 0x21c   :  { %1596 = vmatmul.bf16.gmra.mxu1 %v4724_v8 }
 0x21d   :  { %1685 = vmatmul.bf16.gmra.mxu2 %v4725_v12 }
 0x21e   :  { %v521_v2 = vpop.f32.mrf.mxu3 }
 0x21f   :  { %v522_v29 = vadd.f32 %v521_v2, %v3775_v47  ;;  %v4729_v2 = vld [vmem:[#allocation23_spill] sm:$0xff] }
 0x220   :  { %v1370_v7 = vpop.f32.mrf.mxu2  ;;  %v1194_v35 = vpop.f32.mrf.mxu0 }
 0x221   :  { %v4006_v36 = vadd.f32 %v1370_v7, %v1282_v11  ;;  %v1195_v33 = vadd.f32 %v1194_v35, %v3741_v39  ;;  %v1283_v56 = vpop.f32.mrf.mxu1  ;;  %v643_v45 = vmax.f32 %v522_v29, 0.0  ;;  %v4728_v35 = vld [vmem:[#allocation22_spill] sm:$0xff] }
 0x223   :  { %4726 = vst [vmem:[#allocation16_spill] sm:$0xff] %v4006_v36  ;;  %v1284_v38 = vadd.f32 %v1283_v56, %v1195_v33  ;;  %v4730_v56 = vld [vmem:[#allocation24_spill] sm:$0xff] }
 0x226   :  { %v523_v19 = vpop.f32.mrf.mxu3 }
 0x227   :  { %v524_v25 = vadd.f32 %v523_v19, %v3775_v47  ;;  %v2968_v19 = vld [vmem:[#allocation2 + $0x1b4] sm:$0xf] }
 0x228   :  { %v1372_v55 = vpop.f32.mrf.mxu2  ;;  %v1197_v8 = vpop.f32.mrf.mxu0 }
 0x229   :  { %v4011_v27 = vadd.f32 %v1372_v55, %v1284_v38  ;;  %v647_v12 = vmax.f32 %v524_v25, 0.0  ;;  %v1198_v13 = vadd.f32 %v1197_v8, %v3741_v39  ;;  %v1286_v11 = vpop.f32.mrf.mxu1  ;;  %v2778_v38 = vld [vmem:[#allocation2 + $0x1b8] sm:$0xf0] }
 0x22a   :  { %v2781_v55 = vor.u32 %v2968_v19, %v2778_v38 }
 0x22b   :  { %4727 = vst [vmem:[#allocation17_spill] sm:$0xff] %v4011_v27  ;;  %v1287_v7 = vadd.f32 %v1286_v11, %v1198_v13  ;;  %1423 = vmatmul.bf16.gmra.mxu3 %v3918_v54  ;;  %1512 = vmatmul.bf16.gmra.mxu0 %v4728_v35  ;;  %v4016_v33 = vpack.c.bf16 %v647_v12, %v643_v45 }
 0x22c   :  { %1601 = vmatmul.bf16.gmra.mxu1 %v4729_v2  ;;  %1745 = vmatpush.bf16.msrb.mxu3 %v2781_v55 }
 0x22d   :  { %1690 = vmatmul.bf16.gmra.mxu2 %v4730_v56 }
 0x22e   :  { %v526_v27 = vpop.f32.mrf.mxu3 }
 0x22f   :  { %v527_v45 = vadd.f32 %v526_v27, %v3775_v47  ;;  %v4732_v27 = vld [vmem:[#allocation27_spill] sm:$0xff] }
 0x230   :  { %v1375_v29 = vpop.f32.mrf.mxu2  ;;  %v1199_v8 = vpop.f32.mrf.mxu0 }
 0x231   :  { %v4020_v25 = vadd.f32 %v1375_v29, %v1287_v7  ;;  %v1200_v13 = vadd.f32 %v1199_v8, %v3741_v39  ;;  %v1288_v11 = vpop.f32.mrf.mxu1  ;;  %v651_v19 = vmax.f32 %v527_v45, 0.0  ;;  %v4731_v8 = vld [vmem:[#allocation26_spill] sm:$0xff] }
 0x233   :  { %v1289_v54 = vadd.f32 %v1288_v11, %v1200_v13  ;;  %v4733_v11 = vld [vmem:[#allocation28_spill] sm:$0xff] }
 0x236   :  { %v528_v12 = vpop.f32.mrf.mxu3 }
 0x237   :  { %v529_v35 = vadd.f32 %v528_v12, %v3775_v47 }
 0x238   :  { %v1377_v2 = vpop.f32.mrf.mxu2  ;;  %v1202_v36 = vpop.f32.mrf.mxu0 }
 0x239   :  { %v4025_v56 = vadd.f32 %v1377_v2, %v1289_v54  ;;  %v655_v38 = vmax.f32 %v529_v35, 0.0  ;;  %v1203_v55 = vadd.f32 %v1202_v36, %v3741_v39  ;;  %v1291_v7 = vpop.f32.mrf.mxu1  ;;  %v2985_v54 = vld [vmem:[%s4629_s5 + $0x38] sm:$0xff] }
 0x23a   :  { %v2993_v36 = vld [vmem:[%s4629_s5 + $0x78] sm:$0xff]  ;;  %2058 = vmatpush.bf16.msrb.mxu0 %v2985_v54 }
 0x23b   :  { %v1292_v29 = vadd.f32 %v1291_v7, %v1203_v55  ;;  %1428 = vmatmul.bf16.gmra.mxu3 %v3932_v20  ;;  %1517 = vmatmul.bf16.gmra.mxu0 %v4731_v8  ;;  %v4030_v13 = vpack.c.bf16 %v655_v38, %v651_v19  ;;  %v3010_v8 = vld [vmem:[%s4628_s4] sm:$0x3] }
 0x23c   :  { %1606 = vmatmul.bf16.gmra.mxu1 %v4732_v27  ;;  %v4047_v27 = vperm.slane %v3010_v8, 1 }
 0x23d   :  { %1695 = vmatmul.bf16.gmra.mxu2 %v4733_v11  ;;  %2147 = vmatpush.bf16.msrb.mxu1 %v2993_v36 }
 0x23e   :  { %v531_v45 = vpop.f32.mrf.mxu3 }
 0x23f   :  { %v532_v7 = vadd.f32 %v531_v45, %v3775_v47 }
 0x240   :  { %v1380_v12 = vpop.f32.mrf.mxu2  ;;  %v1204_v2 = vpop.f32.mrf.mxu0 }
 0x241   :  { %v4040_v35 = vadd.f32 %v1380_v12, %v1292_v29  ;;  %v1205_v19 = vadd.f32 %v1204_v2, %v3741_v39  ;;  %v1293_v38 = vpop.f32.mrf.mxu1  ;;  %v659_v12 = vmax.f32 %v532_v7, 0.0  ;;  %v4737_v7 = vld [vmem:[#allocation30_spill] sm:$0xff] }
 0x243   :  { %4734 = vst [vmem:[#allocation18_spill] sm:$0xff] %v4040_v35  ;;  %v1294_v55 = vadd.f32 %v1293_v38, %v1205_v19  ;;  %v4736_v38 = vld [vmem:[#allocation29_spill] sm:$0xff] }
 0x246   :  { %v533_v11 = vpop.f32.mrf.mxu3 }
 0x247   :  { %v534_v54 = vadd.f32 %v533_v11, %v3775_v47  ;;  %v2966_v47 = vld [vmem:[#allocation2 + $0x1a4] sm:$0xf] }
 0x248   :  { %v1382_v36 = vpop.f32.mrf.mxu2  ;;  %v1483_v29 = vpop.f32.mrf.mxu0 }
 0x249   :  { %v4050_v20 = vadd.f32 %v1382_v36, %v1294_v55  ;;  %v663_v35 = vmax.f32 %v534_v54, 0.0  ;;  %v1484_v39 = vadd.f32 %v1483_v29, %v4047_v27  ;;  %v1572_v2 = vpop.f32.mrf.mxu1  ;;  %v2770_v55 = vld [vmem:[#allocation2 + $0x1a8] sm:$0xf0] }
 0x24a   :  { %v2773_v8 = vor.u32 %v2966_v47, %v2770_v55 }
 0x24b   :  { %4735 = vst [vmem:[#allocation19_spill] sm:$0xff] %v4050_v20  ;;  %v1573_v19 = vadd.f32 %v1572_v2, %v1484_v39  ;;  %1433 = vmatmul.bf16.gmra.mxu3 %v3946_v32  ;;  %1522 = vmatmul.bf16.gmra.mxu0 %v3746_v59  ;;  %v4055_v45 = vpack.c.bf16 %v663_v35, %v659_v12 }
 0x24c   :  { %1611 = vmatmul.bf16.gmra.mxu1 %v3748_v30  ;;  %1746 = vmatpush.bf16.msrb.mxu3 %v2773_v8 }
 0x24d   :  { %1700 = vmatmul.bf16.gmra.mxu2 %v4736_v38 }
 0x24e   :  { %v1394_v11 = vpop.f32.mrf.mxu3 }
 0x24f   :  { %v1395_v54 = vadd.f32 %v1394_v11, %v4737_v7 }
 0x250   :  { %v1661_v36 = vpop.f32.mrf.mxu2  ;;  %v1485_v39 = vpop.f32.mrf.mxu0 }
 0x251   :  { %v4060_v29 = vadd.f32 %v1661_v36, %v1573_v19  ;;  %v1486_v2 = vadd.f32 %v1485_v39, %v4047_v27  ;;  %v1574_v59 = vpop.f32.mrf.mxu1  ;;  %v1830_v47 = vmax.f32 %v1395_v54, 0.0 }
 0x253   :  { %v1575_v35 = vadd.f32 %v1574_v59, %v1486_v2 }
 0x256   :  { %v1396_v12 = vpop.f32.mrf.mxu3 }
 0x257   :  { %v1397_v30 = vadd.f32 %v1396_v12, %v3782_v62  ;;  %v2984_v62 = vld [vmem:[%s4629_s5 + $0x30] sm:$0xff] }
 0x258   :  { %v1663_v32 = vpop.f32.mrf.mxu2  ;;  %v1488_v20 = vpop.f32.mrf.mxu0  ;;  %2059 = vmatpush.bf16.msrb.mxu0 %v2984_v62 }
 0x259   :  { %v4064_v38 = vadd.f32 %v1663_v32, %v1575_v35  ;;  %v1832_v55 = vmax.f32 %v1397_v30, 0.0  ;;  %v1489_v11 = vadd.f32 %v1488_v20, %v4047_v27  ;;  %v1577_v7 = vpop.f32.mrf.mxu1  ;;  %v2992_v20 = vld [vmem:[%s4629_s5 + $0x70] sm:$0xff] }
 0x25a   :  { %2148 = vmatpush.bf16.msrb.mxu1 %v2992_v20  ;;  %v2762_v20 = vld [vmem:[#allocation2 + $0x198] sm:$0xf0] }
 0x25b   :  { %v4067_v8 = vpack.c.bf16 %v1832_v55, %v1830_v47  ;;  %v1578_v19 = vadd.f32 %v1577_v7, %v1489_v11  ;;  %1438 = vmatmul.bf16.gmra.mxu3 %v3960_v40  ;;  %1527 = vmatmul.bf16.gmra.mxu0 %v3780_v28 }
 0x25c   :  { %1616 = vmatmul.bf16.gmra.mxu1 %v3784_v61 }
 0x25d   :  { %1705 = vmatmul.bf16.gmra.mxu2 %v3786_v57 }
 0x25e   :  { %v1399_v32 = vpop.f32.mrf.mxu3 }
 0x25f   :  { %v1400_v54 = vadd.f32 %v1399_v32, %v3808_v24 }
 0x260   :  { %v1666_v36 = vpop.f32.mrf.mxu2  ;;  %v1490_v28 = vpop.f32.mrf.mxu0 }
 0x261   :  { %v4080_v39 = vadd.f32 %v1666_v36, %v1578_v19  ;;  %v1491_v61 = vadd.f32 %v1490_v28, %v4047_v27  ;;  %v1579_v57 = vpop.f32.mrf.mxu1  ;;  %v1834_v55 = vmax.f32 %v1400_v54, 0.0 }
 0x263   :  { %v1580_v2 = vadd.f32 %v1579_v57, %v1491_v61 }
 0x266   :  { %v1401_v59 = vpop.f32.mrf.mxu3 }
 0x267   :  { %v1402_v35 = vadd.f32 %v1401_v59, %v3815_v6  ;;  %v2964_v6 = vld [vmem:[#allocation2 + $0x194] sm:$0xf] }
 0x268   :  { %v1668_v12 = vpop.f32.mrf.mxu2  ;;  %v1493_v47 = vpop.f32.mrf.mxu0  ;;  %v2765_v32 = vor.u32 %v2964_v6, %v2762_v20  ;;  %v2991_v6 = vld [vmem:[%s4629_s5 + $0x68] sm:$0xff] }
 0x269   :  { %v4084_v30 = vadd.f32 %v1668_v12, %v1580_v2  ;;  %v1836_v11 = vmax.f32 %v1402_v35, 0.0  ;;  %v1494_v7 = vadd.f32 %v1493_v47, %v4047_v27  ;;  %v1582_v24 = vpop.f32.mrf.mxu1  ;;  %2149 = vmatpush.bf16.msrb.mxu1 %v2991_v6 }
 0x26a   :  { %1747 = vmatpush.bf16.msrb.mxu3 %v2765_v32 }
 0x26b   :  { %v1583_v62 = vadd.f32 %v1582_v24, %v1494_v7  ;;  %1443 = vmatmul.bf16.gmra.mxu3 %v3974_v16  ;;  %1532 = vmatmul.bf16.gmra.mxu0 %v3813_v17  ;;  %v4089_v19 = vpack.c.bf16 %v1836_v11, %v1834_v55 }
 0x26c   :  { %1621 = vmatmul.bf16.gmra.mxu1 %v3817_v1 }
 0x26d   :  { %1710 = vmatmul.bf16.gmra.mxu2 %v3819_v52 }
 0x26e   :  { %v1404_v36 = vpop.f32.mrf.mxu3 }
 0x26f   :  { %v1405_v54 = vadd.f32 %v1404_v36, %v3841_v22 }
 0x270   :  { %v1671_v28 = vpop.f32.mrf.mxu2  ;;  %v1495_v57 = vpop.f32.mrf.mxu0 }
 0x271   :  { %v4094_v61 = vadd.f32 %v1671_v28, %v1583_v62  ;;  %v1496_v2 = vadd.f32 %v1495_v57, %v4047_v27  ;;  %v1584_v17 = vpop.f32.mrf.mxu1  ;;  %v1838_v55 = vmax.f32 %v1405_v54, 0.0 }
 0x273   :  { %v1585_v59 = vadd.f32 %v1584_v17, %v1496_v2 }
 0x276   :  { %v1406_v35 = vpop.f32.mrf.mxu3 }
 0x277   :  { %v1407_v1 = vadd.f32 %v1406_v35, %v3848_v48  ;;  %v2983_v48 = vld [vmem:[%s4629_s5 + $0x28] sm:$0xff] }
 0x278   :  { %v1673_v12 = vpop.f32.mrf.mxu2  ;;  %v1498_v47 = vpop.f32.mrf.mxu0  ;;  %2060 = vmatpush.bf16.msrb.mxu0 %v2983_v48 }
 0x279   :  { %v4098_v52 = vadd.f32 %v1673_v12, %v1585_v59  ;;  %v1840_v11 = vmax.f32 %v1407_v1, 0.0  ;;  %v1499_v22 = vadd.f32 %v1498_v47, %v4047_v27  ;;  %v1587_v7 = vpop.f32.mrf.mxu1 }
 0x27b   :  { %v1588_v24 = vadd.f32 %v1587_v7, %v1499_v22  ;;  %1448 = vmatmul.bf16.gmra.mxu3 %v3988_v3  ;;  %1537 = vmatmul.bf16.gmra.mxu0 %v3846_v50  ;;  %v4103_v62 = vpack.c.bf16 %v1840_v11, %v1838_v55  ;;  %v2754_v22 = vld [vmem:[#allocation2 + $0x188] sm:$0xf0] }
 0x27c   :  { %1626 = vmatmul.bf16.gmra.mxu1 %v3850_v43 }
 0x27d   :  { %1715 = vmatmul.bf16.gmra.mxu2 %v3852_v23 }
 0x27e   :  { %v1409_v20 = vpop.f32.mrf.mxu3 }
 0x27f   :  { %v1410_v32 = vadd.f32 %v1409_v20, %v3862_v5 }
 0x280   :  { %v1676_v50 = vpop.f32.mrf.mxu2  ;;  %v1500_v54 = vpop.f32.mrf.mxu0 }
 0x281   :  { %v4114_v36 = vadd.f32 %v1676_v50, %v1588_v24  ;;  %v1501_v43 = vadd.f32 %v1500_v54, %v4047_v27  ;;  %v1589_v23 = vpop.f32.mrf.mxu1  ;;  %v1842_v1 = vmax.f32 %v1410_v32, 0.0 }
 0x283   :  { %v1590_v28 = vadd.f32 %v1589_v23, %v1501_v43 }
 0x286   :  { %v1411_v57 = vpop.f32.mrf.mxu3 }
 0x287   :  { %v1412_v2 = vadd.f32 %v1411_v57, %v3867_v49  ;;  %v2962_v49 = vld [vmem:[#allocation2 + $0x184] sm:$0xf]  ;;  %v4738_v57 = vld [vmem:[#allocation12_spill] sm:$0xff] }
 0x288   :  { %v1678_v17 = vpop.f32.mrf.mxu2  ;;  %v1503_v35 = vpop.f32.mrf.mxu0  ;;  %v2757_v7 = vor.u32 %v2962_v49, %v2754_v22 }
 0x289   :  { %v4118_v59 = vadd.f32 %v1678_v17, %v1590_v28  ;;  %v1844_v12 = vmax.f32 %v1412_v2, 0.0  ;;  %v1504_v47 = vadd.f32 %v1503_v35, %v4047_v27  ;;  %v1592_v5 = vpop.f32.mrf.mxu1  ;;  %v4739_v2 = vld [vmem:[#allocation25_spill] sm:$0xff] }
 0x28a   :  { %1748 = vmatpush.bf16.msrb.mxu3 %v2757_v7  ;;  %v2990_v17 = vld [vmem:[%s4629_s5 + $0x60] sm:$0xff] }
 0x28b   :  { %v4121_v55 = vadd.f32 %v1592_v5, %v1504_v47  ;;  %1453 = vmatmul.bf16.gmra.mxu3 %v4002_v26  ;;  %1542 = vmatmul.bf16.gmra.mxu0 %v3331_v63  ;;  %v4125_v11 = vpack.c.bf16 %v1844_v12, %v1842_v1  ;;  %v2979_v5 = vld [vmem:[%s4629_s5 + $0x8] sm:$0xff] }
 0x28c   :  { %1631 = vmatmul.bf16.gmra.mxu1 %v3481_v0  ;;  %v2982_v0 = vld [vmem:[%s4629_s5 + $0x20] sm:$0xff] }
 0x28d   :  { %1720 = vmatmul.bf16.gmra.mxu2 %v3637_v58  ;;  %2061 = vmatpush.bf16.msrb.mxu0 %v2982_v0 }
 0x28e   :  { %v1414_v24 = vpop.f32.mrf.mxu3  ;;  %2150 = vmatpush.bf16.msrb.mxu1 %v2990_v17 }
 0x28f   :  { %v1415_v48 = vadd.f32 %v1414_v24, %v3877_v14 }
 0x290   :  { %v4130_v6 = vpop.f32.mrf.mxu0 }
 0x291   :  { %v4132_v20 = vpop.f32.mrf.mxu1  ;;  %v1846_v58 = vmax.f32 %v1415_v48, 0.0 }
 0x296   :  { %v1416_v32 = vpop.f32.mrf.mxu3 }
 0x297   :  { %v1417_v63 = vadd.f32 %v1416_v32, %v3882_v37  ;;  %v2981_v37 = vld [vmem:[%s4629_s5 + $0x18] sm:$0xff] }
 0x298   :  { %v1508_v50 = vpop.f32.mrf.mxu0  ;;  %2062 = vmatpush.bf16.msrb.mxu0 %v2981_v37 }
 0x299   :  { %v1848_v54 = vmax.f32 %v1417_v63, 0.0  ;;  %v1509_v43 = vadd.f32 %v1508_v50, %v4047_v27  ;;  %v1597_v23 = vpop.f32.mrf.mxu1 }
 0x29b   :  { %v4139_v14 = vadd.f32 %v1597_v23, %v1509_v43  ;;  %1458 = vmatmul.bf16.gmra.mxu3 %v4016_v33  ;;  %1547 = vmatmul.bf16.gmra.mxu0 %v3363_v9  ;;  %v4146_v28 = vpack.c.bf16 %v1848_v54, %v1846_v58  ;;  %v2980_v9 = vld [vmem:[%s4629_s5 + $0x10] sm:$0xff] }
 0x29c   :  { %1636 = vmatmul.bf16.gmra.mxu1 %v4738_v57  ;;  %2063 = vmatpush.bf16.msrb.mxu0 %v2980_v9 }
 0x29d   :  { %1725 = vmatmul.bf16.gmra.mxu2 %v4739_v2 }
 0x29e   :  { %v1419_v35 = vpop.f32.mrf.mxu3 }
 0x29f   :  { %v1420_v1 = vadd.f32 %v1419_v35, %v3892_v42  ;;  %v2978_v42 = vld [vmem:[%s4629_s5] sm:$0xff] }
 0x2a0   :  { %v4157_v12 = vpop.f32.mrf.mxu0  ;;  %2064 = vmatpush.bf16.msrb.mxu0 %v2979_v5 }
 0x2a1   :  { %v4159_v47 = vpop.f32.mrf.mxu1  ;;  %v1850_v24 = vmax.f32 %v1420_v1, 0.0 }
 0x2a4   :  { %2065 = vmatpush.bf16.msrb.mxu0 %v2978_v42 }
 0x2a6   :  { %v1421_v49 = vpop.f32.mrf.mxu3 }
 0x2a7   :  { %v1422_v22 = vadd.f32 %v1421_v49, %v3897_v53 }
 0x2a8   :  { %v1513_v7 = vpop.f32.mrf.mxu0 }
 0x2a9   :  { %v1852_v48 = vmax.f32 %v1422_v22, 0.0  ;;  %v1514_v32 = vadd.f32 %v1513_v7, %v4047_v27  ;;  %v1602_v63 = vpop.f32.mrf.mxu1 }
 0x2ab   :  { %v4169_v0 = vadd.f32 %v1602_v63, %v1514_v32  ;;  %1463 = vmatmul.bf16.gmra.mxu3 %v4030_v13  ;;  %1552 = vmatmul.bf16.gmra.mxu0 %v3395_v46  ;;  %v4173_v50 = vpack.c.bf16 %v1852_v48, %v1850_v24 }
 0x2ac   :  { %1641 = vmatmul.bf16.gmra.mxu1 %v3559_v34  ;;  %v2989_v34 = vld [vmem:[%s4629_s5 + $0x58] sm:$0xff] }
 0x2ad   :  { %1730 = vmatmul.bf16.gmra.mxu2 %v3715_v15  ;;  %2151 = vmatpush.bf16.msrb.mxu1 %v2989_v34 }
 0x2ae   :  { %v1424_v53 = vpop.f32.mrf.mxu3 }
 0x2af   :  { %v1425_v58 = vadd.f32 %v1424_v53, %v3907_v41 }
 0x2b0   :  { %v4178_v54 = vpop.f32.mrf.mxu0 }
 0x2b1   :  { %v4180_v43 = vpop.f32.mrf.mxu1  ;;  %v1854_v2 = vmax.f32 %v1425_v58, 0.0 }
 0x2b6   :  { %v1426_v23 = vpop.f32.mrf.mxu3 }
 0x2b7   :  { %v1427_v37 = vadd.f32 %v1426_v23, %v3912_v60  ;;  %v4740_v23 = vld [vmem:[#allocation5_spill] sm:$0xff] }
 0x2b8   :  { %v1518_v57 = vpop.f32.mrf.mxu0 }
 0x2b9   :  { %v1856_v17 = vmax.f32 %v1427_v37, 0.0  ;;  %v1519_v46 = vadd.f32 %v1518_v57, %v4047_v27  ;;  %v1607_v35 = vpop.f32.mrf.mxu1 }
 0x2bb   :  { %v4184_v1 = vadd.f32 %v1607_v35, %v1519_v46  ;;  %1468 = vmatmul.bf16.gmra.mxu3 %v4055_v45  ;;  %1557 = vmatmul.bf16.gmra.mxu0 %v3442_v51  ;;  %v4191_v15 = vpack.c.bf16 %v1856_v17, %v1854_v2  ;;  %v4741_v35 = vld [vmem:[#allocation31_spill] sm:$0xff] }
 0x2bc   :  { %1646 = vmatmul.bf16.gmra.mxu1 %v3598_v10 }
 0x2bd   :  { %1735 = vmatmul.bf16.gmra.mxu2 %v3756_v4  ;;  %v3001_v4 = vld [vmem:[%s4631_s7 + $0x38] sm:$0xff] }
 0x2be   :  { %v1429_v41 = vpop.f32.mrf.mxu3  ;;  %2352 = vmatpush.bf16.msrb.mxu2 %v3001_v4 }
 0x2bf   :  { %v1430_v60 = vadd.f32 %v1429_v41, %v3922_v44 }
 0x2c0   :  { %v4196_v9 = vpop.f32.mrf.mxu0 }
 0x2c1   :  { %v4198_v5 = vpop.f32.mrf.mxu1  ;;  %v1858_v42 = vmax.f32 %v1430_v60, 0.0  ;;  %v4742_v60 = vld [vmem:[#allocation7_spill] sm:$0xff] }
 0x2c6   :  { %v1431_v49 = vpop.f32.mrf.mxu3 }
 0x2c7   :  { %v1432_v51 = vadd.f32 %v1431_v49, %v3927_v18 }
 0x2c8   :  { %v1523_v22 = vpop.f32.mrf.mxu0 }
 0x2c9   :  { %v1860_v7 = vmax.f32 %v1432_v51, 0.0  ;;  %v1524_v24 = vadd.f32 %v1523_v22, %v4047_v27  ;;  %v1612_v48 = vpop.f32.mrf.mxu1 }
 0x2cb   :  { %v4202_v10 = vadd.f32 %v1612_v48, %v1524_v24  ;;  %1749 = vmatmul.bf16.vlgmr.msrb.gmra.mxu3 %v3789_v21  ;;  %2066 = vmatmul.bf16.vlgmr.msrb.gmra.mxu0 %v4067_v8  ;;  %v4209_v44 = vpack.c.bf16 %v1860_v7, %v1858_v42  ;;  %v4743_v7 = vld [vmem:[#allocation8_spill] sm:$0xff] }
 0x2ce   :  { %v1434_v18 = vpop.f32.mrf.mxu3 }
 0x2cf   :  { %v1435_v32 = vadd.f32 %v1434_v18, %v3936_v31  ;;  %v2988_v31 = vld [vmem:[%s4629_s5 + $0x50] sm:$0xff] }
 0x2d0   :  { %v4212_v63 = vpop.f32.mrf.mxu0  ;;  %2152 = vmatpush.bf16.msrb.mxu1 %v2988_v31 }
 0x2d1   :  { %v4214_v53 = vpop.f32.mrf.mxu1  ;;  %v1862_v57 = vmax.f32 %v1435_v32, 0.0 }
 0x2d6   :  { %v1436_v58 = vpop.f32.mrf.mxu3 }
 0x2d7   :  { %v1437_v37 = vadd.f32 %v1436_v58, %v4740_v23  ;;  %v4744_v23 = vld [vmem:[#allocation32_spill] sm:$0xff] }
 0x2d8   :  { %v1528_v21 = vpop.f32.mrf.mxu0 }
 0x2d9   :  { %v1864_v8 = vmax.f32 %v1437_v37, 0.0  ;;  %v1529_v2 = vadd.f32 %v1528_v21, %v4047_v27  ;;  %v1617_v17 = vpop.f32.mrf.mxu1  ;;  %v3000_v37 = vld [vmem:[%s4631_s7 + $0x30] sm:$0xff] }
 0x2da   :  { %2353 = vmatpush.bf16.msrb.mxu2 %v3000_v37 }
 0x2db   :  { %v4218_v46 = vadd.f32 %v1617_v17, %v1529_v2  ;;  %1754 = vmatmul.bf16.gmra.mxu3 %v4741_v35  ;;  %2071 = vmatmul.bf16.gmra.mxu0 %v4089_v19  ;;  %v4225_v34 = vpack.c.bf16 %v1864_v8, %v1862_v57  ;;  %v4745_v8 = vld [vmem:[#allocation9_spill] sm:$0xff] }
 0x2de   :  { %v1439_v41 = vpop.f32.mrf.mxu3 }
 0x2df   :  { %v1440_v49 = vadd.f32 %v1439_v41, %v4742_v60  ;;  %v4746_v41 = vld [vmem:[#allocation10_spill] sm:$0xff] }
 0x2e0   :  { %v4228_v51 = vpop.f32.mrf.mxu0 }
 0x2e1   :  { %v4230_v22 = vpop.f32.mrf.mxu1  ;;  %v1866_v4 = vmax.f32 %v1440_v49, 0.0 }
 0x2e6   :  { %v1441_v42 = vpop.f32.mrf.mxu3 }
 0x2e7   :  { %v1442_v24 = vadd.f32 %v1441_v42, %v4743_v7 }
 0x2e8   :  { %v1533_v48 = vpop.f32.mrf.mxu0 }
 0x2e9   :  { %v1868_v19 = vmax.f32 %v1442_v24, 0.0  ;;  %v1534_v18 = vadd.f32 %v1533_v48, %v4047_v27  ;;  %v1622_v32 = vpop.f32.mrf.mxu1 }
 0x2eb   :  { %v4234_v58 = vadd.f32 %v1622_v32, %v1534_v18  ;;  %1759 = vmatmul.bf16.gmra.mxu3 %v4744_v23  ;;  %2076 = vmatmul.bf16.gmra.mxu0 %v4103_v62  ;;  %v4241_v21 = vpack.c.bf16 %v1868_v19, %v1866_v4  ;;  %v4748_v4 = vld [vmem:[#allocation33_spill] sm:$0xff]  ;;  %v2987_v19 = vld [vmem:[%s4629_s5 + $0x48] sm:$0xff]  ;;  %v4749_v23 = vld [vmem:[#allocation11_spill] sm:$0xff] }
 0x2ec   :  { %2153 = vmatpush.bf16.msrb.mxu1 %v2987_v19 }
 0x2ee   :  { %v1444_v57 = vpop.f32.mrf.mxu3 }
 0x2ef   :  { %v1445_v2 = vadd.f32 %v1444_v57, %v4745_v8 }
 0x2f0   :  { %v4244_v17 = vpop.f32.mrf.mxu0 }
 0x2f1   :  { %v4246_v35 = vpop.f32.mrf.mxu1  ;;  %v1870_v42 = vmax.f32 %v1445_v2, 0.0 }
 0x2f6   :  { %v1446_v31 = vpop.f32.mrf.mxu3 }
 0x2f7   :  { %v1447_v60 = vadd.f32 %v1446_v31, %v4746_v41  ;;  %v4751_v31 = vld [vmem:[#allocation13_spill] sm:$0xff] }
 0x2f8   :  { %v1538_v49 = vpop.f32.mrf.mxu0 }
 0x2f9   :  { %v1872_v62 = vmax.f32 %v1447_v60, 0.0  ;;  %v1539_v7 = vadd.f32 %v1538_v49, %v4047_v27  ;;  %v1627_v24 = vpop.f32.mrf.mxu1 }
 0x2fb   :  { %v4250_v48 = vadd.f32 %v1627_v24, %v1539_v7  ;;  %1764 = vmatmul.bf16.gmra.mxu3 %v4748_v4  ;;  %2081 = vmatmul.bf16.gmra.mxu0 %v4125_v11  ;;  %v4257_v18 = vpack.c.bf16 %v1872_v62, %v1870_v42  ;;  %v4753_v42 = vld [vmem:[#allocation34_spill] sm:$0xff] }
 0x2fc   :  { %v2999_v62 = vld [vmem:[%s4631_s7 + $0x28] sm:$0xff] }
 0x2fd   :  { %4747 = vst [vmem:[#allocation20_spill] sm:$0xff] %v4250_v48  ;;  %2354 = vmatpush.bf16.msrb.mxu2 %v2999_v62 }
 0x2fe   :  { %v1449_v32 = vpop.f32.mrf.mxu3 }
 0x2ff   :  { %v1450_v37 = vadd.f32 %v1449_v32, %v4749_v23  ;;  %v4754_v23 = vld [vmem:[#allocation14_spill] sm:$0xff] }
 0x300   :  { %v4260_v57 = vpop.f32.mrf.mxu0 }
 0x301   :  { %v4262_v8 = vpop.f32.mrf.mxu1  ;;  %v1874_v49 = vmax.f32 %v1450_v37, 0.0 }
 0x302   :  { %4750 = vst [vmem:[#allocation21_spill] sm:$0xff] %v4262_v8 }
 0x306   :  { %v1451_v2 = vpop.f32.mrf.mxu3 }
 0x307   :  { %v1452_v41 = vadd.f32 %v1451_v2, %v4751_v31 }
 0x308   :  { %v1543_v60 = vpop.f32.mrf.mxu0 }
 0x309   :  { %v1876_v11 = vmax.f32 %v1452_v41, 0.0  ;;  %v1544_v7 = vadd.f32 %v1543_v60, %v4047_v27  ;;  %v1632_v24 = vpop.f32.mrf.mxu1  ;;  %v4756_v60 = vld [vmem:[#allocation15_spill] sm:$0xff] }
 0x30b   :  { %v4266_v4 = vadd.f32 %v1632_v24, %v1544_v7  ;;  %1769 = vmatmul.bf16.gmra.mxu3 %v4753_v42  ;;  %2086 = vmatmul.bf16.gmra.mxu0 %v4146_v28  ;;  %v4273_v19 = vpack.c.bf16 %v1876_v11, %v1874_v49  ;;  %v4758_v49 = vld [vmem:[#allocation35_spill] sm:$0xff]  ;;  %v2986_v11 = vld [vmem:[%s4629_s5 + $0x40] sm:$0xff] }
 0x30c   :  { %2154 = vmatpush.bf16.msrb.mxu1 %v2986_v11  ;;  %v4763_v11 = vld [vmem:[#allocation36_spill] sm:$0xff] }
 0x30d   :  { %4752 = vst [vmem:[#allocation22_spill] sm:$0xff] %v4266_v4 }
 0x30e   :  { %v1454_v32 = vpop.f32.mrf.mxu3 }
 0x30f   :  { %v1455_v37 = vadd.f32 %v1454_v32, %v4754_v23  ;;  %v4759_v23 = vld [vmem:[#allocation16_spill] sm:$0xff] }
 0x310   :  { %v4276_v2 = vpop.f32.mrf.mxu0 }
 0x311   :  { %v4278_v31 = vpop.f32.mrf.mxu1  ;;  %v1878_v42 = vmax.f32 %v1455_v37, 0.0 }
 0x312   :  { %4755 = vst [vmem:[#allocation23_spill] sm:$0xff] %v4278_v31 }
 0x316   :  { %v1456_v41 = vpop.f32.mrf.mxu3 }
 0x317   :  { %v1457_v7 = vadd.f32 %v1456_v41, %v4756_v60 }
 0x318   :  { %v1548_v24 = vpop.f32.mrf.mxu0 }
 0x319   :  { %v1880_v28 = vmax.f32 %v1457_v7, 0.0  ;;  %v1549_v4 = vadd.f32 %v1548_v24, %v4047_v27  ;;  %v1637_v8 = vpop.f32.mrf.mxu1 }
 0x31b   :  { %v4282_v48 = vadd.f32 %v1637_v8, %v1549_v4  ;;  %1774 = vmatmul.bf16.gmra.mxu3 %v4758_v49  ;;  %2091 = vmatmul.bf16.gmra.mxu0 %v4173_v50  ;;  %v4289_v62 = vpack.c.bf16 %v1880_v28, %v1878_v42  ;;  %v4761_v4 = vld [vmem:[#allocation17_spill] sm:$0xff] }
 0x31c   :  { %v2998_v42 = vld [vmem:[%s4631_s7 + $0x20] sm:$0xff] }
 0x31d   :  { %4757 = vst [vmem:[#allocation24_spill] sm:$0xff] %v4282_v48  ;;  %2355 = vmatpush.bf16.msrb.mxu2 %v2998_v42  ;;  %v4767_v42 = vld [vmem:[#allocation18_spill] sm:$0xff] }
 0x31e   :  { %v1459_v32 = vpop.f32.mrf.mxu3 }
 0x31f   :  { %v1460_v37 = vadd.f32 %v1459_v32, %v4759_v23 }
 0x320   :  { %v4292_v41 = vpop.f32.mrf.mxu0 }
 0x321   :  { %v4294_v60 = vpop.f32.mrf.mxu1  ;;  %v1882_v49 = vmax.f32 %v1460_v37, 0.0 }
 0x322   :  { %4760 = vst [vmem:[#allocation26_spill] sm:$0xff] %v4294_v60 }
 0x326   :  { %v1461_v8 = vpop.f32.mrf.mxu3 }
 0x327   :  { %v1462_v7 = vadd.f32 %v1461_v8, %v4761_v4 }
 0x328   :  { %v1553_v24 = vpop.f32.mrf.mxu0 }
 0x329   :  { %v1884_v50 = vmax.f32 %v1462_v7, 0.0  ;;  %v1554_v48 = vadd.f32 %v1553_v24, %v4047_v27  ;;  %v1642_v31 = vpop.f32.mrf.mxu1 }
 0x32b   :  { %v4301_v28 = vadd.f32 %v1642_v31, %v1554_v48  ;;  %1779 = vmatmul.bf16.gmra.mxu3 %v4763_v11  ;;  %2096 = vmatmul.bf16.gmra.mxu0 %v4191_v15  ;;  %v4305_v32 = vpack.c.bf16 %v1884_v50, %v1882_v49  ;;  %v4766_v49 = vld [vmem:[#allocation37_spill] sm:$0xff] }
 0x32d   :  { %4762 = vst [vmem:[#allocation27_spill] sm:$0xff] %v4301_v28 }
 0x32e   :  { %v1464_v23 = vpop.f32.mrf.mxu3 }
 0x32f   :  { %v1465_v37 = vadd.f32 %v1464_v23, %v4020_v25 }
 0x330   :  { %v4308_v8 = vpop.f32.mrf.mxu0 }
 0x331   :  { %4764 = vst [vmem:[#allocation28_spill] sm:$0xff] %v4308_v8  ;;  %v4310_v4 = vpop.f32.mrf.mxu1  ;;  %v1886_v48 = vmax.f32 %v1465_v37, 0.0  ;;  %v4768_v8 = vld [vmem:[#allocation19_spill] sm:$0xff] }
 0x332   :  { %4765 = vst [vmem:[#allocation29_spill] sm:$0xff] %v4310_v4 }
 0x336   :  { %v1466_v7 = vpop.f32.mrf.mxu3 }
 0x337   :  { %v1467_v24 = vadd.f32 %v1466_v7, %v4025_v56 }
 0x338   :  { %v1558_v60 = vpop.f32.mrf.mxu0 }
 0x339   :  { %v1888_v31 = vmax.f32 %v1467_v24, 0.0  ;;  %v1559_v11 = vadd.f32 %v1558_v60, %v4047_v27  ;;  %v1647_v28 = vpop.f32.mrf.mxu1  ;;  %v2997_v60 = vld [vmem:[%s4631_s7 + $0x18] sm:$0xff] }
 0x33a   :  { %2356 = vmatpush.bf16.msrb.mxu2 %v2997_v60 }
 0x33b   :  { %v4314_v15 = vadd.f32 %v1647_v28, %v1559_v11  ;;  %1784 = vmatmul.bf16.gmra.mxu3 %v4766_v49  ;;  %2101 = vmatmul.bf16.gmra.mxu0 %v4209_v44  ;;  %v4318_v25 = vpack.c.bf16 %v1888_v31, %v1886_v48  ;;  %v4769_v28 = vld [vmem:[#allocation6_spill] sm:$0xff]  ;;  %v1681_v49 = vpop.f32.mrf.mxu2 }
 0x33e   :  { %v1469_v50 = vpop.f32.mrf.mxu3 }
 0x33f   :  { %v1470_v23 = vadd.f32 %v1469_v50, %v4767_v42 }
 0x340   :  { %v4338_v60 = vpop.f32.mrf.mxu0 }
 0x341   :  { %v1890_v7 = vmax.f32 %v1470_v23, 0.0 }
 0x346   :  { %v1471_v4 = vpop.f32.mrf.mxu3 }
 0x347   :  { %v1472_v56 = vadd.f32 %v1471_v4, %v4768_v8 }
 0x349   :  { %v1892_v37 = vmax.f32 %v1472_v56, 0.0 }
 0x34b   :  { %1789 = vmatmul.bf16.gmra.mxu3 %v4769_v28  ;;  %2106 = vmatmul.bf16.gmra.mxu0 %v4225_v34  ;;  %v4327_v24 = vpack.c.bf16 %v1892_v37, %v1890_v7  ;;  %v1683_v34 = vpop.f32.mrf.mxu2  ;;  %v4342_v28 = vpop.f32.mrf.mxu0 }
 0x34e   :  { %v1750_v44 = vpop.f32.mrf.mxu3 }
 0x34f   :  { %v1751_v48 = vadd.f32 %v1750_v44, %v4060_v29 }
 0x351   :  { %v1831_v8 = vmax.f32 %v1751_v48, 0.0 }
 0x356   :  { %v1752_v31 = vpop.f32.mrf.mxu3 }
 0x357   :  { %v1753_v11 = vadd.f32 %v1752_v31, %v4064_v38  ;;  %v2996_v38 = vld [vmem:[%s4631_s7 + $0x10] sm:$0xff] }
 0x358   :  { %2357 = vmatpush.bf16.msrb.mxu2 %v2996_v38 }
 0x359   :  { %v1833_v4 = vmax.f32 %v1753_v11, 0.0 }
 0x35b   :  { %v1895_v50 = vpack.c.bf16 %v1833_v4, %v1831_v8  ;;  %1794 = vmatmul.bf16.gmra.mxu3 %v3960_v40  ;;  %2111 = vmatmul.bf16.gmra.mxu0 %v4241_v21  ;;  %v4348_v4 = vpop.f32.mrf.mxu0 }
 0x35d   :  { %2155 = vmatmul.bf16.vlgmr.msrb.gmra.mxu1 %v1895_v50 }
 0x35e   :  { %v1755_v42 = vpop.f32.mrf.mxu3 }
 0x35f   :  { %v1756_v23 = vadd.f32 %v1755_v42, %v4080_v39  ;;  %v1686_v39 = vpop.f32.mrf.mxu2 }
 0x361   :  { %v1835_v29 = vmax.f32 %v1756_v23, 0.0 }
 0x366   :  { %v1757_v56 = vpop.f32.mrf.mxu3 }
 0x367   :  { %v1758_v7 = vadd.f32 %v1757_v56, %v4084_v30  ;;  %v1688_v31 = vpop.f32.mrf.mxu2  ;;  %v4352_v56 = vpop.f32.mrf.mxu0 }
 0x369   :  { %v1837_v37 = vmax.f32 %v1758_v7, 0.0 }
 0x36b   :  { %1799 = vmatmul.bf16.gmra.mxu3 %v3974_v16  ;;  %2116 = vmatmul.bf16.gmra.mxu0 %v4257_v18  ;;  %v1897_v40 = vpack.c.bf16 %v1837_v37, %v1835_v29  ;;  %v1682_v37 = vadd.f32 %v1681_v49, %v4121_v55  ;;  %v1687_v49 = vadd.f32 %v1686_v39, %v4139_v14  ;;  %v2994_v14 = vld [vmem:[%s4631_s7] sm:$0xff] }
 0x36d   :  { %2160 = vmatmul.bf16.gmra.mxu1 %v1897_v40 }
 0x36e   :  { %v1760_v21 = vpop.f32.mrf.mxu3 }
 0x36f   :  { %v1761_v30 = vadd.f32 %v1760_v21, %v4094_v61  ;;  %v1691_v50 = vpop.f32.mrf.mxu2  ;;  %v4363_v40 = vpop.f32.mrf.mxu0 }
 0x371   :  { %v1839_v11 = vmax.f32 %v1761_v30, 0.0 }
 0x376   :  { %v1762_v44 = vpop.f32.mrf.mxu3 }
 0x377   :  { %v1763_v48 = vadd.f32 %v1762_v44, %v4098_v52  ;;  %v1693_v29 = vpop.f32.mrf.mxu2 }
 0x379   :  { %v1841_v8 = vmax.f32 %v1763_v48, 0.0 }
 0x37b   :  { %1804 = vmatmul.bf16.gmra.mxu3 %v3988_v3  ;;  %2121 = vmatmul.bf16.gmra.mxu0 %v4273_v19  ;;  %v1899_v16 = vpack.c.bf16 %v1841_v8, %v1839_v11  ;;  %v2995_v19 = vld [vmem:[%s4631_s7 + $0x8] sm:$0xff] }
 0x37c   :  { %2358 = vmatpush.bf16.msrb.mxu2 %v2995_v19 }
 0x37d   :  { %2165 = vmatmul.bf16.gmra.mxu1 %v1899_v16  ;;  %v4367_v16 = vpop.f32.mrf.mxu0 }
 0x37e   :  { %v1765_v18 = vpop.f32.mrf.mxu3 }
 0x37f   :  { %v1766_v42 = vadd.f32 %v1765_v18, %v4114_v36  ;;  %v1696_v30 = vpop.f32.mrf.mxu2 }
 0x380   :  { %2359 = vmatpush.bf16.msrb.mxu2 %v2994_v14 }
 0x381   :  { %v1843_v52 = vmax.f32 %v1766_v42, 0.0 }
 0x386   :  { %v1767_v23 = vpop.f32.mrf.mxu3 }
 0x387   :  { %v1768_v61 = vadd.f32 %v1767_v23, %v4118_v59  ;;  %v1506_v59 = vadd.f32 %v4130_v6, %v4047_v27  ;;  %v1511_v6 = vadd.f32 %v4157_v12, %v4047_v27 }
 0x389   :  { %v1845_v7 = vmax.f32 %v1768_v61, 0.0  ;;  %v1595_v38 = vadd.f32 %v4132_v20, %v1506_v59  ;;  %v1698_v20 = vpop.f32.mrf.mxu2  ;;  %v4373_v61 = vpop.f32.mrf.mxu0 }
 0x38b   :  { %1809 = vmatmul.bf16.gmra.mxu3 %v4002_v26  ;;  %2126 = vmatmul.bf16.gmra.mxu0 %v4289_v62  ;;  %v1901_v3 = vpack.c.bf16 %v1845_v7, %v1843_v52  ;;  %v1684_v26 = vadd.f32 %v1683_v34, %v1595_v38  ;;  %v1600_v34 = vadd.f32 %v4159_v47, %v1511_v6 }
 0x38c   :  { %v1516_v47 = vadd.f32 %v4178_v54, %v4047_v27 }
 0x38d   :  { %2170 = vmatmul.bf16.gmra.mxu1 %v1901_v3  ;;  %v1689_v18 = vadd.f32 %v1688_v31, %v1600_v34  ;;  %v1692_v31 = vadd.f32 %v1691_v50, %v4169_v0  ;;  %v1521_v0 = vadd.f32 %v4196_v9, %v4047_v27  ;;  %v1697_v50 = vadd.f32 %v1696_v30, %v4184_v1 }
 0x38e   :  { %v1770_v36 = vpop.f32.mrf.mxu3  ;;  %v1605_v19 = vadd.f32 %v4180_v43, %v1516_v47  ;;  %v1526_v34 = vadd.f32 %v4212_v63, %v4047_v27 }
 0x38f   :  { %v1771_v62 = vadd.f32 %v1770_v36, %v1682_v37 }
 0x390   :  { %v1694_v36 = vadd.f32 %v1693_v29, %v1605_v19  ;;  %v1610_v29 = vadd.f32 %v4198_v5, %v1521_v0  ;;  %v1615_v1 = vadd.f32 %v4214_v53, %v1526_v34 }
 0x391   :  { %v1847_v48 = vmax.f32 %v1771_v62, 0.0  ;;  %v1701_v7 = vpop.f32.mrf.mxu2  ;;  %v4382_v39 = vpop.f32.mrf.mxu0 }
 0x392   :  { %v1702_v9 = vadd.f32 %v1701_v7, %v4202_v10  ;;  %v1531_v10 = vadd.f32 %v4228_v51, %v4047_v27 }
 0x396   :  { %v1772_v21 = vpop.f32.mrf.mxu3 }
 0x397   :  { %v1773_v44 = vadd.f32 %v1772_v21, %v1684_v26 }
 0x399   :  { %v1849_v11 = vmax.f32 %v1773_v44, 0.0  ;;  %v4386_v62 = vpop.f32.mrf.mxu0  ;;  %v1699_v44 = vadd.f32 %v1698_v20, %v1610_v29 }
 0x39b   :  { %v1903_v8 = vpack.c.bf16 %v1849_v11, %v1847_v48  ;;  %1814 = vmatmul.bf16.gmra.mxu3 %v4016_v33  ;;  %2131 = vmatmul.bf16.gmra.mxu0 %v4305_v32 }
 0x39d   :  { %2175 = vmatmul.bf16.gmra.mxu1 %v1903_v8 }
 0x39e   :  { %v1775_v55 = vpop.f32.mrf.mxu3 }
 0x39f   :  { %v1776_v42 = vadd.f32 %v1775_v55, %v1687_v49 }
 0x3a1   :  { %v1851_v52 = vmax.f32 %v1776_v42, 0.0  ;;  %v4413_v0 = vpop.f32.mrf.mxu0 }
 0x3a6   :  { %v1777_v23 = vpop.f32.mrf.mxu3 }
 0x3a7   :  { %v1778_v33 = vadd.f32 %v1777_v23, %v1689_v18  ;;  %v4396_v18 = vpop.f32.mrf.mxu1 }
 0x3a9   :  { %v1853_v32 = vmax.f32 %v1778_v33, 0.0 }
 0x3ab   :  { %v1905_v3 = vpack.c.bf16 %v1853_v32, %v1851_v52  ;;  %1819 = vmatmul.bf16.gmra.mxu3 %v4030_v13  ;;  %2136 = vmatmul.bf16.gmra.mxu0 %v4318_v25  ;;  %v1703_v13 = vpop.f32.mrf.mxu2 }
 0x3ac   :  { %v1704_v30 = vadd.f32 %v1703_v13, %v1615_v1 }
 0x3ad   :  { %2180 = vmatmul.bf16.gmra.mxu1 %v1905_v3  ;;  %v4403_v3 = vld [vmem:[%s4630_s6] ss:$0 sm:$0xff] }
 0x3ae   :  { %v1780_v12 = vpop.f32.mrf.mxu3  ;;  %v2068_v53 = vadd.f32 %v4403_v3, %v4342_v28  ;;  %v2070_v7 = vadd.f32 %v4403_v3, %v4348_v4 }
 0x3af   :  { %v1781_v59 = vadd.f32 %v1780_v12, %v1692_v31 }
 0x3b1   :  { %v1855_v38 = vmax.f32 %v1781_v59, 0.0 }
 0x3b3   :  { %v1706_v43 = vpop.f32.mrf.mxu2 }
 0x3b4   :  { %v1707_v19 = vadd.f32 %v1706_v43, %v4218_v46  ;;  %v2073_v43 = vadd.f32 %v4403_v3, %v4352_v56 }
 0x3b6   :  { %v1782_v25 = vpop.f32.mrf.mxu3 }
 0x3b7   :  { %v1783_v37 = vadd.f32 %v1782_v25, %v1694_v36  ;;  %v1620_v36 = vadd.f32 %v4230_v22, %v1531_v10  ;;  %v1536_v22 = vadd.f32 %v4244_v17, %v4047_v27 }
 0x3b9   :  { %v1857_v26 = vmax.f32 %v1783_v37, 0.0 }
 0x3bb   :  { %v1907_v21 = vpack.c.bf16 %v1857_v26, %v1855_v38  ;;  %1824 = vmatmul.bf16.gmra.mxu3 %v4055_v45  ;;  %2141 = vmatmul.bf16.gmra.mxu0 %v4327_v24  ;;  %v1708_v55 = vpop.f32.mrf.mxu2 }
 0x3bc   :  { %v1709_v59 = vadd.f32 %v1708_v55, %v1620_v36 }
 0x3bd   :  { %2185 = vmatmul.bf16.gmra.mxu1 %v1907_v21 }
 0x3be   :  { %v1785_v54 = vpop.f32.mrf.mxu3 }
 0x3bf   :  { %v1786_v48 = vadd.f32 %v1785_v54, %v1697_v50 }
 0x3c1   :  { %v1859_v6 = vmax.f32 %v1786_v48, 0.0  ;;  %v2075_v48 = vadd.f32 %v4403_v3, %v4363_v40 }
 0x3c3   :  { %v1711_v5 = vpop.f32.mrf.mxu2 }
 0x3c6   :  { %v1787_v11 = vpop.f32.mrf.mxu3 }
 0x3c7   :  { %v1788_v8 = vadd.f32 %v1787_v11, %v1699_v44 }
 0x3c9   :  { %v1861_v49 = vmax.f32 %v1788_v8, 0.0  ;;  %v4421_v8 = vpop.f32.mrf.mxu0 }
 0x3cb   :  { %v1909_v45 = vpack.c.bf16 %v1861_v49, %v1859_v6  ;;  %v1713_v14 = vpop.f32.mrf.mxu2  ;;  %v1712_v6 = vadd.f32 %v1711_v5, %v4234_v58  ;;  %v1625_v49 = vadd.f32 %v4246_v35, %v1536_v22  ;;  %v1541_v35 = vadd.f32 %v4260_v57, %v4047_v27 }
 0x3cc   :  { %v2078_v5 = vadd.f32 %v4403_v3, %v4367_v16 }
 0x3cd   :  { %2190 = vmatmul.bf16.gmra.mxu1 %v1909_v45 }
 0x3ce   :  { %v1790_v24 = vpop.f32.mrf.mxu3 }
 0x3cf   :  { %v1791_v20 = vadd.f32 %v1790_v24, %v1702_v9  ;;  %v1714_v24 = vadd.f32 %v1713_v14, %v1625_v49 }
 0x3d1   :  { %v1863_v33 = vmax.f32 %v1791_v20, 0.0 }
 0x3d3   :  { %v1716_v21 = vpop.f32.mrf.mxu2 }
 0x3d6   :  { %v1792_v42 = vpop.f32.mrf.mxu3 }
 0x3d7   :  { %v1793_v23 = vadd.f32 %v1792_v42, %v1704_v30 }
 0x3d9   :  { %v1865_v52 = vmax.f32 %v1793_v23, 0.0 }
 0x3da   :  { %v2156_v32 = vpop.f32.mrf.mxu1 }
 0x3db   :  { %v1911_v63 = vpack.c.bf16 %v1865_v52, %v1863_v33  ;;  %v2157_v47 = vadd.f32 %v2156_v32, %v2068_v53  ;;  %v1718_v44 = vpop.f32.mrf.mxu2  ;;  %v4425_v52 = vpop.f32.mrf.mxu0  ;;  %v2080_v32 = vadd.f32 %v4403_v3, %v4373_v61  ;;  %v4771_v53 = vld [vmem:[#allocation21_spill] sm:$0xff] }
 0x3dd   :  { %2195 = vmatmul.bf16.gmra.mxu1 %v1911_v63  ;;  %v2236_v25 = vmax.f32 %v2157_v47, 0.0 }
 0x3de   :  { %v1795_v12 = vpop.f32.mrf.mxu3 }
 0x3df   :  { %v1796_v37 = vadd.f32 %v1795_v12, %v1707_v19  ;;  %v4770_v12 = vld [vmem:[#allocation20_spill] sm:$0xff] }
 0x3e0   :  { %v1717_v10 = vadd.f32 %v1716_v21, %v4770_v12 }
 0x3e1   :  { %v1867_v28 = vmax.f32 %v1796_v37, 0.0 }
 0x3e2   :  { %v2158_v31 = vpop.f32.mrf.mxu1 }
 0x3e3   :  { %v2159_v13 = vadd.f32 %v2158_v31, %v2070_v7  ;;  %v1721_v23 = vpop.f32.mrf.mxu2  ;;  %v1630_v7 = vadd.f32 %v4771_v53, %v1541_v35  ;;  %v4774_v35 = vld [vmem:[#allocation24_spill] sm:$0xff] }
 0x3e5   :  { %v2237_v38 = vmax.f32 %v2159_v13, 0.0  ;;  %v1719_v31 = vadd.f32 %v1718_v44, %v1630_v7 }
 0x3e6   :  { %v1797_v26 = vpop.f32.mrf.mxu3 }
 0x3e7   :  { %v2268_v51 = vpack.c.bf16 %v2237_v38, %v2236_v25  ;;  %v1798_v54 = vadd.f32 %v1797_v26, %v1709_v59  ;;  %v4435_v25 = vpop.f32.mrf.mxu0 }
 0x3e9   :  { %v1869_v50 = vmax.f32 %v1798_v54, 0.0  ;;  %2360 = vmatmul.bf16.vlgmr.msrb.gmra.mxu2 %v2268_v51  ;;  %v1546_v54 = vadd.f32 %v4276_v2, %v4047_v27 }
 0x3ea   :  { %v2161_v4 = vpop.f32.mrf.mxu1 }
 0x3eb   :  { %v1913_v29 = vpack.c.bf16 %v1869_v50, %v1867_v28  ;;  %v2162_v11 = vadd.f32 %v2161_v4, %v2073_v43  ;;  %v1723_v19 = vpop.f32.mrf.mxu2  ;;  %v2083_v50 = vadd.f32 %v4403_v3, %v4382_v39  ;;  %v4772_v43 = vld [vmem:[#allocation22_spill] sm:$0xff] }
 0x3ec   :  { %v1722_v44 = vadd.f32 %v1721_v23, %v4772_v43  ;;  %v2090_v23 = vadd.f32 %v4403_v3, %v4421_v8 }
 0x3ed   :  { %2200 = vmatmul.bf16.gmra.mxu1 %v1913_v29  ;;  %v2238_v34 = vmax.f32 %v2162_v11, 0.0  ;;  %v2085_v29 = vadd.f32 %v4403_v3, %v4386_v62 }
 0x3ee   :  { %v1800_v46 = vpop.f32.mrf.mxu3 }
 0x3ef   :  { %v1801_v9 = vadd.f32 %v1800_v46, %v1712_v6  ;;  %v4441_v4 = vpop.f32.mrf.mxu0 }
 0x3f1   :  { %v1871_v20 = vmax.f32 %v1801_v9, 0.0 }
 0x3f2   :  { %v2163_v55 = vpop.f32.mrf.mxu1 }
 0x3f3   :  { %v2164_v45 = vadd.f32 %v2163_v55, %v2075_v48  ;;  %v1726_v28 = vpop.f32.mrf.mxu2  ;;  %v4773_v48 = vld [vmem:[#allocation23_spill] sm:$0xff] }
 0x3f4   :  { %v1635_v11 = vadd.f32 %v4773_v48, %v1546_v54 }
 0x3f5   :  { %v2239_v17 = vmax.f32 %v2164_v45, 0.0 }
 0x3f6   :  { %v1802_v1 = vpop.f32.mrf.mxu3  ;;  %v1724_v6 = vadd.f32 %v1723_v19, %v1635_v11 }
 0x3f7   :  { %v1803_v30 = vadd.f32 %v1802_v1, %v1714_v24  ;;  %v2269_v56 = vpack.c.bf16 %v2239_v17, %v2238_v34 }
 0x3f9   :  { %v1873_v42 = vmax.f32 %v1803_v30, 0.0  ;;  %2365 = vmatmul.bf16.gmra.mxu2 %v2269_v56  ;;  %v2099_v30 = vpop.f32.mrf.mxu0 }
 0x3fa   :  { %v2166_v40 = vpop.f32.mrf.mxu1 }
 0x3fb   :  { %v1915_v33 = vpack.c.bf16 %v1873_v42, %v1871_v20  ;;  %v2167_v63 = vadd.f32 %v2166_v40, %v2078_v5  ;;  %v1728_v39 = vpop.f32.mrf.mxu2  ;;  %v1551_v42 = vadd.f32 %v4292_v41, %v4047_v27  ;;  %v2088_v40 = vadd.f32 %v4403_v3, %v4413_v0 }
 0x3fc   :  { %v1727_v5 = vadd.f32 %v1726_v28, %v4774_v35  ;;  %v4777_v28 = vld [vmem:[#allocation27_spill] sm:$0xff] }
 0x3fd   :  { %2205 = vmatmul.bf16.gmra.mxu1 %v1915_v33  ;;  %v2240_v36 = vmax.f32 %v2167_v63, 0.0 }
 0x3fe   :  { %v1805_v58 = vpop.f32.mrf.mxu3 }
 0x3ff   :  { %v1806_v13 = vadd.f32 %v1805_v58, %v1717_v10 }
 0x401   :  { %v1875_v38 = vmax.f32 %v1806_v13, 0.0  ;;  %v4455_v10 = vpop.f32.mrf.mxu0 }
 0x402   :  { %v2168_v14 = vpop.f32.mrf.mxu1 }
 0x403   :  { %v2169_v47 = vadd.f32 %v2168_v14, %v2080_v32  ;;  %v4775_v32 = vld [vmem:[#allocation26_spill] sm:$0xff]  ;;  %v1731_v14 = vpop.f32.mrf.mxu2 }
 0x404   :  { %v1640_v63 = vadd.f32 %v4775_v32, %v1551_v42 }
 0x405   :  { %v2241_v59 = vmax.f32 %v2169_v47, 0.0 }
 0x406   :  { %v1807_v57 = vpop.f32.mrf.mxu3  ;;  %v1729_v53 = vadd.f32 %v1728_v39, %v1640_v63  ;;  %v1561_v39 = vadd.f32 %v4338_v60, %v4047_v27 }
 0x407   :  { %v1808_v37 = vadd.f32 %v1807_v57, %v1719_v31  ;;  %v2270_v16 = vpack.c.bf16 %v2241_v59, %v2240_v36 }
 0x409   :  { %v1877_v26 = vmax.f32 %v1808_v37, 0.0  ;;  %2370 = vmatmul.bf16.gmra.mxu2 %v2270_v16  ;;  %v2104_v37 = vpop.f32.mrf.mxu0 }
 0x40a   :  { %v2171_v61 = vpop.f32.mrf.mxu1 }
 0x40b   :  { %v1917_v51 = vpack.c.bf16 %v1877_v26, %v1875_v38  ;;  %v2172_v46 = vadd.f32 %v2171_v61, %v2083_v50  ;;  %v1733_v57 = vpop.f32.mrf.mxu2  ;;  %v4776_v38 = vld [vmem:[#allocation28_spill] sm:$0xff]  ;;  %v2093_v61 = vadd.f32 %v4403_v3, %v4425_v52  ;;  %v1732_v50 = vadd.f32 %v1731_v14, %v4777_v28 }
 0x40c   :  { %v1556_v26 = vadd.f32 %v4776_v38, %v4047_v27 }
 0x40d   :  { %2210 = vmatmul.bf16.gmra.mxu1 %v1917_v51  ;;  %v2242_v49 = vmax.f32 %v2172_v46, 0.0  ;;  %v2095_v51 = vadd.f32 %v4403_v3, %v4435_v25 }
 0x40e   :  { %v1810_v21 = vpop.f32.mrf.mxu3 }
 0x40f   :  { %v1811_v45 = vadd.f32 %v1810_v21, %v1722_v44 }
 0x411   :  { %v1879_v17 = vmax.f32 %v1811_v45, 0.0 }
 0x412   :  { %v2173_v22 = vpop.f32.mrf.mxu1 }
 0x413   :  { %v2174_v55 = vadd.f32 %v2173_v22, %v2085_v29  ;;  %v4778_v29 = vld [vmem:[#allocation29_spill] sm:$0xff] }
 0x414   :  { %v1645_v46 = vadd.f32 %v4778_v29, %v1556_v26 }
 0x415   :  { %v2243_v2 = vmax.f32 %v2174_v55, 0.0 }
 0x416   :  { %v1812_v24 = vpop.f32.mrf.mxu3  ;;  %v1734_v43 = vadd.f32 %v1733_v57, %v1645_v46 }
 0x417   :  { %v1813_v34 = vadd.f32 %v1812_v24, %v1724_v6  ;;  %v2271_v9 = vpack.c.bf16 %v2243_v2, %v2242_v49  ;;  %v1736_v6 = vpop.f32.mrf.mxu2  ;;  %v2107_v2 = vpop.f32.mrf.mxu0 }
 0x419   :  { %v1881_v1 = vmax.f32 %v1813_v34, 0.0  ;;  %2375 = vmatmul.bf16.gmra.mxu2 %v2271_v9 }
 0x41a   :  { %v2176_v62 = vpop.f32.mrf.mxu1 }
 0x41b   :  { %v1919_v56 = vpack.c.bf16 %v1881_v1, %v1879_v17  ;;  %v2177_v33 = vadd.f32 %v2176_v62, %v2088_v40  ;;  %v2098_v17 = vadd.f32 %v4403_v3, %v4441_v4  ;;  %v2100_v62 = vadd.f32 %v4403_v3, %v2099_v30 }
 0x41c   :  { %v1737_v40 = vadd.f32 %v1736_v6, %v4314_v15  ;;  %v2103_v15 = vadd.f32 %v4403_v3, %v4455_v10 }
 0x41d   :  { %2215 = vmatmul.bf16.gmra.mxu1 %v1919_v56  ;;  %v2244_v7 = vmax.f32 %v2177_v33, 0.0 }
 0x41e   :  { %v1815_v20 = vpop.f32.mrf.mxu3 }
 0x41f   :  { %v1816_v47 = vadd.f32 %v1815_v20, %v1727_v5  ;;  %v1738_v1 = vpop.f32.mrf.mxu2  ;;  %v2109_v20 = vpop.f32.mrf.mxu0 }
 0x420   :  { %v2110_v57 = vadd.f32 %v4403_v3, %v2109_v20 }
 0x421   :  { %v1883_v36 = vmax.f32 %v1816_v47, 0.0 }
 0x422   :  { %v2178_v58 = vpop.f32.mrf.mxu1 }
 0x423   :  { %v2179_v12 = vadd.f32 %v2178_v58, %v2090_v23  ;;  %v1650_v23 = vadd.f32 %v4396_v18, %v1561_v39  ;;  %v2105_v18 = vadd.f32 %v4403_v3, %v2104_v37 }
 0x425   :  { %v2245_v41 = vmax.f32 %v2179_v12, 0.0  ;;  %v1739_v58 = vadd.f32 %v1738_v1, %v1650_v23 }
 0x426   :  { %v1817_v31 = vpop.f32.mrf.mxu3 }
 0x427   :  { %v2272_v19 = vpack.c.bf16 %v2245_v41, %v2244_v7  ;;  %v1818_v0 = vadd.f32 %v1817_v31, %v1729_v53  ;;  %v2112_v53 = vpop.f32.mrf.mxu0 }
 0x428   :  { %v2113_v29 = vadd.f32 %v4403_v3, %v2112_v53 }
 0x429   :  { %v1885_v13 = vmax.f32 %v1818_v0, 0.0  ;;  %2380 = vmatmul.bf16.gmra.mxu2 %v2272_v19 }
 0x42a   :  { %v2181_v8 = vpop.f32.mrf.mxu1 }
 0x42b   :  { %v1921_v59 = vpack.c.bf16 %v1885_v13, %v1883_v36  ;;  %v2182_v21 = vadd.f32 %v2181_v8, %v2093_v61  ;;  %v2108_v8 = vadd.f32 %v4403_v3, %v2107_v2 }
 0x42d   :  { %2220 = vmatmul.bf16.gmra.mxu1 %v1921_v59  ;;  %v2246_v44 = vmax.f32 %v2182_v21, 0.0 }
 0x42e   :  { %v1820_v16 = vpop.f32.mrf.mxu3 }
 0x42f   :  { %v1821_v48 = vadd.f32 %v1820_v16, %v1732_v50  ;;  %v2114_v0 = vpop.f32.mrf.mxu0 }
 0x430   :  { %v2115_v46 = vadd.f32 %v4403_v3, %v2114_v0 }
 0x431   :  { %v1887_v52 = vmax.f32 %v1821_v48, 0.0 }
 0x432   :  { %v2183_v54 = vpop.f32.mrf.mxu1 }
 0x433   :  { %v2184_v22 = vadd.f32 %v2183_v54, %v2095_v51  ;;  %v4480_v51 = vld [vmem:[%s4632_s8] ss:$0 sm:$0xff] }
 0x435   :  { %v2247_v11 = vmax.f32 %v2184_v22, 0.0 }
 0x436   :  { %v1822_v55 = vpop.f32.mrf.mxu3 }
 0x437   :  { %v2273_v49 = vpack.c.bf16 %v2247_v11, %v2246_v44  ;;  %v1823_v45 = vadd.f32 %v1822_v55, %v1734_v43  ;;  %v2117_v59 = vpop.f32.mrf.mxu0 }
 0x439   :  { %v1889_v24 = vmax.f32 %v1823_v45, 0.0  ;;  %2385 = vmatmul.bf16.gmra.mxu2 %v2273_v49 }
 0x43a   :  { %v2186_v25 = vpop.f32.mrf.mxu1 }
 0x43b   :  { %v1923_v34 = vpack.c.bf16 %v1889_v24, %v1887_v52  ;;  %v2187_v56 = vadd.f32 %v2186_v25, %v2098_v17 }
 0x43d   :  { %2225 = vmatmul.bf16.gmra.mxu1 %v1923_v34  ;;  %v2248_v35 = vmax.f32 %v2187_v56, 0.0  ;;  %v2118_v34 = vadd.f32 %v4403_v3, %v2117_v59 }
 0x43e   :  { %v1825_v9 = vpop.f32.mrf.mxu3 }
 0x43f   :  { %v1826_v5 = vadd.f32 %v1825_v9, %v1737_v40  ;;  %v2119_v21 = vpop.f32.mrf.mxu0 }
 0x440   :  { %v2120_v9 = vadd.f32 %v4403_v3, %v2119_v21 }
 0x441   :  { %v1891_v14 = vmax.f32 %v1826_v5, 0.0 }
 0x442   :  { %v2188_v42 = vpop.f32.mrf.mxu1 }
 0x443   :  { %v2189_v33 = vadd.f32 %v2188_v42, %v2100_v62 }
 0x445   :  { %v2249_v32 = vmax.f32 %v2189_v33, 0.0 }
 0x446   :  { %v1827_v63 = vpop.f32.mrf.mxu3 }
 0x447   :  { %v2274_v27 = vpack.c.bf16 %v2249_v32, %v2248_v35  ;;  %v1828_v60 = vadd.f32 %v1827_v63, %v1739_v58  ;;  %v2122_v48 = vpop.f32.mrf.mxu0 }
 0x448   :  { %v2123_v5 = vadd.f32 %v4403_v3, %v2122_v48 }
 0x449   :  { %v1893_v4 = vmax.f32 %v1828_v60, 0.0  ;;  %2390 = vmatmul.bf16.gmra.mxu2 %v2274_v27 }
 0x44a   :  { %v2191_v12 = vpop.f32.mrf.mxu1 }
 0x44b   :  { %v1925_v30 = vpack.c.bf16 %v1893_v4, %v1891_v14  ;;  %v2192_v7 = vadd.f32 %v2191_v12, %v2103_v15 }
 0x44d   :  { %2230 = vmatmul.bf16.gmra.mxu1 %v1925_v30  ;;  %v2250_v31 = vmax.f32 %v2192_v7, 0.0 }
 0x44f   :  { %v2124_v25 = vpop.f32.mrf.mxu0 }
 0x450   :  { %v2125_v32 = vadd.f32 %v4403_v3, %v2124_v25 }
 0x452   :  { %v2193_v47 = vpop.f32.mrf.mxu1 }
 0x453   :  { %v2194_v41 = vadd.f32 %v2193_v47, %v2105_v18 }
 0x455   :  { %v2251_v19 = vmax.f32 %v2194_v41, 0.0 }
 0x457   :  { %v2275_v36 = vpack.c.bf16 %v2251_v19, %v2250_v31  ;;  %v2127_v23 = vpop.f32.mrf.mxu0 }
 0x458   :  { %v2128_v31 = vadd.f32 %v4403_v3, %v2127_v23 }
 0x459   :  { %2395 = vmatmul.bf16.gmra.mxu2 %v2275_v36 }
 0x45a   :  { %v2196_v13 = vpop.f32.mrf.mxu1 }
 0x45b   :  { %v2197_v16 = vadd.f32 %v2196_v13, %v2108_v8 }
 0x45d   :  { %v2252_v10 = vmax.f32 %v2197_v16, 0.0 }
 0x45f   :  { %v2129_v27 = vpop.f32.mrf.mxu0 }
 0x460   :  { %v2130_v19 = vadd.f32 %v4403_v3, %v2129_v27 }
 0x462   :  { %v2198_v38 = vpop.f32.mrf.mxu1 }
 0x463   :  { %v2199_v26 = vadd.f32 %v2198_v38, %v2110_v57 }
 0x465   :  { %v2253_v61 = vmax.f32 %v2199_v26, 0.0 }
 0x467   :  { %v2276_v37 = vpack.c.bf16 %v2253_v61, %v2252_v10  ;;  %v2132_v7 = vpop.f32.mrf.mxu0 }
 0x468   :  { %v2133_v21 = vadd.f32 %v4403_v3, %v2132_v7 }
 0x469   :  { %2400 = vmatmul.bf16.gmra.mxu2 %v2276_v37 }
 0x46a   :  { %v2201_v54 = vpop.f32.mrf.mxu1 }
 0x46b   :  { %v2202_v22 = vadd.f32 %v2201_v54, %v2113_v29 }
 0x46c   :  { %v2361_v28 = vpop.f32.mrf.mxu2 }
 0x46d   :  { %v2362_v50 = vadd.f32 %v4480_v51, %v2361_v28  ;;  %v2254_v55 = vmax.f32 %v2202_v22, 0.0 }
 0x46f   :  { %2441 = vst [vmem:[%s4633_s9] sm:$0xff] %v2362_v50  ;;  %v2134_v38 = vpop.f32.mrf.mxu0 }
 0x470   :  { %v2135_v28 = vadd.f32 %v4403_v3, %v2134_v38 }
 0x472   :  { %v2203_v43 = vpop.f32.mrf.mxu1 }
 0x473   :  { %v2204_v44 = vadd.f32 %v2203_v43, %v2115_v46 }
 0x474   :  { %v2363_v11 = vpop.f32.mrf.mxu2 }
 0x475   :  { %v2255_v6 = vmax.f32 %v2204_v44, 0.0  ;;  %v2364_v49 = vadd.f32 %v4480_v51, %v2363_v11 }
 0x477   :  { %v2277_v45 = vpack.c.bf16 %v2255_v6, %v2254_v55  ;;  %2442 = vst [vmem:[%s4633_s9 + $0x8] sm:$0xff] %v2364_v49  ;;  %v2137_v54 = vpop.f32.mrf.mxu0 }
 0x479   :  { %2405 = vmatmul.bf16.gmra.mxu2 %v2277_v45 }
 0x47a   :  { %v2206_v2 = vpop.f32.mrf.mxu1 }
 0x47b   :  { %v2207_v39 = vadd.f32 %v2206_v2, %v2118_v34  ;;  %v2138_v2 = vadd.f32 %v4403_v3, %v2137_v54 }
 0x47c   :  { %v2366_v52 = vpop.f32.mrf.mxu2 }
 0x47d   :  { %v2367_v24 = vadd.f32 %v4480_v51, %v2366_v52  ;;  %v2256_v56 = vmax.f32 %v2207_v39, 0.0 }
 0x47f   :  { %2443 = vst [vmem:[%s4633_s9 + $0x10] sm:$0xff] %v2367_v24  ;;  %v2139_v55 = vpop.f32.mrf.mxu0 }
 0x480   :  { %v2140_v52 = vadd.f32 %v4403_v3, %v2139_v55 }
 0x482   :  { %v2208_v17 = vpop.f32.mrf.mxu1 }
 0x483   :  { %v2209_v1 = vadd.f32 %v2208_v17, %v2120_v9 }
 0x484   :  { %v2368_v62 = vpop.f32.mrf.mxu2 }
 0x485   :  { %v2257_v20 = vmax.f32 %v2209_v1, 0.0  ;;  %v2369_v42 = vadd.f32 %v4480_v51, %v2368_v62 }
 0x487   :  { %v2278_v40 = vpack.c.bf16 %v2257_v20, %v2256_v56  ;;  %2444 = vst [vmem:[%s4633_s9 + $0x18] sm:$0xff] %v2369_v42  ;;  %v2142_v9 = vpop.f32.mrf.mxu0 }
 0x489   :  { %2410 = vmatmul.bf16.gmra.mxu2 %v2278_v40 }
 0x48a   :  { %v2211_v33 = vpop.f32.mrf.mxu1 }
 0x48b   :  { %v2212_v63 = vadd.f32 %v2211_v33, %v2123_v5  ;;  %v2143_v33 = vadd.f32 %v4403_v3, %v2142_v9 }
 0x48c   :  { %v2371_v58 = vpop.f32.mrf.mxu2 }
 0x48d   :  { %v2372_v35 = vadd.f32 %v4480_v51, %v2371_v58  ;;  %v2258_v12 = vmax.f32 %v2212_v63, 0.0 }
 0x48f   :  { %2445 = vst [vmem:[%s4633_s9 + $0x20] sm:$0xff] %v2372_v35  ;;  %v2144_v23 = vpop.f32.mrf.mxu0 }
 0x490   :  { %v2145_v58 = vadd.f32 %v4403_v3, %v2144_v23 }
 0x492   :  { %v2213_v60 = vpop.f32.mrf.mxu1 }
 0x493   :  { %v2214_v14 = vadd.f32 %v2213_v60, %v2125_v32 }
 0x494   :  { %v2373_v4 = vpop.f32.mrf.mxu2 }
 0x495   :  { %v2259_v30 = vmax.f32 %v2214_v14, 0.0  ;;  %v2374_v53 = vadd.f32 %v4480_v51, %v2373_v4 }
 0x497   :  { %v2279_v15 = vpack.c.bf16 %v2259_v30, %v2258_v12  ;;  %2446 = vst [vmem:[%s4633_s9 + $0x28] sm:$0xff] %v2374_v53 }
 0x499   :  { %2415 = vmatmul.bf16.gmra.mxu2 %v2279_v15 }
 0x49a   :  { %v2216_v18 = vpop.f32.mrf.mxu1 }
 0x49b   :  { %v2217_v0 = vadd.f32 %v2216_v18, %v2128_v31 }
 0x49c   :  { %v2376_v47 = vpop.f32.mrf.mxu2 }
 0x49d   :  { %v2377_v41 = vadd.f32 %v4480_v51, %v2376_v47  ;;  %v2260_v59 = vmax.f32 %v2217_v0, 0.0 }
 0x49f   :  { %2447 = vst [vmem:[%s4633_s9 + $0x30] sm:$0xff] %v2377_v41 }
 0x4a2   :  { %v2218_v36 = vpop.f32.mrf.mxu1 }
 0x4a3   :  { %v2219_v13 = vadd.f32 %v2218_v36, %v2130_v19 }
 0x4a4   :  { %v2378_v8 = vpop.f32.mrf.mxu2 }
 0x4a5   :  { %v2261_v57 = vmax.f32 %v2219_v13, 0.0  ;;  %v2379_v16 = vadd.f32 %v4480_v51, %v2378_v8 }
 0x4a7   :  { %v2280_v26 = vpack.c.bf16 %v2261_v57, %v2260_v59  ;;  %2448 = vst [vmem:[%s4633_s9 + $0x38] sm:$0xff] %v2379_v16 }
 0x4a9   :  { %2420 = vmatmul.bf16.gmra.mxu2 %v2280_v26 }
 0x4aa   :  { %v2221_v10 = vpop.f32.mrf.mxu1 }
 0x4ab   :  { %v2222_v50 = vadd.f32 %v2221_v10, %v2133_v21 }
 0x4ac   :  { %v2381_v61 = vpop.f32.mrf.mxu2 }
 0x4ad   :  { %v2382_v37 = vadd.f32 %v4480_v51, %v2381_v61  ;;  %v2262_v43 = vmax.f32 %v2222_v50, 0.0 }
 0x4af   :  { %2449 = vst [vmem:[%s4633_s9 + $0x40] sm:$0xff] %v2382_v37 }
 0x4b2   :  { %v2223_v29 = vpop.f32.mrf.mxu1 }
 0x4b3   :  { %v2224_v46 = vadd.f32 %v2223_v29, %v2135_v28 }
 0x4b4   :  { %v2383_v22 = vpop.f32.mrf.mxu2 }
 0x4b5   :  { %v2263_v44 = vmax.f32 %v2224_v46, 0.0  ;;  %v2384_v48 = vadd.f32 %v4480_v51, %v2383_v22 }
 0x4b7   :  { %v2281_v11 = vpack.c.bf16 %v2263_v44, %v2262_v43  ;;  %2450 = vst [vmem:[%s4633_s9 + $0x48] sm:$0xff] %v2384_v48 }
 0x4b9   :  { %2425 = vmatmul.bf16.gmra.mxu2 %v2281_v11 }
 0x4ba   :  { %v2226_v6 = vpop.f32.mrf.mxu1 }
 0x4bb   :  { %v2227_v24 = vadd.f32 %v2226_v6, %v2138_v2 }
 0x4bc   :  { %v2386_v49 = vpop.f32.mrf.mxu2 }
 0x4bd   :  { %v2387_v45 = vadd.f32 %v4480_v51, %v2386_v49  ;;  %v2264_v17 = vmax.f32 %v2227_v24, 0.0 }
 0x4bf   :  { %2451 = vst [vmem:[%s4633_s9 + $0x50] sm:$0xff] %v2387_v45 }
 0x4c2   :  { %v2228_v25 = vpop.f32.mrf.mxu1 }
 0x4c3   :  { %v2229_v34 = vadd.f32 %v2228_v25, %v2140_v52 }
 0x4c4   :  { %v2388_v39 = vpop.f32.mrf.mxu2 }
 0x4c5   :  { %v2265_v1 = vmax.f32 %v2229_v34, 0.0  ;;  %v2389_v62 = vadd.f32 %v4480_v51, %v2388_v39 }
 0x4c7   :  { %v2282_v56 = vpack.c.bf16 %v2265_v1, %v2264_v17  ;;  %2452 = vst [vmem:[%s4633_s9 + $0x58] sm:$0xff] %v2389_v62 }
 0x4c9   :  { %2430 = vmatmul.bf16.gmra.mxu2 %v2282_v56 }
 0x4ca   :  { %v2231_v20 = vpop.f32.mrf.mxu1 }
 0x4cb   :  { %v2232_v35 = vadd.f32 %v2231_v20, %v2143_v33 }
 0x4cc   :  { %v2391_v42 = vpop.f32.mrf.mxu2 }
 0x4cd   :  { %v2392_v40 = vadd.f32 %v4480_v51, %v2391_v42  ;;  %v2266_v27 = vmax.f32 %v2232_v35, 0.0 }
 0x4cf   :  { %2453 = vst [vmem:[%s4633_s9 + $0x60] sm:$0xff] %v2392_v40 }
 0x4d2   :  { %v2233_v5 = vpop.f32.mrf.mxu1 }
 0x4d3   :  { %v2234_v32 = vadd.f32 %v2233_v5, %v2145_v58 }
 0x4d4   :  { %v2393_v63 = vpop.f32.mrf.mxu2 }
 0x4d5   :  { %v2267_v60 = vmax.f32 %v2234_v32, 0.0  ;;  %v2394_v14 = vadd.f32 %v4480_v51, %v2393_v63 }
 0x4d7   :  { %v2283_v4 = vpack.c.bf16 %v2267_v60, %v2266_v27  ;;  %2454 = vst [vmem:[%s4633_s9 + $0x68] sm:$0xff] %v2394_v14 }
 0x4d9   :  { %2435 = vmatmul.bf16.gmra.mxu2 %v2283_v4 }
 0x4dc   :  { %v2396_v12 = vpop.f32.mrf.mxu2 }
 0x4dd   :  { %v2397_v30 = vadd.f32 %v4480_v51, %v2396_v12 }
 0x4df   :  { %2455 = vst [vmem:[%s4633_s9 + $0x70] sm:$0xff] %v2397_v30 }
 0x4e4   :  { %v2398_v3 = vpop.f32.mrf.mxu2 }
 0x4e5   :  { %v2399_v53 = vadd.f32 %v4480_v51, %v2398_v3 }
 0x4e7   :  { %2456 = vst [vmem:[%s4633_s9 + $0x78] sm:$0xff] %v2399_v53 }
 0x4ec   :  { %v2401_v15 = vpop.f32.mrf.mxu2 }
 0x4ed   :  { %v2402_v18 = vadd.f32 %v4480_v51, %v2401_v15 }
 0x4ef   :  { %2457 = vst [vmem:[%s4633_s9 + $0x80] sm:$0xff] %v2402_v18 }
 0x4f4   :  { %v2403_v7 = vpop.f32.mrf.mxu2 }
 0x4f5   :  { %v2404_v47 = vadd.f32 %v4480_v51, %v2403_v7 }
 0x4f7   :  { %2458 = vst [vmem:[%s4633_s9 + $0x88] sm:$0xff] %v2404_v47 }
 0x4fc   :  { %v2406_v41 = vpop.f32.mrf.mxu2 }
 0x4fd   :  { %v2407_v31 = vadd.f32 %v4480_v51, %v2406_v41 }
 0x4ff   :  { %2459 = vst [vmem:[%s4633_s9 + $0x90] sm:$0xff] %v2407_v31 }
 0x504   :  { %v2408_v19 = vpop.f32.mrf.mxu2 }
 0x505   :  { %v2409_v0 = vadd.f32 %v4480_v51, %v2408_v19 }
 0x507   :  { %2460 = vst [vmem:[%s4633_s9 + $0x98] sm:$0xff] %v2409_v0 }
 0x50c   :  { %v2411_v36 = vpop.f32.mrf.mxu2 }
 0x50d   :  { %v2412_v13 = vadd.f32 %v4480_v51, %v2411_v36 }
 0x50f   :  { %2461 = vst [vmem:[%s4633_s9 + $0xa0] sm:$0xff] %v2412_v13 }
 0x514   :  { %v2413_v8 = vpop.f32.mrf.mxu2 }
 0x515   :  { %v2414_v59 = vadd.f32 %v4480_v51, %v2413_v8 }
 0x517   :  { %2462 = vst [vmem:[%s4633_s9 + $0xa8] sm:$0xff] %v2414_v59 }
 0x51c   :  { %v2416_v57 = vpop.f32.mrf.mxu2 }
 0x51d   :  { %v2417_v16 = vadd.f32 %v4480_v51, %v2416_v57 }
 0x51f   :  { %2463 = vst [vmem:[%s4633_s9 + $0xb0] sm:$0xff] %v2417_v16 }
 0x524   :  { %v2418_v38 = vpop.f32.mrf.mxu2 }
 0x525   :  { %v2419_v26 = vadd.f32 %v4480_v51, %v2418_v38 }
 0x527   :  { %2464 = vst [vmem:[%s4633_s9 + $0xb8] sm:$0xff] %v2419_v26 }
 0x52c   :  { %v2421_v10 = vpop.f32.mrf.mxu2 }
 0x52d   :  { %v2422_v61 = vadd.f32 %v4480_v51, %v2421_v10 }
 0x52f   :  { %2465 = vst [vmem:[%s4633_s9 + $0xc0] sm:$0xff] %v2422_v61 }
 0x534   :  { %v2423_v37 = vpop.f32.mrf.mxu2 }
 0x535   :  { %v2424_v21 = vadd.f32 %v4480_v51, %v2423_v37 }
 0x537   :  { %2466 = vst [vmem:[%s4633_s9 + $0xc8] sm:$0xff] %v2424_v21 }
 0x53c   :  { %v2426_v54 = vpop.f32.mrf.mxu2 }
 0x53d   :  { %v2427_v28 = vadd.f32 %v4480_v51, %v2426_v54 }
 0x53f   :  { %2467 = vst [vmem:[%s4633_s9 + $0xd0] sm:$0xff] %v2427_v28 }
 0x544   :  { %v2428_v50 = vpop.f32.mrf.mxu2 }
 0x545   :  { %v2429_v29 = vadd.f32 %v4480_v51, %v2428_v50 }
 0x547   :  { %2468 = vst [vmem:[%s4633_s9 + $0xd8] sm:$0xff] %v2429_v29 }
 0x54c   :  { %v2431_v46 = vpop.f32.mrf.mxu2 }
 0x54d   :  { %v2432_v22 = vadd.f32 %v4480_v51, %v2431_v46 }
 0x54f   :  { %2469 = vst [vmem:[%s4633_s9 + $0xe0] sm:$0xff] %v2432_v22 }
 0x554   :  { %v2433_v43 = vpop.f32.mrf.mxu2 }
 0x555   :  { %v2434_v44 = vadd.f32 %v4480_v51, %v2433_v43 }
 0x557   :  { %2470 = vst [vmem:[%s4633_s9 + $0xe8] sm:$0xff] %v2434_v44 }
 0x55c   :  { %v2436_v48 = vpop.f32.mrf.mxu2 }
 0x55d   :  { %v2437_v11 = vadd.f32 %v4480_v51, %v2436_v48 }
 0x55f   :  { %2471 = vst [vmem:[%s4633_s9 + $0xf0] sm:$0xff] %v2437_v11 }
 0x564   :  { %v2438_v55 = vpop.f32.mrf.mxu2 }
 0x565   :  { %v2439_v6 = vadd.f32 %v4480_v51, %v2438_v55 }
 0x567   :  { %2472 = vst [vmem:[%s4633_s9 + $0xf8] sm:$0xff] %v2439_v6 }
 0x568   :  { %2477 = vsyncpa [#allocation3], 1 }

</bundles_post_ra>
